<compile_context>
chip_gen: v7x
topology: tpu7x:2x2x1
jax: 0.10.0
libtpu: 0.0.40
codegen_flags: <defaults>
</compile_context>

<pallas_src>
import functools
import math

import jax
import jax.numpy as jnp
from jax.experimental import pallas as pl
from jax.experimental.pallas import tpu as pltpu

EPS = 1e-5


def resnet3d_block_kernel(x_ref, w1_ref, w2_ref, m_ref, o_ref, xs_ref, *,
                          deltas, taps_per_store, n_samples):
    """Processes a group of `n_samples` batch samples per grid step.

    x_ref : (G, C, P) f32        activations, channel-first, flat spatial on lanes
    w*_ref: (C, T*C)  compute dt  column block t holds tap t's (C, C) weights
    m_ref : (T, P)    f32        per-tap boundary masks (1 inside volume, 0 = pad)
    o_ref : (G, C, P) f32
    xs_ref: (T*C, P)  compute-dtype scratch (im2col patch matrix)
    """
    _, C, P = x_ref.shape
    T = xs_ref.shape[0] // C
    n_taps = len(deltas)

    def conv3x3x3(z, w_ref):
        # Build im2col: xs[t*C:(t+1)*C, p] = z[:, p + delta_t], zeroed where the
        # neighbour falls outside the volume (the ConstantPad3d zeros).  Taps are
        # written `taps_per_store` at a time so each store covers a whole packed
        # sublane band of xs (16 rows for bf16, 8 for f32) -> unmasked full vst.
        for grp in range(T // taps_per_store):
            parts = []
            for j in range(taps_per_store):
                t = grp * taps_per_store + j
                if t < n_taps:
                    delta = deltas[t]
                    s = delta % P
                    # XLU lane rotate: shifted[:, p] = z[:, (p + delta) % P].
                    shifted = z if s == 0 else pltpu.roll(z, shift=P - s, axis=1)
                    if delta == 0:                 # centre tap: always in-bounds
                        masked = shifted
                    else:
                        masked = shifted * m_ref[t:t + 1, :]
                    parts.append(masked)
                else:
                    # Padding tap (its weight columns are zero); rows still get
                    # written so uninitialised scratch never feeds the MXU.
                    parts.append(jnp.zeros_like(z))
            band = parts[0] if len(parts) == 1 else jnp.concatenate(parts, axis=0)
            r0 = grp * taps_per_store * C
            xs_ref[r0:r0 + taps_per_store * C, :] = band.astype(xs_ref.dtype)
        # Single MXU matmul, K = T*C, f32 accumulation.  (Conv bias omitted: a
        # per-channel constant is exactly cancelled by the InstanceNorm below.)
        return jnp.dot(w_ref[...], xs_ref[...], preferred_element_type=jnp.float32)

    def instance_norm(y):
        # Fused single-pass stats along the dense lane axis.
        inv_n = 1.0 / P
        mean = jnp.sum(y, axis=1, keepdims=True) * inv_n
        var = jnp.sum(y * y, axis=1, keepdims=True) * inv_n - mean * mean
        return (y - mean) * jax.lax.rsqrt(jnp.maximum(var, 0.0) + EPS)

    @pl.loop(0, n_samples)
    def _(g):
        x = x_ref[g].astype(jnp.float32)                            # (C, P)
        y = jnp.maximum(instance_norm(conv3x3x3(x, w1_ref)), 0.0)   # pad->conv->IN->ReLU
        y = instance_norm(conv3x3x3(y, w2_ref))                     # pad->conv->IN
        o_ref[g] = (x + y).astype(o_ref.dtype)                      # residual


def _tap_masks_and_deltas(D, H, W, n_taps_padded):
    """Host-side: flat-index deltas and (T, P) f32 validity masks for all 27 taps."""
    P = D * H * W
    pos = jnp.arange(P, dtype=jnp.int32)
    d_idx = pos // (H * W)
    h_idx = (pos // W) % H
    w_idx = pos % W
    deltas, rows = [], []
    for kd in range(3):
        for kh in range(3):
            for kw in range(3):
                dd, dh, dw = kd - 1, kh - 1, kw - 1
                deltas.append(dd * H * W + dh * W + dw)
                rows.append((d_idx + dd >= 0) & (d_idx + dd < D) &
                            (h_idx + dh >= 0) & (h_idx + dh < H) &
                            (w_idx + dw >= 0) & (w_idx + dw < W))
    mask = jnp.stack(rows).astype(jnp.float32)                      # (27, P)
    if n_taps_padded > len(deltas):
        mask = jnp.pad(mask, ((0, n_taps_padded - len(deltas)), (0, 0)))
    return tuple(deltas), mask


def resnet3d_block(x, w1, b1, w2, b2, *, compute_dtype=jnp.bfloat16,
                   samples_per_step=None):
    """x: (N, C, D, H, W) f32 (NCDHW).  w*: (C, C, 3, 3, 3) (OIDHW).  b*: (C,).

    b1/b2 are accepted for parity with the PyTorch module but unused: the
    per-channel constant bias is exactly cancelled by InstanceNorm3d(affine=False)'s
    mean subtraction.  compute_dtype = MXU operand dtype (accumulation always f32).
    """
    del b1, b2
    N, C, D, H, W = x.shape
    P = D * H * W
    n_taps = 27

    # Tap grouping so every im2col store is a full packed sublane band.
    packing = max(1, 4 // jnp.dtype(compute_dtype).itemsize)        # vals / 32-bit word
    band_rows = 8 * packing                                          # 8 (f32) / 16 (bf16)
    taps_per_store = band_rows // math.gcd(band_rows, C)
    T = ((n_taps + taps_per_store - 1) // taps_per_store) * taps_per_store

    deltas, mask = _tap_masks_and_deltas(D, H, W, T)

    def pack_w(w):
        # (Cout, Cin, kd, kh, kw) -> (Cout, T*Cin); column = ((kd*3+kh)*3+kw)*Cin + cin
        wp = jnp.transpose(w, (0, 2, 3, 4, 1)).reshape(C, n_taps * C)
        if T > n_taps:
            wp = jnp.pad(wp, ((0, 0), (0, (T - n_taps) * C)))        # zero dummy taps
        return wp.astype(compute_dtype)

    if samples_per_step is None:
        # Amortise per-grid-step overhead at toy shapes; 1 sample/step otherwise.
        samples_per_step = N if N * C * P * x.dtype.itemsize <= (2 << 20) else 1
    if N % samples_per_step != 0:
        samples_per_step = 1
    G = samples_per_step

    x_flat = x.reshape(N, C, P)          # lane-dense slab: last dim multiple of 128

    act_spec = pl.BlockSpec((G, C, P), lambda n: (n, 0, 0))
    # TODO(synk): mark these constant-index specs pipeline_mode=pl.Buffered(1) at
    # production channel counts so they are not double-buffered.
    w_spec = pl.BlockSpec((C, T * C), lambda n: (0, 0))
    m_spec = pl.BlockSpec((T, P), lambda n: (0, 0))

    kernel = functools.partial(resnet3d_block_kernel, deltas=deltas,
                               taps_per_store=taps_per_store, n_samples=G)

    out = pl.pallas_call(
        kernel,
        out_shape=jax.ShapeDtypeStruct((N, C, P), x.dtype),
        grid_spec=pltpu.PrefetchScalarGridSpec(
            num_scalar_prefetch=0,
            grid=(N // G,),
            in_specs=[act_spec, w_spec, w_spec, m_spec],
            out_specs=act_spec,
            scratch_shapes=[pltpu.VMEM((T * C, P), compute_dtype)],
        ),
        compiler_params=pltpu.CompilerParams(
            dimension_semantics=("parallel",)),
    )(x_flat, pack_w(w1), pack_w(w2), mask)

    return out.reshape(N, C, D, H, W)


def reference(x, w1, b1, w2, b2):
    """Pure-JAX reference of the PyTorch forward (NCDHW layout, bias included)."""
    def conv(z, w, b):
        out = jax.lax.conv_general_dilated(
            z, w, window_strides=(1, 1, 1), padding=[(1, 1)] * 3,
            dimension_numbers=("NCDHW", "OIDHW", "NCDHW"))
        return out + b.reshape(1, -1, 1, 1, 1)

    def inorm(z):
        m = jnp.mean(z, axis=(2, 3, 4), keepdims=True)
        v = jnp.mean(jnp.square(z - m), axis=(2, 3, 4), keepdims=True)
        return (z - m) * jax.lax.rsqrt(v + EPS)

    y = jax.nn.relu(inorm(conv(x, w1, b1)))
    y = inorm(conv(y, w2, b2))
    return x + y


if __name__ == "__main__":
    key = jax.random.PRNGKey(0)
    kx, kw1, kb1, kw2, kb2 = jax.random.split(key, 5)

    # Small deterministic shapes: batch=2, dim=8 channels, 8^3 volume (NCDHW).
    N, C, D, H, W = 2, 8, 8, 8, 8
    x = jax.random.normal(kx, (N, C, D, H, W), jnp.float32)

    fan_in = C * 27
    bound = 1.0 / (fan_in ** 0.5)
    w1 = jax.random.uniform(kw1, (C, C, 3, 3, 3), jnp.float32, -bound, bound)
    b1 = jax.random.uniform(kb1, (C,), jnp.float32, -bound, bound)
    w2 = jax.random.uniform(kw2, (C, C, 3, 3, 3), jnp.float32, -bound, bound)
    b2 = jax.random.uniform(kb2, (C,), jnp.float32, -bound, bound)

    ref = reference(x, w1, b1, w2, b2)

    # Strict check: f32 MXU operands, one sample per grid step (exercises the
    # per-sample parallel-batch path).  Bias is dropped in-kernel but present in
    # the reference; InstanceNorm cancels it exactly, so tolerances hold.
    out_f32 = jax.block_until_ready(
        resnet3d_block(x, w1, b1, w2, b2, compute_dtype=jnp.float32,
                       samples_per_step=1))
    assert out_f32.shape == ref.shape and out_f32.dtype == ref.dtype
    assert jnp.allclose(out_f32, ref, rtol=1e-3, atol=1e-3), (
        float(jnp.max(jnp.abs(out_f32 - ref))))

    # Default fast path: bf16 MXU operands, f32 accumulation, all samples grouped
    # into one grid step (exercises paired-tap full-band stores + pl.loop path).
    out_bf16 = jax.block_until_ready(resnet3d_block(x, w1, b1, w2, b2))
    assert out_bf16.shape == ref.shape
    assert jnp.allclose(out_bf16, ref, rtol=5e-2, atol=5e-2), (
        float(jnp.max(jnp.abs(out_bf16 - ref))))

    print("KERNEL_OK")
</pallas_src>

<mosaic_0001>
module attributes {stable_mosaic.version = 11 : i64} {
  func.func @resnet3d_block_kernel(%arg0: i32, %arg1: memref<1x8x512xf32, #tpu.memory_space<vmem>>, %arg2: memref<8x216xf32, #tpu.memory_space<vmem>>, %arg3: memref<8x216xf32, #tpu.memory_space<vmem>>, %arg4: memref<27x512xf32, #tpu.memory_space<vmem>>, %arg5: memref<1x8x512xf32, #tpu.memory_space<vmem>>, %arg6: memref<216x512xf32, #tpu.memory_space<vmem>>) attributes {dimension_semantics = [#tpu.dimension_semantics<parallel>], iteration_bounds = array<i64: 2>, scalar_prefetch = 0 : i64, scratch_operands = 1 : i64, tpu.core_type = #tpu.core_type<tc>, window_params = [{transform_indices = @transform_0, window_bounds = array<i64: 1, 8, 512>}, {pipeline_mode = #tpu.pipeline_mode<synchronous>, transform_indices = @transform_1, window_bounds = array<i64: 8, 216>}, {pipeline_mode = #tpu.pipeline_mode<synchronous>, transform_indices = @transform_2, window_bounds = array<i64: 8, 216>}, {pipeline_mode = #tpu.pipeline_mode<synchronous>, transform_indices = @transform_3, window_bounds = array<i64: 27, 512>}, {transform_indices = @transform_4, window_bounds = array<i64: 1, 8, 512>}]} {
    %c0_i32 = arith.constant 0 : i32
    %c1_i32 = arith.constant 1 : i32
    %0 = arith.muli %c0_i32, %c1_i32 : i32
    %c0_i32_0 = arith.constant 0 : i32
    %1 = arith.addi %c0_i32_0, %0 : i32
    %2 = arith.index_cast %1 : i32 to index
    %c0 = arith.constant 0 : index
    %c0_1 = arith.constant 0 : index
    %3 = vector.load %arg1[%2, %c0, %c0_1] : memref<1x8x512xf32, #tpu.memory_space<vmem>>, vector<1x8x512xf32>
    %4 = vector.shape_cast %3 : vector<1x8x512xf32> to vector<8x512xf32>
    %c73_i32 = arith.constant 73 : i32
    %5 = tpu.dynamic_rotate %4 by %c73_i32 dim 1 : vector<8x512xf32>, i32 -> vector<8x512xf32>
    %c0_2 = arith.constant 0 : index
    %c0_3 = arith.constant 0 : index
    %6 = vector.load %arg4[%c0_2, %c0_3] : memref<27x512xf32, #tpu.memory_space<vmem>>, vector<1x512xf32>
    %7 = vector.broadcast %6 : vector<1x512xf32> to vector<8x512xf32>
    %8 = arith.mulf %5, %7 : vector<8x512xf32>
    %c0_4 = arith.constant 0 : index
    %c0_5 = arith.constant 0 : index
    %9 = vector.load %arg6[%c0_4, %c0_5] : memref<216x512xf32, #tpu.memory_space<vmem>>, vector<8x512xf32>
    tpu.vector_store %arg6[%c0_4, %c0_5], %8 {strides = array<i32>} : memref<216x512xf32, #tpu.memory_space<vmem>>, vector<8x512xf32>,
    %c72_i32 = arith.constant 72 : i32
    %10 = tpu.dynamic_rotate %4 by %c72_i32 dim 1 : vector<8x512xf32>, i32 -> vector<8x512xf32>
    %c1 = arith.constant 1 : index
    %c0_6 = arith.constant 0 : index
    %11 = vector.load %arg4[%c1, %c0_6] : memref<27x512xf32, #tpu.memory_space<vmem>>, vector<1x512xf32>
    %12 = vector.broadcast %11 : vector<1x512xf32> to vector<8x512xf32>
    %13 = arith.mulf %10, %12 : vector<8x512xf32>
    %c8 = arith.constant 8 : index
    %c0_7 = arith.constant 0 : index
    %14 = vector.load %arg6[%c8, %c0_7] : memref<216x512xf32, #tpu.memory_space<vmem>>, vector<8x512xf32>
    tpu.vector_store %arg6[%c8, %c0_7], %13 {strides = array<i32>} : memref<216x512xf32, #tpu.memory_space<vmem>>, vector<8x512xf32>,
    %c71_i32 = arith.constant 71 : i32
    %15 = tpu.dynamic_rotate %4 by %c71_i32 dim 1 : vector<8x512xf32>, i32 -> vector<8x512xf32>
    %c2 = arith.constant 2 : index
    %c0_8 = arith.constant 0 : index
    %16 = vector.load %arg4[%c2, %c0_8] : memref<27x512xf32, #tpu.memory_space<vmem>>, vector<1x512xf32>
    %17 = vector.broadcast %16 : vector<1x512xf32> to vector<8x512xf32>
    %18 = arith.mulf %15, %17 : vector<8x512xf32>
    %c16 = arith.constant 16 : index
    %c0_9 = arith.constant 0 : index
    %19 = vector.load %arg6[%c16, %c0_9] : memref<216x512xf32, #tpu.memory_space<vmem>>, vector<8x512xf32>
    tpu.vector_store %arg6[%c16, %c0_9], %18 {strides = array<i32>} : memref<216x512xf32, #tpu.memory_space<vmem>>, vector<8x512xf32>,
    %c65_i32 = arith.constant 65 : i32
    %20 = tpu.dynamic_rotate %4 by %c65_i32 dim 1 : vector<8x512xf32>, i32 -> vector<8x512xf32>
    %c3 = arith.constant 3 : index
    %c0_10 = arith.constant 0 : index
    %21 = vector.load %arg4[%c3, %c0_10] : memref<27x512xf32, #tpu.memory_space<vmem>>, vector<1x512xf32>
    %22 = vector.broadcast %21 : vector<1x512xf32> to vector<8x512xf32>
    %23 = arith.mulf %20, %22 : vector<8x512xf32>
    %c24 = arith.constant 24 : index
    %c0_11 = arith.constant 0 : index
    %24 = vector.load %arg6[%c24, %c0_11] : memref<216x512xf32, #tpu.memory_space<vmem>>, vector<8x512xf32>
    tpu.vector_store %arg6[%c24, %c0_11], %23 {strides = array<i32>} : memref<216x512xf32, #tpu.memory_space<vmem>>, vector<8x512xf32>,
    %c64_i32 = arith.constant 64 : i32
    %25 = tpu.dynamic_rotate %4 by %c64_i32 dim 1 : vector<8x512xf32>, i32 -> vector<8x512xf32>
    %c4 = arith.constant 4 : index
    %c0_12 = arith.constant 0 : index
    %26 = vector.load %arg4[%c4, %c0_12] : memref<27x512xf32, #tpu.memory_space<vmem>>, vector<1x512xf32>
    %27 = vector.broadcast %26 : vector<1x512xf32> to vector<8x512xf32>
    %28 = arith.mulf %25, %27 : vector<8x512xf32>
    %c32 = arith.constant 32 : index
    %c0_13 = arith.constant 0 : index
    %29 = vector.load %arg6[%c32, %c0_13] : memref<216x512xf32, #tpu.memory_space<vmem>>, vector<8x512xf32>
    tpu.vector_store %arg6[%c32, %c0_13], %28 {strides = array<i32>} : memref<216x512xf32, #tpu.memory_space<vmem>>, vector<8x512xf32>,
    %c63_i32 = arith.constant 63 : i32
    %30 = tpu.dynamic_rotate %4 by %c63_i32 dim 1 : vector<8x512xf32>, i32 -> vector<8x512xf32>
    %c5 = arith.constant 5 : index
    %c0_14 = arith.constant 0 : index
    %31 = vector.load %arg4[%c5, %c0_14] : memref<27x512xf32, #tpu.memory_space<vmem>>, vector<1x512xf32>
    %32 = vector.broadcast %31 : vector<1x512xf32> to vector<8x512xf32>
    %33 = arith.mulf %30, %32 : vector<8x512xf32>
    %c40 = arith.constant 40 : index
    %c0_15 = arith.constant 0 : index
    %34 = vector.load %arg6[%c40, %c0_15] : memref<216x512xf32, #tpu.memory_space<vmem>>, vector<8x512xf32>
    tpu.vector_store %arg6[%c40, %c0_15], %33 {strides = array<i32>} : memref<216x512xf32, #tpu.memory_space<vmem>>, vector<8x512xf32>,
    %c57_i32 = arith.constant 57 : i32
    %35 = tpu.dynamic_rotate %4 by %c57_i32 dim 1 : vector<8x512xf32>, i32 -> vector<8x512xf32>
    %c6 = arith.constant 6 : index
    %c0_16 = arith.constant 0 : index
    %36 = vector.load %arg4[%c6, %c0_16] : memref<27x512xf32, #tpu.memory_space<vmem>>, vector<1x512xf32>
    %37 = vector.broadcast %36 : vector<1x512xf32> to vector<8x512xf32>
    %38 = arith.mulf %35, %37 : vector<8x512xf32>
    %c48 = arith.constant 48 : index
    %c0_17 = arith.constant 0 : index
    %39 = vector.load %arg6[%c48, %c0_17] : memref<216x512xf32, #tpu.memory_space<vmem>>, vector<8x512xf32>
    tpu.vector_store %arg6[%c48, %c0_17], %38 {strides = array<i32>} : memref<216x512xf32, #tpu.memory_space<vmem>>, vector<8x512xf32>,
    %c56_i32 = arith.constant 56 : i32
    %40 = tpu.dynamic_rotate %4 by %c56_i32 dim 1 : vector<8x512xf32>, i32 -> vector<8x512xf32>
    %c7 = arith.constant 7 : index
    %c0_18 = arith.constant 0 : index
    %41 = vector.load %arg4[%c7, %c0_18] : memref<27x512xf32, #tpu.memory_space<vmem>>, vector<1x512xf32>
    %42 = vector.broadcast %41 : vector<1x512xf32> to vector<8x512xf32>
    %43 = arith.mulf %40, %42 : vector<8x512xf32>
    %c56 = arith.constant 56 : index
    %c0_19 = arith.constant 0 : index
    %44 = vector.load %arg6[%c56, %c0_19] : memref<216x512xf32, #tpu.memory_space<vmem>>, vector<8x512xf32>
    tpu.vector_store %arg6[%c56, %c0_19], %43 {strides = array<i32>} : memref<216x512xf32, #tpu.memory_space<vmem>>, vector<8x512xf32>,
    %c55_i32 = arith.constant 55 : i32
    %45 = tpu.dynamic_rotate %4 by %c55_i32 dim 1 : vector<8x512xf32>, i32 -> vector<8x512xf32>
    %c8_20 = arith.constant 8 : index
    %c0_21 = arith.constant 0 : index
    %46 = vector.load %arg4[%c8_20, %c0_21] : memref<27x512xf32, #tpu.memory_space<vmem>>, vector<1x512xf32>
    %47 = vector.broadcast %46 : vector<1x512xf32> to vector<8x512xf32>
    %48 = arith.mulf %45, %47 : vector<8x512xf32>
    %c64 = arith.constant 64 : index
    %c0_22 = arith.constant 0 : index
    %49 = vector.load %arg6[%c64, %c0_22] : memref<216x512xf32, #tpu.memory_space<vmem>>, vector<8x512xf32>
    tpu.vector_store %arg6[%c64, %c0_22], %48 {strides = array<i32>} : memref<216x512xf32, #tpu.memory_space<vmem>>, vector<8x512xf32>,
    %c9_i32 = arith.constant 9 : i32
    %50 = tpu.dynamic_rotate %4 by %c9_i32 dim 1 : vector<8x512xf32>, i32 -> vector<8x512xf32>
    %c9 = arith.constant 9 : index
    %c0_23 = arith.constant 0 : index
    %51 = vector.load %arg4[%c9, %c0_23] : memref<27x512xf32, #tpu.memory_space<vmem>>, vector<1x512xf32>
    %52 = vector.broadcast %51 : vector<1x512xf32> to vector<8x512xf32>
    %53 = arith.mulf %50, %52 : vector<8x512xf32>
    %c72 = arith.constant 72 : index
    %c0_24 = arith.constant 0 : index
    %54 = vector.load %arg6[%c72, %c0_24] : memref<216x512xf32, #tpu.memory_space<vmem>>, vector<8x512xf32>
    tpu.vector_store %arg6[%c72, %c0_24], %53 {strides = array<i32>} : memref<216x512xf32, #tpu.memory_space<vmem>>, vector<8x512xf32>,
    %c8_i32 = arith.constant 8 : i32
    %55 = tpu.dynamic_rotate %4 by %c8_i32 dim 1 : vector<8x512xf32>, i32 -> vector<8x512xf32>
    %c10 = arith.constant 10 : index
    %c0_25 = arith.constant 0 : index
    %56 = vector.load %arg4[%c10, %c0_25] : memref<27x512xf32, #tpu.memory_space<vmem>>, vector<1x512xf32>
    %57 = vector.broadcast %56 : vector<1x512xf32> to vector<8x512xf32>
    %58 = arith.mulf %55, %57 : vector<8x512xf32>
    %c80 = arith.constant 80 : index
    %c0_26 = arith.constant 0 : index
    %59 = vector.load %arg6[%c80, %c0_26] : memref<216x512xf32, #tpu.memory_space<vmem>>, vector<8x512xf32>
    tpu.vector_store %arg6[%c80, %c0_26], %58 {strides = array<i32>} : memref<216x512xf32, #tpu.memory_space<vmem>>, vector<8x512xf32>,
    %c7_i32 = arith.constant 7 : i32
    %60 = tpu.dynamic_rotate %4 by %c7_i32 dim 1 : vector<8x512xf32>, i32 -> vector<8x512xf32>
    %c11 = arith.constant 11 : index
    %c0_27 = arith.constant 0 : index
    %61 = vector.load %arg4[%c11, %c0_27] : memref<27x512xf32, #tpu.memory_space<vmem>>, vector<1x512xf32>
    %62 = vector.broadcast %61 : vector<1x512xf32> to vector<8x512xf32>
    %63 = arith.mulf %60, %62 : vector<8x512xf32>
    %c88 = arith.constant 88 : index
    %c0_28 = arith.constant 0 : index
    %64 = vector.load %arg6[%c88, %c0_28] : memref<216x512xf32, #tpu.memory_space<vmem>>, vector<8x512xf32>
    tpu.vector_store %arg6[%c88, %c0_28], %63 {strides = array<i32>} : memref<216x512xf32, #tpu.memory_space<vmem>>, vector<8x512xf32>,
    %c1_i32_29 = arith.constant 1 : i32
    %65 = tpu.dynamic_rotate %4 by %c1_i32_29 dim 1 : vector<8x512xf32>, i32 -> vector<8x512xf32>
    %c12 = arith.constant 12 : index
    %c0_30 = arith.constant 0 : index
    %66 = vector.load %arg4[%c12, %c0_30] : memref<27x512xf32, #tpu.memory_space<vmem>>, vector<1x512xf32>
    %67 = vector.broadcast %66 : vector<1x512xf32> to vector<8x512xf32>
    %68 = arith.mulf %65, %67 : vector<8x512xf32>
    %c96 = arith.constant 96 : index
    %c0_31 = arith.constant 0 : index
    %69 = vector.load %arg6[%c96, %c0_31] : memref<216x512xf32, #tpu.memory_space<vmem>>, vector<8x512xf32>
    tpu.vector_store %arg6[%c96, %c0_31], %68 {strides = array<i32>} : memref<216x512xf32, #tpu.memory_space<vmem>>, vector<8x512xf32>,
    %c104 = arith.constant 104 : index
    %c0_32 = arith.constant 0 : index
    %70 = vector.load %arg6[%c104, %c0_32] : memref<216x512xf32, #tpu.memory_space<vmem>>, vector<8x512xf32>
    tpu.vector_store %arg6[%c104, %c0_32], %4 {strides = array<i32>} : memref<216x512xf32, #tpu.memory_space<vmem>>, vector<8x512xf32>,
    %c511_i32 = arith.constant 511 : i32
    %71 = tpu.dynamic_rotate %4 by %c511_i32 dim 1 : vector<8x512xf32>, i32 -> vector<8x512xf32>
    %c14 = arith.constant 14 : index
    %c0_33 = arith.constant 0 : index
    %72 = vector.load %arg4[%c14, %c0_33] : memref<27x512xf32, #tpu.memory_space<vmem>>, vector<1x512xf32>
    %73 = vector.broadcast %72 : vector<1x512xf32> to vector<8x512xf32>
    %74 = arith.mulf %71, %73 : vector<8x512xf32>
    %c112 = arith.constant 112 : index
    %c0_34 = arith.constant 0 : index
    %75 = vector.load %arg6[%c112, %c0_34] : memref<216x512xf32, #tpu.memory_space<vmem>>, vector<8x512xf32>
    tpu.vector_store %arg6[%c112, %c0_34], %74 {strides = array<i32>} : memref<216x512xf32, #tpu.memory_space<vmem>>, vector<8x512xf32>,
    %c505_i32 = arith.constant 505 : i32
    %76 = tpu.dynamic_rotate %4 by %c505_i32 dim 1 : vector<8x512xf32>, i32 -> vector<8x512xf32>
    %c15 = arith.constant 15 : index
    %c0_35 = arith.constant 0 : index
    %77 = vector.load %arg4[%c15, %c0_35] : memref<27x512xf32, #tpu.memory_space<vmem>>, vector<1x512xf32>
    %78 = vector.broadcast %77 : vector<1x512xf32> to vector<8x512xf32>
    %79 = arith.mulf %76, %78 : vector<8x512xf32>
    %c120 = arith.constant 120 : index
    %c0_36 = arith.constant 0 : index
    %80 = vector.load %arg6[%c120, %c0_36] : memref<216x512xf32, #tpu.memory_space<vmem>>, vector<8x512xf32>
    tpu.vector_store %arg6[%c120, %c0_36], %79 {strides = array<i32>} : memref<216x512xf32, #tpu.memory_space<vmem>>, vector<8x512xf32>,
    %c504_i32 = arith.constant 504 : i32
    %81 = tpu.dynamic_rotate %4 by %c504_i32 dim 1 : vector<8x512xf32>, i32 -> vector<8x512xf32>
    %c16_37 = arith.constant 16 : index
    %c0_38 = arith.constant 0 : index
    %82 = vector.load %arg4[%c16_37, %c0_38] : memref<27x512xf32, #tpu.memory_space<vmem>>, vector<1x512xf32>
    %83 = vector.broadcast %82 : vector<1x512xf32> to vector<8x512xf32>
    %84 = arith.mulf %81, %83 : vector<8x512xf32>
    %c128 = arith.constant 128 : index
    %c0_39 = arith.constant 0 : index
    %85 = vector.load %arg6[%c128, %c0_39] : memref<216x512xf32, #tpu.memory_space<vmem>>, vector<8x512xf32>
    tpu.vector_store %arg6[%c128, %c0_39], %84 {strides = array<i32>} : memref<216x512xf32, #tpu.memory_space<vmem>>, vector<8x512xf32>,
    %c503_i32 = arith.constant 503 : i32
    %86 = tpu.dynamic_rotate %4 by %c503_i32 dim 1 : vector<8x512xf32>, i32 -> vector<8x512xf32>
    %c17 = arith.constant 17 : index
    %c0_40 = arith.constant 0 : index
    %87 = vector.load %arg4[%c17, %c0_40] : memref<27x512xf32, #tpu.memory_space<vmem>>, vector<1x512xf32>
    %88 = vector.broadcast %87 : vector<1x512xf32> to vector<8x512xf32>
    %89 = arith.mulf %86, %88 : vector<8x512xf32>
    %c136 = arith.constant 136 : index
    %c0_41 = arith.constant 0 : index
    %90 = vector.load %arg6[%c136, %c0_41] : memref<216x512xf32, #tpu.memory_space<vmem>>, vector<8x512xf32>
    tpu.vector_store %arg6[%c136, %c0_41], %89 {strides = array<i32>} : memref<216x512xf32, #tpu.memory_space<vmem>>, vector<8x512xf32>,
    %c457_i32 = arith.constant 457 : i32
    %91 = tpu.dynamic_rotate %4 by %c457_i32 dim 1 : vector<8x512xf32>, i32 -> vector<8x512xf32>
    %c18 = arith.constant 18 : index
    %c0_42 = arith.constant 0 : index
    %92 = vector.load %arg4[%c18, %c0_42] : memref<27x512xf32, #tpu.memory_space<vmem>>, vector<1x512xf32>
    %93 = vector.broadcast %92 : vector<1x512xf32> to vector<8x512xf32>
    %94 = arith.mulf %91, %93 : vector<8x512xf32>
    %c144 = arith.constant 144 : index
    %c0_43 = arith.constant 0 : index
    %95 = vector.load %arg6[%c144, %c0_43] : memref<216x512xf32, #tpu.memory_space<vmem>>, vector<8x512xf32>
    tpu.vector_store %arg6[%c144, %c0_43], %94 {strides = array<i32>} : memref<216x512xf32, #tpu.memory_space<vmem>>, vector<8x512xf32>,
    %c456_i32 = arith.constant 456 : i32
    %96 = tpu.dynamic_rotate %4 by %c456_i32 dim 1 : vector<8x512xf32>, i32 -> vector<8x512xf32>
    %c19 = arith.constant 19 : index
    %c0_44 = arith.constant 0 : index
    %97 = vector.load %arg4[%c19, %c0_44] : memref<27x512xf32, #tpu.memory_space<vmem>>, vector<1x512xf32>
    %98 = vector.broadcast %97 : vector<1x512xf32> to vector<8x512xf32>
    %99 = arith.mulf %96, %98 : vector<8x512xf32>
    %c152 = arith.constant 152 : index
    %c0_45 = arith.constant 0 : index
    %100 = vector.load %arg6[%c152, %c0_45] : memref<216x512xf32, #tpu.memory_space<vmem>>, vector<8x512xf32>
    tpu.vector_store %arg6[%c152, %c0_45], %99 {strides = array<i32>} : memref<216x512xf32, #tpu.memory_space<vmem>>, vector<8x512xf32>,
    %c455_i32 = arith.constant 455 : i32
    %101 = tpu.dynamic_rotate %4 by %c455_i32 dim 1 : vector<8x512xf32>, i32 -> vector<8x512xf32>
    %c20 = arith.constant 20 : index
    %c0_46 = arith.constant 0 : index
    %102 = vector.load %arg4[%c20, %c0_46] : memref<27x512xf32, #tpu.memory_space<vmem>>, vector<1x512xf32>
    %103 = vector.broadcast %102 : vector<1x512xf32> to vector<8x512xf32>
    %104 = arith.mulf %101, %103 : vector<8x512xf32>
    %c160 = arith.constant 160 : index
    %c0_47 = arith.constant 0 : index
    %105 = vector.load %arg6[%c160, %c0_47] : memref<216x512xf32, #tpu.memory_space<vmem>>, vector<8x512xf32>
    tpu.vector_store %arg6[%c160, %c0_47], %104 {strides = array<i32>} : memref<216x512xf32, #tpu.memory_space<vmem>>, vector<8x512xf32>,
    %c449_i32 = arith.constant 449 : i32
    %106 = tpu.dynamic_rotate %4 by %c449_i32 dim 1 : vector<8x512xf32>, i32 -> vector<8x512xf32>
    %c21 = arith.constant 21 : index
    %c0_48 = arith.constant 0 : index
    %107 = vector.load %arg4[%c21, %c0_48] : memref<27x512xf32, #tpu.memory_space<vmem>>, vector<1x512xf32>
    %108 = vector.broadcast %107 : vector<1x512xf32> to vector<8x512xf32>
    %109 = arith.mulf %106, %108 : vector<8x512xf32>
    %c168 = arith.constant 168 : index
    %c0_49 = arith.constant 0 : index
    %110 = vector.load %arg6[%c168, %c0_49] : memref<216x512xf32, #tpu.memory_space<vmem>>, vector<8x512xf32>
    tpu.vector_store %arg6[%c168, %c0_49], %109 {strides = array<i32>} : memref<216x512xf32, #tpu.memory_space<vmem>>, vector<8x512xf32>,
    %c448_i32 = arith.constant 448 : i32
    %111 = tpu.dynamic_rotate %4 by %c448_i32 dim 1 : vector<8x512xf32>, i32 -> vector<8x512xf32>
    %c22 = arith.constant 22 : index
    %c0_50 = arith.constant 0 : index
    %112 = vector.load %arg4[%c22, %c0_50] : memref<27x512xf32, #tpu.memory_space<vmem>>, vector<1x512xf32>
    %113 = vector.broadcast %112 : vector<1x512xf32> to vector<8x512xf32>
    %114 = arith.mulf %111, %113 : vector<8x512xf32>
    %c176 = arith.constant 176 : index
    %c0_51 = arith.constant 0 : index
    %115 = vector.load %arg6[%c176, %c0_51] : memref<216x512xf32, #tpu.memory_space<vmem>>, vector<8x512xf32>
    tpu.vector_store %arg6[%c176, %c0_51], %114 {strides = array<i32>} : memref<216x512xf32, #tpu.memory_space<vmem>>, vector<8x512xf32>,
    %c447_i32 = arith.constant 447 : i32
    %116 = tpu.dynamic_rotate %4 by %c447_i32 dim 1 : vector<8x512xf32>, i32 -> vector<8x512xf32>
    %c23 = arith.constant 23 : index
    %c0_52 = arith.constant 0 : index
    %117 = vector.load %arg4[%c23, %c0_52] : memref<27x512xf32, #tpu.memory_space<vmem>>, vector<1x512xf32>
    %118 = vector.broadcast %117 : vector<1x512xf32> to vector<8x512xf32>
    %119 = arith.mulf %116, %118 : vector<8x512xf32>
    %c184 = arith.constant 184 : index
    %c0_53 = arith.constant 0 : index
    %120 = vector.load %arg6[%c184, %c0_53] : memref<216x512xf32, #tpu.memory_space<vmem>>, vector<8x512xf32>
    tpu.vector_store %arg6[%c184, %c0_53], %119 {strides = array<i32>} : memref<216x512xf32, #tpu.memory_space<vmem>>, vector<8x512xf32>,
    %c441_i32 = arith.constant 441 : i32
    %121 = tpu.dynamic_rotate %4 by %c441_i32 dim 1 : vector<8x512xf32>, i32 -> vector<8x512xf32>
    %c24_54 = arith.constant 24 : index
    %c0_55 = arith.constant 0 : index
    %122 = vector.load %arg4[%c24_54, %c0_55] : memref<27x512xf32, #tpu.memory_space<vmem>>, vector<1x512xf32>
    %123 = vector.broadcast %122 : vector<1x512xf32> to vector<8x512xf32>
    %124 = arith.mulf %121, %123 : vector<8x512xf32>
    %c192 = arith.constant 192 : index
    %c0_56 = arith.constant 0 : index
    %125 = vector.load %arg6[%c192, %c0_56] : memref<216x512xf32, #tpu.memory_space<vmem>>, vector<8x512xf32>
    tpu.vector_store %arg6[%c192, %c0_56], %124 {strides = array<i32>} : memref<216x512xf32, #tpu.memory_space<vmem>>, vector<8x512xf32>,
    %c440_i32 = arith.constant 440 : i32
    %126 = tpu.dynamic_rotate %4 by %c440_i32 dim 1 : vector<8x512xf32>, i32 -> vector<8x512xf32>
    %c25 = arith.constant 25 : index
    %c0_57 = arith.constant 0 : index
    %127 = vector.load %arg4[%c25, %c0_57] : memref<27x512xf32, #tpu.memory_space<vmem>>, vector<1x512xf32>
    %128 = vector.broadcast %127 : vector<1x512xf32> to vector<8x512xf32>
    %129 = arith.mulf %126, %128 : vector<8x512xf32>
    %c200 = arith.constant 200 : index
    %c0_58 = arith.constant 0 : index
    %130 = vector.load %arg6[%c200, %c0_58] : memref<216x512xf32, #tpu.memory_space<vmem>>, vector<8x512xf32>
    tpu.vector_store %arg6[%c200, %c0_58], %129 {strides = array<i32>} : memref<216x512xf32, #tpu.memory_space<vmem>>, vector<8x512xf32>,
    %c439_i32 = arith.constant 439 : i32
    %131 = tpu.dynamic_rotate %4 by %c439_i32 dim 1 : vector<8x512xf32>, i32 -> vector<8x512xf32>
    %c26 = arith.constant 26 : index
    %c0_59 = arith.constant 0 : index
    %132 = vector.load %arg4[%c26, %c0_59] : memref<27x512xf32, #tpu.memory_space<vmem>>, vector<1x512xf32>
    %133 = vector.broadcast %132 : vector<1x512xf32> to vector<8x512xf32>
    %134 = arith.mulf %131, %133 : vector<8x512xf32>
    %c208 = arith.constant 208 : index
    %c0_60 = arith.constant 0 : index
    %135 = vector.load %arg6[%c208, %c0_60] : memref<216x512xf32, #tpu.memory_space<vmem>>, vector<8x512xf32>
    tpu.vector_store %arg6[%c208, %c0_60], %134 {strides = array<i32>} : memref<216x512xf32, #tpu.memory_space<vmem>>, vector<8x512xf32>,
    %c0_61 = arith.constant 0 : index
    %c0_62 = arith.constant 0 : index
    %136 = vector.load %arg2[%c0_61, %c0_62] : memref<8x216xf32, #tpu.memory_space<vmem>>, vector<8x216xf32>
    %c0_63 = arith.constant 0 : index
    %c0_64 = arith.constant 0 : index
    %137 = vector.load %arg6[%c0_63, %c0_64] : memref<216x512xf32, #tpu.memory_space<vmem>>, vector<216x512xf32>
    %cst = arith.constant dense<0.000000e+00> : vector<8x512xf32>
    %138 = tpu.matmul %136, %137, %cst {dimension_numbers = #tpu.dot_dimension_numbers<[1], [0], [0], [1], [0, 0, 1, 1], [], []>} : vector<8x216xf32>, vector<216x512xf32>, vector<8x512xf32> -> vector<8x512xf32>
    %cst_65 = arith.constant dense<0.000000e+00> : vector<8xf32>
    %139 = vector.multi_reduction <add>, %138, %cst_65 [1] : vector<8x512xf32> to vector<8xf32>
    %140 = vector.shape_cast %139 : vector<8xf32> to vector<8x1xf32>
    %cst_66 = arith.constant 0.001953125 : f32
    %141 = vector.broadcast %cst_66 : f32 to vector<8x1xf32>
    %142 = arith.mulf %140, %141 : vector<8x1xf32>
    %143 = arith.mulf %138, %138 : vector<8x512xf32>
    %cst_67 = arith.constant dense<0.000000e+00> : vector<8xf32>
    %144 = vector.multi_reduction <add>, %143, %cst_67 [1] : vector<8x512xf32> to vector<8xf32>
    %145 = vector.shape_cast %144 : vector<8xf32> to vector<8x1xf32>
    %cst_68 = arith.constant 0.001953125 : f32
    %146 = vector.broadcast %cst_68 : f32 to vector<8x1xf32>
    %147 = arith.mulf %145, %146 : vector<8x1xf32>
    %148 = arith.mulf %142, %142 : vector<8x1xf32>
    %149 = arith.subf %147, %148 : vector<8x1xf32>
    %150 = vector.broadcast %142 : vector<8x1xf32> to vector<8x512xf32>
    %151 = arith.subf %138, %150 : vector<8x512xf32>
    %cst_69 = arith.constant 0.000000e+00 : f32
    %152 = vector.broadcast %cst_69 : f32 to vector<8x1xf32>
    %153 = arith.maximumf %149, %152 : vector<8x1xf32>
    %cst_70 = arith.constant 9.99999974E-6 : f32
    %154 = vector.broadcast %cst_70 : f32 to vector<8x1xf32>
    %155 = arith.addf %153, %154 : vector<8x1xf32>
    %156 = math.rsqrt %155 : vector<8x1xf32>
    %157 = vector.broadcast %156 : vector<8x1xf32> to vector<8x512xf32>
    %158 = arith.mulf %151, %157 : vector<8x512xf32>
    %cst_71 = arith.constant 0.000000e+00 : f32
    %159 = vector.broadcast %cst_71 : f32 to vector<8x512xf32>
    %160 = arith.maximumf %158, %159 : vector<8x512xf32>
    %c73_i32_72 = arith.constant 73 : i32
    %161 = tpu.dynamic_rotate %160 by %c73_i32_72 dim 1 : vector<8x512xf32>, i32 -> vector<8x512xf32>
    %c0_73 = arith.constant 0 : index
    %c0_74 = arith.constant 0 : index
    %162 = vector.load %arg4[%c0_73, %c0_74] : memref<27x512xf32, #tpu.memory_space<vmem>>, vector<1x512xf32>
    %163 = vector.broadcast %162 : vector<1x512xf32> to vector<8x512xf32>
    %164 = arith.mulf %161, %163 : vector<8x512xf32>
    %c0_75 = arith.constant 0 : index
    %c0_76 = arith.constant 0 : index
    %165 = vector.load %arg6[%c0_75, %c0_76] : memref<216x512xf32, #tpu.memory_space<vmem>>, vector<8x512xf32>
    tpu.vector_store %arg6[%c0_75, %c0_76], %164 {strides = array<i32>} : memref<216x512xf32, #tpu.memory_space<vmem>>, vector<8x512xf32>,
    %c72_i32_77 = arith.constant 72 : i32
    %166 = tpu.dynamic_rotate %160 by %c72_i32_77 dim 1 : vector<8x512xf32>, i32 -> vector<8x512xf32>
    %c1_78 = arith.constant 1 : index
    %c0_79 = arith.constant 0 : index
    %167 = vector.load %arg4[%c1_78, %c0_79] : memref<27x512xf32, #tpu.memory_space<vmem>>, vector<1x512xf32>
    %168 = vector.broadcast %167 : vector<1x512xf32> to vector<8x512xf32>
    %169 = arith.mulf %166, %168 : vector<8x512xf32>
    %c8_80 = arith.constant 8 : index
    %c0_81 = arith.constant 0 : index
    %170 = vector.load %arg6[%c8_80, %c0_81] : memref<216x512xf32, #tpu.memory_space<vmem>>, vector<8x512xf32>
    tpu.vector_store %arg6[%c8_80, %c0_81], %169 {strides = array<i32>} : memref<216x512xf32, #tpu.memory_space<vmem>>, vector<8x512xf32>,
    %c71_i32_82 = arith.constant 71 : i32
    %171 = tpu.dynamic_rotate %160 by %c71_i32_82 dim 1 : vector<8x512xf32>, i32 -> vector<8x512xf32>
    %c2_83 = arith.constant 2 : index
    %c0_84 = arith.constant 0 : index
    %172 = vector.load %arg4[%c2_83, %c0_84] : memref<27x512xf32, #tpu.memory_space<vmem>>, vector<1x512xf32>
    %173 = vector.broadcast %172 : vector<1x512xf32> to vector<8x512xf32>
    %174 = arith.mulf %171, %173 : vector<8x512xf32>
    %c16_85 = arith.constant 16 : index
    %c0_86 = arith.constant 0 : index
    %175 = vector.load %arg6[%c16_85, %c0_86] : memref<216x512xf32, #tpu.memory_space<vmem>>, vector<8x512xf32>
    tpu.vector_store %arg6[%c16_85, %c0_86], %174 {strides = array<i32>} : memref<216x512xf32, #tpu.memory_space<vmem>>, vector<8x512xf32>,
    %c65_i32_87 = arith.constant 65 : i32
    %176 = tpu.dynamic_rotate %160 by %c65_i32_87 dim 1 : vector<8x512xf32>, i32 -> vector<8x512xf32>
    %c3_88 = arith.constant 3 : index
    %c0_89 = arith.constant 0 : index
    %177 = vector.load %arg4[%c3_88, %c0_89] : memref<27x512xf32, #tpu.memory_space<vmem>>, vector<1x512xf32>
    %178 = vector.broadcast %177 : vector<1x512xf32> to vector<8x512xf32>
    %179 = arith.mulf %176, %178 : vector<8x512xf32>
    %c24_90 = arith.constant 24 : index
    %c0_91 = arith.constant 0 : index
    %180 = vector.load %arg6[%c24_90, %c0_91] : memref<216x512xf32, #tpu.memory_space<vmem>>, vector<8x512xf32>
    tpu.vector_store %arg6[%c24_90, %c0_91], %179 {strides = array<i32>} : memref<216x512xf32, #tpu.memory_space<vmem>>, vector<8x512xf32>,
    %c64_i32_92 = arith.constant 64 : i32
    %181 = tpu.dynamic_rotate %160 by %c64_i32_92 dim 1 : vector<8x512xf32>, i32 -> vector<8x512xf32>
    %c4_93 = arith.constant 4 : index
    %c0_94 = arith.constant 0 : index
    %182 = vector.load %arg4[%c4_93, %c0_94] : memref<27x512xf32, #tpu.memory_space<vmem>>, vector<1x512xf32>
    %183 = vector.broadcast %182 : vector<1x512xf32> to vector<8x512xf32>
    %184 = arith.mulf %181, %183 : vector<8x512xf32>
    %c32_95 = arith.constant 32 : index
    %c0_96 = arith.constant 0 : index
    %185 = vector.load %arg6[%c32_95, %c0_96] : memref<216x512xf32, #tpu.memory_space<vmem>>, vector<8x512xf32>
    tpu.vector_store %arg6[%c32_95, %c0_96], %184 {strides = array<i32>} : memref<216x512xf32, #tpu.memory_space<vmem>>, vector<8x512xf32>,
    %c63_i32_97 = arith.constant 63 : i32
    %186 = tpu.dynamic_rotate %160 by %c63_i32_97 dim 1 : vector<8x512xf32>, i32 -> vector<8x512xf32>
    %c5_98 = arith.constant 5 : index
    %c0_99 = arith.constant 0 : index
    %187 = vector.load %arg4[%c5_98, %c0_99] : memref<27x512xf32, #tpu.memory_space<vmem>>, vector<1x512xf32>
    %188 = vector.broadcast %187 : vector<1x512xf32> to vector<8x512xf32>
    %189 = arith.mulf %186, %188 : vector<8x512xf32>
    %c40_100 = arith.constant 40 : index
    %c0_101 = arith.constant 0 : index
    %190 = vector.load %arg6[%c40_100, %c0_101] : memref<216x512xf32, #tpu.memory_space<vmem>>, vector<8x512xf32>
    tpu.vector_store %arg6[%c40_100, %c0_101], %189 {strides = array<i32>} : memref<216x512xf32, #tpu.memory_space<vmem>>, vector<8x512xf32>,
    %c57_i32_102 = arith.constant 57 : i32
    %191 = tpu.dynamic_rotate %160 by %c57_i32_102 dim 1 : vector<8x512xf32>, i32 -> vector<8x512xf32>
    %c6_103 = arith.constant 6 : index
    %c0_104 = arith.constant 0 : index
    %192 = vector.load %arg4[%c6_103, %c0_104] : memref<27x512xf32, #tpu.memory_space<vmem>>, vector<1x512xf32>
    %193 = vector.broadcast %192 : vector<1x512xf32> to vector<8x512xf32>
    %194 = arith.mulf %191, %193 : vector<8x512xf32>
    %c48_105 = arith.constant 48 : index
    %c0_106 = arith.constant 0 : index
    %195 = vector.load %arg6[%c48_105, %c0_106] : memref<216x512xf32, #tpu.memory_space<vmem>>, vector<8x512xf32>
    tpu.vector_store %arg6[%c48_105, %c0_106], %194 {strides = array<i32>} : memref<216x512xf32, #tpu.memory_space<vmem>>, vector<8x512xf32>,
    %c56_i32_107 = arith.constant 56 : i32
    %196 = tpu.dynamic_rotate %160 by %c56_i32_107 dim 1 : vector<8x512xf32>, i32 -> vector<8x512xf32>
    %c7_108 = arith.constant 7 : index
    %c0_109 = arith.constant 0 : index
    %197 = vector.load %arg4[%c7_108, %c0_109] : memref<27x512xf32, #tpu.memory_space<vmem>>, vector<1x512xf32>
    %198 = vector.broadcast %197 : vector<1x512xf32> to vector<8x512xf32>
    %199 = arith.mulf %196, %198 : vector<8x512xf32>
    %c56_110 = arith.constant 56 : index
    %c0_111 = arith.constant 0 : index
    %200 = vector.load %arg6[%c56_110, %c0_111] : memref<216x512xf32, #tpu.memory_space<vmem>>, vector<8x512xf32>
    tpu.vector_store %arg6[%c56_110, %c0_111], %199 {strides = array<i32>} : memref<216x512xf32, #tpu.memory_space<vmem>>, vector<8x512xf32>,
    %c55_i32_112 = arith.constant 55 : i32
    %201 = tpu.dynamic_rotate %160 by %c55_i32_112 dim 1 : vector<8x512xf32>, i32 -> vector<8x512xf32>
    %c8_113 = arith.constant 8 : index
    %c0_114 = arith.constant 0 : index
    %202 = vector.load %arg4[%c8_113, %c0_114] : memref<27x512xf32, #tpu.memory_space<vmem>>, vector<1x512xf32>
    %203 = vector.broadcast %202 : vector<1x512xf32> to vector<8x512xf32>
    %204 = arith.mulf %201, %203 : vector<8x512xf32>
    %c64_115 = arith.constant 64 : index
    %c0_116 = arith.constant 0 : index
    %205 = vector.load %arg6[%c64_115, %c0_116] : memref<216x512xf32, #tpu.memory_space<vmem>>, vector<8x512xf32>
    tpu.vector_store %arg6[%c64_115, %c0_116], %204 {strides = array<i32>} : memref<216x512xf32, #tpu.memory_space<vmem>>, vector<8x512xf32>,
    %c9_i32_117 = arith.constant 9 : i32
    %206 = tpu.dynamic_rotate %160 by %c9_i32_117 dim 1 : vector<8x512xf32>, i32 -> vector<8x512xf32>
    %c9_118 = arith.constant 9 : index
    %c0_119 = arith.constant 0 : index
    %207 = vector.load %arg4[%c9_118, %c0_119] : memref<27x512xf32, #tpu.memory_space<vmem>>, vector<1x512xf32>
    %208 = vector.broadcast %207 : vector<1x512xf32> to vector<8x512xf32>
    %209 = arith.mulf %206, %208 : vector<8x512xf32>
    %c72_120 = arith.constant 72 : index
    %c0_121 = arith.constant 0 : index
    %210 = vector.load %arg6[%c72_120, %c0_121] : memref<216x512xf32, #tpu.memory_space<vmem>>, vector<8x512xf32>
    tpu.vector_store %arg6[%c72_120, %c0_121], %209 {strides = array<i32>} : memref<216x512xf32, #tpu.memory_space<vmem>>, vector<8x512xf32>,
    %c8_i32_122 = arith.constant 8 : i32
    %211 = tpu.dynamic_rotate %160 by %c8_i32_122 dim 1 : vector<8x512xf32>, i32 -> vector<8x512xf32>
    %c10_123 = arith.constant 10 : index
    %c0_124 = arith.constant 0 : index
    %212 = vector.load %arg4[%c10_123, %c0_124] : memref<27x512xf32, #tpu.memory_space<vmem>>, vector<1x512xf32>
    %213 = vector.broadcast %212 : vector<1x512xf32> to vector<8x512xf32>
    %214 = arith.mulf %211, %213 : vector<8x512xf32>
    %c80_125 = arith.constant 80 : index
    %c0_126 = arith.constant 0 : index
    %215 = vector.load %arg6[%c80_125, %c0_126] : memref<216x512xf32, #tpu.memory_space<vmem>>, vector<8x512xf32>
    tpu.vector_store %arg6[%c80_125, %c0_126], %214 {strides = array<i32>} : memref<216x512xf32, #tpu.memory_space<vmem>>, vector<8x512xf32>,
    %c7_i32_127 = arith.constant 7 : i32
    %216 = tpu.dynamic_rotate %160 by %c7_i32_127 dim 1 : vector<8x512xf32>, i32 -> vector<8x512xf32>
    %c11_128 = arith.constant 11 : index
    %c0_129 = arith.constant 0 : index
    %217 = vector.load %arg4[%c11_128, %c0_129] : memref<27x512xf32, #tpu.memory_space<vmem>>, vector<1x512xf32>
    %218 = vector.broadcast %217 : vector<1x512xf32> to vector<8x512xf32>
    %219 = arith.mulf %216, %218 : vector<8x512xf32>
    %c88_130 = arith.constant 88 : index
    %c0_131 = arith.constant 0 : index
    %220 = vector.load %arg6[%c88_130, %c0_131] : memref<216x512xf32, #tpu.memory_space<vmem>>, vector<8x512xf32>
    tpu.vector_store %arg6[%c88_130, %c0_131], %219 {strides = array<i32>} : memref<216x512xf32, #tpu.memory_space<vmem>>, vector<8x512xf32>,
    %c1_i32_132 = arith.constant 1 : i32
    %221 = tpu.dynamic_rotate %160 by %c1_i32_132 dim 1 : vector<8x512xf32>, i32 -> vector<8x512xf32>
    %c12_133 = arith.constant 12 : index
    %c0_134 = arith.constant 0 : index
    %222 = vector.load %arg4[%c12_133, %c0_134] : memref<27x512xf32, #tpu.memory_space<vmem>>, vector<1x512xf32>
    %223 = vector.broadcast %222 : vector<1x512xf32> to vector<8x512xf32>
    %224 = arith.mulf %221, %223 : vector<8x512xf32>
    %c96_135 = arith.constant 96 : index
    %c0_136 = arith.constant 0 : index
    %225 = vector.load %arg6[%c96_135, %c0_136] : memref<216x512xf32, #tpu.memory_space<vmem>>, vector<8x512xf32>
    tpu.vector_store %arg6[%c96_135, %c0_136], %224 {strides = array<i32>} : memref<216x512xf32, #tpu.memory_space<vmem>>, vector<8x512xf32>,
    %c104_137 = arith.constant 104 : index
    %c0_138 = arith.constant 0 : index
    %226 = vector.load %arg6[%c104_137, %c0_138] : memref<216x512xf32, #tpu.memory_space<vmem>>, vector<8x512xf32>
    tpu.vector_store %arg6[%c104_137, %c0_138], %160 {strides = array<i32>} : memref<216x512xf32, #tpu.memory_space<vmem>>, vector<8x512xf32>,
    %c511_i32_139 = arith.constant 511 : i32
    %227 = tpu.dynamic_rotate %160 by %c511_i32_139 dim 1 : vector<8x512xf32>, i32 -> vector<8x512xf32>
    %c14_140 = arith.constant 14 : index
    %c0_141 = arith.constant 0 : index
    %228 = vector.load %arg4[%c14_140, %c0_141] : memref<27x512xf32, #tpu.memory_space<vmem>>, vector<1x512xf32>
    %229 = vector.broadcast %228 : vector<1x512xf32> to vector<8x512xf32>
    %230 = arith.mulf %227, %229 : vector<8x512xf32>
    %c112_142 = arith.constant 112 : index
    %c0_143 = arith.constant 0 : index
    %231 = vector.load %arg6[%c112_142, %c0_143] : memref<216x512xf32, #tpu.memory_space<vmem>>, vector<8x512xf32>
    tpu.vector_store %arg6[%c112_142, %c0_143], %230 {strides = array<i32>} : memref<216x512xf32, #tpu.memory_space<vmem>>, vector<8x512xf32>,
    %c505_i32_144 = arith.constant 505 : i32
    %232 = tpu.dynamic_rotate %160 by %c505_i32_144 dim 1 : vector<8x512xf32>, i32 -> vector<8x512xf32>
    %c15_145 = arith.constant 15 : index
    %c0_146 = arith.constant 0 : index
    %233 = vector.load %arg4[%c15_145, %c0_146] : memref<27x512xf32, #tpu.memory_space<vmem>>, vector<1x512xf32>
    %234 = vector.broadcast %233 : vector<1x512xf32> to vector<8x512xf32>
    %235 = arith.mulf %232, %234 : vector<8x512xf32>
    %c120_147 = arith.constant 120 : index
    %c0_148 = arith.constant 0 : index
    %236 = vector.load %arg6[%c120_147, %c0_148] : memref<216x512xf32, #tpu.memory_space<vmem>>, vector<8x512xf32>
    tpu.vector_store %arg6[%c120_147, %c0_148], %235 {strides = array<i32>} : memref<216x512xf32, #tpu.memory_space<vmem>>, vector<8x512xf32>,
    %c504_i32_149 = arith.constant 504 : i32
    %237 = tpu.dynamic_rotate %160 by %c504_i32_149 dim 1 : vector<8x512xf32>, i32 -> vector<8x512xf32>
    %c16_150 = arith.constant 16 : index
    %c0_151 = arith.constant 0 : index
    %238 = vector.load %arg4[%c16_150, %c0_151] : memref<27x512xf32, #tpu.memory_space<vmem>>, vector<1x512xf32>
    %239 = vector.broadcast %238 : vector<1x512xf32> to vector<8x512xf32>
    %240 = arith.mulf %237, %239 : vector<8x512xf32>
    %c128_152 = arith.constant 128 : index
    %c0_153 = arith.constant 0 : index
    %241 = vector.load %arg6[%c128_152, %c0_153] : memref<216x512xf32, #tpu.memory_space<vmem>>, vector<8x512xf32>
    tpu.vector_store %arg6[%c128_152, %c0_153], %240 {strides = array<i32>} : memref<216x512xf32, #tpu.memory_space<vmem>>, vector<8x512xf32>,
    %c503_i32_154 = arith.constant 503 : i32
    %242 = tpu.dynamic_rotate %160 by %c503_i32_154 dim 1 : vector<8x512xf32>, i32 -> vector<8x512xf32>
    %c17_155 = arith.constant 17 : index
    %c0_156 = arith.constant 0 : index
    %243 = vector.load %arg4[%c17_155, %c0_156] : memref<27x512xf32, #tpu.memory_space<vmem>>, vector<1x512xf32>
    %244 = vector.broadcast %243 : vector<1x512xf32> to vector<8x512xf32>
    %245 = arith.mulf %242, %244 : vector<8x512xf32>
    %c136_157 = arith.constant 136 : index
    %c0_158 = arith.constant 0 : index
    %246 = vector.load %arg6[%c136_157, %c0_158] : memref<216x512xf32, #tpu.memory_space<vmem>>, vector<8x512xf32>
    tpu.vector_store %arg6[%c136_157, %c0_158], %245 {strides = array<i32>} : memref<216x512xf32, #tpu.memory_space<vmem>>, vector<8x512xf32>,
    %c457_i32_159 = arith.constant 457 : i32
    %247 = tpu.dynamic_rotate %160 by %c457_i32_159 dim 1 : vector<8x512xf32>, i32 -> vector<8x512xf32>
    %c18_160 = arith.constant 18 : index
    %c0_161 = arith.constant 0 : index
    %248 = vector.load %arg4[%c18_160, %c0_161] : memref<27x512xf32, #tpu.memory_space<vmem>>, vector<1x512xf32>
    %249 = vector.broadcast %248 : vector<1x512xf32> to vector<8x512xf32>
    %250 = arith.mulf %247, %249 : vector<8x512xf32>
    %c144_162 = arith.constant 144 : index
    %c0_163 = arith.constant 0 : index
    %251 = vector.load %arg6[%c144_162, %c0_163] : memref<216x512xf32, #tpu.memory_space<vmem>>, vector<8x512xf32>
    tpu.vector_store %arg6[%c144_162, %c0_163], %250 {strides = array<i32>} : memref<216x512xf32, #tpu.memory_space<vmem>>, vector<8x512xf32>,
    %c456_i32_164 = arith.constant 456 : i32
    %252 = tpu.dynamic_rotate %160 by %c456_i32_164 dim 1 : vector<8x512xf32>, i32 -> vector<8x512xf32>
    %c19_165 = arith.constant 19 : index
    %c0_166 = arith.constant 0 : index
    %253 = vector.load %arg4[%c19_165, %c0_166] : memref<27x512xf32, #tpu.memory_space<vmem>>, vector<1x512xf32>
    %254 = vector.broadcast %253 : vector<1x512xf32> to vector<8x512xf32>
    %255 = arith.mulf %252, %254 : vector<8x512xf32>
    %c152_167 = arith.constant 152 : index
    %c0_168 = arith.constant 0 : index
    %256 = vector.load %arg6[%c152_167, %c0_168] : memref<216x512xf32, #tpu.memory_space<vmem>>, vector<8x512xf32>
    tpu.vector_store %arg6[%c152_167, %c0_168], %255 {strides = array<i32>} : memref<216x512xf32, #tpu.memory_space<vmem>>, vector<8x512xf32>,
    %c455_i32_169 = arith.constant 455 : i32
    %257 = tpu.dynamic_rotate %160 by %c455_i32_169 dim 1 : vector<8x512xf32>, i32 -> vector<8x512xf32>
    %c20_170 = arith.constant 20 : index
    %c0_171 = arith.constant 0 : index
    %258 = vector.load %arg4[%c20_170, %c0_171] : memref<27x512xf32, #tpu.memory_space<vmem>>, vector<1x512xf32>
    %259 = vector.broadcast %258 : vector<1x512xf32> to vector<8x512xf32>
    %260 = arith.mulf %257, %259 : vector<8x512xf32>
    %c160_172 = arith.constant 160 : index
    %c0_173 = arith.constant 0 : index
    %261 = vector.load %arg6[%c160_172, %c0_173] : memref<216x512xf32, #tpu.memory_space<vmem>>, vector<8x512xf32>
    tpu.vector_store %arg6[%c160_172, %c0_173], %260 {strides = array<i32>} : memref<216x512xf32, #tpu.memory_space<vmem>>, vector<8x512xf32>,
    %c449_i32_174 = arith.constant 449 : i32
    %262 = tpu.dynamic_rotate %160 by %c449_i32_174 dim 1 : vector<8x512xf32>, i32 -> vector<8x512xf32>
    %c21_175 = arith.constant 21 : index
    %c0_176 = arith.constant 0 : index
    %263 = vector.load %arg4[%c21_175, %c0_176] : memref<27x512xf32, #tpu.memory_space<vmem>>, vector<1x512xf32>
    %264 = vector.broadcast %263 : vector<1x512xf32> to vector<8x512xf32>
    %265 = arith.mulf %262, %264 : vector<8x512xf32>
    %c168_177 = arith.constant 168 : index
    %c0_178 = arith.constant 0 : index
    %266 = vector.load %arg6[%c168_177, %c0_178] : memref<216x512xf32, #tpu.memory_space<vmem>>, vector<8x512xf32>
    tpu.vector_store %arg6[%c168_177, %c0_178], %265 {strides = array<i32>} : memref<216x512xf32, #tpu.memory_space<vmem>>, vector<8x512xf32>,
    %c448_i32_179 = arith.constant 448 : i32
    %267 = tpu.dynamic_rotate %160 by %c448_i32_179 dim 1 : vector<8x512xf32>, i32 -> vector<8x512xf32>
    %c22_180 = arith.constant 22 : index
    %c0_181 = arith.constant 0 : index
    %268 = vector.load %arg4[%c22_180, %c0_181] : memref<27x512xf32, #tpu.memory_space<vmem>>, vector<1x512xf32>
    %269 = vector.broadcast %268 : vector<1x512xf32> to vector<8x512xf32>
    %270 = arith.mulf %267, %269 : vector<8x512xf32>
    %c176_182 = arith.constant 176 : index
    %c0_183 = arith.constant 0 : index
    %271 = vector.load %arg6[%c176_182, %c0_183] : memref<216x512xf32, #tpu.memory_space<vmem>>, vector<8x512xf32>
    tpu.vector_store %arg6[%c176_182, %c0_183], %270 {strides = array<i32>} : memref<216x512xf32, #tpu.memory_space<vmem>>, vector<8x512xf32>,
    %c447_i32_184 = arith.constant 447 : i32
    %272 = tpu.dynamic_rotate %160 by %c447_i32_184 dim 1 : vector<8x512xf32>, i32 -> vector<8x512xf32>
    %c23_185 = arith.constant 23 : index
    %c0_186 = arith.constant 0 : index
    %273 = vector.load %arg4[%c23_185, %c0_186] : memref<27x512xf32, #tpu.memory_space<vmem>>, vector<1x512xf32>
    %274 = vector.broadcast %273 : vector<1x512xf32> to vector<8x512xf32>
    %275 = arith.mulf %272, %274 : vector<8x512xf32>
    %c184_187 = arith.constant 184 : index
    %c0_188 = arith.constant 0 : index
    %276 = vector.load %arg6[%c184_187, %c0_188] : memref<216x512xf32, #tpu.memory_space<vmem>>, vector<8x512xf32>
    tpu.vector_store %arg6[%c184_187, %c0_188], %275 {strides = array<i32>} : memref<216x512xf32, #tpu.memory_space<vmem>>, vector<8x512xf32>,
    %c441_i32_189 = arith.constant 441 : i32
    %277 = tpu.dynamic_rotate %160 by %c441_i32_189 dim 1 : vector<8x512xf32>, i32 -> vector<8x512xf32>
    %c24_190 = arith.constant 24 : index
    %c0_191 = arith.constant 0 : index
    %278 = vector.load %arg4[%c24_190, %c0_191] : memref<27x512xf32, #tpu.memory_space<vmem>>, vector<1x512xf32>
    %279 = vector.broadcast %278 : vector<1x512xf32> to vector<8x512xf32>
    %280 = arith.mulf %277, %279 : vector<8x512xf32>
    %c192_192 = arith.constant 192 : index
    %c0_193 = arith.constant 0 : index
    %281 = vector.load %arg6[%c192_192, %c0_193] : memref<216x512xf32, #tpu.memory_space<vmem>>, vector<8x512xf32>
    tpu.vector_store %arg6[%c192_192, %c0_193], %280 {strides = array<i32>} : memref<216x512xf32, #tpu.memory_space<vmem>>, vector<8x512xf32>,
    %c440_i32_194 = arith.constant 440 : i32
    %282 = tpu.dynamic_rotate %160 by %c440_i32_194 dim 1 : vector<8x512xf32>, i32 -> vector<8x512xf32>
    %c25_195 = arith.constant 25 : index
    %c0_196 = arith.constant 0 : index
    %283 = vector.load %arg4[%c25_195, %c0_196] : memref<27x512xf32, #tpu.memory_space<vmem>>, vector<1x512xf32>
    %284 = vector.broadcast %283 : vector<1x512xf32> to vector<8x512xf32>
    %285 = arith.mulf %282, %284 : vector<8x512xf32>
    %c200_197 = arith.constant 200 : index
    %c0_198 = arith.constant 0 : index
    %286 = vector.load %arg6[%c200_197, %c0_198] : memref<216x512xf32, #tpu.memory_space<vmem>>, vector<8x512xf32>
    tpu.vector_store %arg6[%c200_197, %c0_198], %285 {strides = array<i32>} : memref<216x512xf32, #tpu.memory_space<vmem>>, vector<8x512xf32>,
    %c439_i32_199 = arith.constant 439 : i32
    %287 = tpu.dynamic_rotate %160 by %c439_i32_199 dim 1 : vector<8x512xf32>, i32 -> vector<8x512xf32>
    %c26_200 = arith.constant 26 : index
    %c0_201 = arith.constant 0 : index
    %288 = vector.load %arg4[%c26_200, %c0_201] : memref<27x512xf32, #tpu.memory_space<vmem>>, vector<1x512xf32>
    %289 = vector.broadcast %288 : vector<1x512xf32> to vector<8x512xf32>
    %290 = arith.mulf %287, %289 : vector<8x512xf32>
    %c208_202 = arith.constant 208 : index
    %c0_203 = arith.constant 0 : index
    %291 = vector.load %arg6[%c208_202, %c0_203] : memref<216x512xf32, #tpu.memory_space<vmem>>, vector<8x512xf32>
    tpu.vector_store %arg6[%c208_202, %c0_203], %290 {strides = array<i32>} : memref<216x512xf32, #tpu.memory_space<vmem>>, vector<8x512xf32>,
    %c0_204 = arith.constant 0 : index
    %c0_205 = arith.constant 0 : index
    %292 = vector.load %arg3[%c0_204, %c0_205] : memref<8x216xf32, #tpu.memory_space<vmem>>, vector<8x216xf32>
    %c0_206 = arith.constant 0 : index
    %c0_207 = arith.constant 0 : index
    %293 = vector.load %arg6[%c0_206, %c0_207] : memref<216x512xf32, #tpu.memory_space<vmem>>, vector<216x512xf32>
    %cst_208 = arith.constant dense<0.000000e+00> : vector<8x512xf32>
    %294 = tpu.matmul %292, %293, %cst_208 {dimension_numbers = #tpu.dot_dimension_numbers<[1], [0], [0], [1], [0, 0, 1, 1], [], []>} : vector<8x216xf32>, vector<216x512xf32>, vector<8x512xf32> -> vector<8x512xf32>
    %cst_209 = arith.constant dense<0.000000e+00> : vector<8xf32>
    %295 = vector.multi_reduction <add>, %294, %cst_209 [1] : vector<8x512xf32> to vector<8xf32>
    %296 = vector.shape_cast %295 : vector<8xf32> to vector<8x1xf32>
    %cst_210 = arith.constant 0.001953125 : f32
    %297 = vector.broadcast %cst_210 : f32 to vector<8x1xf32>
    %298 = arith.mulf %296, %297 : vector<8x1xf32>
    %299 = arith.mulf %294, %294 : vector<8x512xf32>
    %cst_211 = arith.constant dense<0.000000e+00> : vector<8xf32>
    %300 = vector.multi_reduction <add>, %299, %cst_211 [1] : vector<8x512xf32> to vector<8xf32>
    %301 = vector.shape_cast %300 : vector<8xf32> to vector<8x1xf32>
    %cst_212 = arith.constant 0.001953125 : f32
    %302 = vector.broadcast %cst_212 : f32 to vector<8x1xf32>
    %303 = arith.mulf %301, %302 : vector<8x1xf32>
    %304 = arith.mulf %298, %298 : vector<8x1xf32>
    %305 = arith.subf %303, %304 : vector<8x1xf32>
    %306 = vector.broadcast %298 : vector<8x1xf32> to vector<8x512xf32>
    %307 = arith.subf %294, %306 : vector<8x512xf32>
    %cst_213 = arith.constant 0.000000e+00 : f32
    %308 = vector.broadcast %cst_213 : f32 to vector<8x1xf32>
    %309 = arith.maximumf %305, %308 : vector<8x1xf32>
    %cst_214 = arith.constant 9.99999974E-6 : f32
    %310 = vector.broadcast %cst_214 : f32 to vector<8x1xf32>
    %311 = arith.addf %309, %310 : vector<8x1xf32>
    %312 = math.rsqrt %311 : vector<8x1xf32>
    %313 = vector.broadcast %312 : vector<8x1xf32> to vector<8x512xf32>
    %314 = arith.mulf %307, %313 : vector<8x512xf32>
    %315 = arith.addf %4, %314 : vector<8x512xf32>
    %316 = arith.index_cast %1 : i32 to index
    %c0_215 = arith.constant 0 : index
    %c0_216 = arith.constant 0 : index
    %317 = vector.load %arg5[%316, %c0_215, %c0_216] : memref<1x8x512xf32, #tpu.memory_space<vmem>>, vector<1x8x512xf32>
    %318 = vector.shape_cast %317 : vector<1x8x512xf32> to vector<8x512xf32>
    %319 = vector.shape_cast %315 : vector<8x512xf32> to vector<1x8x512xf32>
    tpu.vector_store %arg5[%316, %c0_215, %c0_216], %319 {strides = array<i32>} : memref<1x8x512xf32, #tpu.memory_space<vmem>>, vector<1x8x512xf32>,
    %c1_i32_217 = arith.constant 1 : i32
    return
  }
  func.func @transform_0(%arg0: i32) -> (i32, i32, i32) {
    %c0_i32 = arith.constant 0 : i32
    %c0_i32_0 = arith.constant 0 : i32
    %c0_i32_1 = arith.constant 0 : i32
    return %arg0, %c0_i32, %c0_i32_0 : i32, i32, i32
  }
  func.func @transform_1(%arg0: i32) -> (i32, i32) {
    %c0_i32 = arith.constant 0 : i32
    %c0_i32_0 = arith.constant 0 : i32
    %c0_i32_1 = arith.constant 0 : i32
    return %c0_i32, %c0_i32_0 : i32, i32
  }
  func.func @transform_2(%arg0: i32) -> (i32, i32) {
    %c0_i32 = arith.constant 0 : i32
    %c0_i32_0 = arith.constant 0 : i32
    %c0_i32_1 = arith.constant 0 : i32
    return %c0_i32, %c0_i32_0 : i32, i32
  }
  func.func @transform_3(%arg0: i32) -> (i32, i32) {
    %c0_i32 = arith.constant 0 : i32
    %c0_i32_0 = arith.constant 0 : i32
    %c0_i32_1 = arith.constant 0 : i32
    return %c0_i32, %c0_i32_0 : i32, i32
  }
  func.func @transform_4(%arg0: i32) -> (i32, i32, i32) {
    %c0_i32 = arith.constant 0 : i32
    %c0_i32_0 = arith.constant 0 : i32
    %c0_i32_1 = arith.constant 0 : i32
    return %arg0, %c0_i32, %c0_i32_0 : i32, i32, i32
  }
}

</mosaic_0001>

<bundles_post_ra>
// kernel: tpu_custom_call.1
= control target key start
LH: loop header
LB: loop body
LE: loop exit
PB: predicated region body
PF: predicated region fallthrough
CT: control target
= control target key end

     0   :  { %9 = vsyncpa [#allocation4], 0  ;;  %s5062_s0 = inlined_call_operand.hbm [shape: f32[2,8,512], index: 0, kind: input, shape index: {}]   ;;  %s5063_s1 = inlined_call_operand.hbm [shape: f32[8,216], index: 1, kind: input, shape index: {}]   ;;  %s5064_s2 = inlined_call_operand.hbm [shape: f32[8,216], index: 2, kind: input, shape index: {}]   ;;  %s5065_s3 = inlined_call_operand.hbm [shape: f32[27,512], index: 3, kind: input, shape index: {}]   ;;  %s5066_s4 = inlined_call_operand.hbm [shape: f32[2,8,512], index: 4, kind: output, shape index: {}]  }
   0x1   :  { %11 = vsyncpa [#allocation4 + $0x1], 0 }
   0x2   :  { %12 = vsyncpa [#allocation7], 0 }
   0x3   :  { %13 = vsyncpa [#allocation10], 0 }
   0x4   :  { %14 = vsyncpa [#allocation5], 0 }
   0x5   :  { %16 = vsyncpa [#allocation5 + $0x1], 0  ;;  %s3550_s15 = smov 0   ;;  %s3552_s16 = smov 0  }
   0x6   :  { %s3554_s17 = smov 0   ;;  %s3556_s18 = smov 0  }
   0x7 LB: > { %s3571_s19 = sadd.s32 4294967295, %s3499_s18   ;;  %s2973_s20 = sadd.s32 4294967294, %s3499_s18   ;;  %s3499_s18 = sphi %s3556_s18, %s5181_s18   ;;  %s3495_s17 = sphi %s3554_s17, %s5180_s17   ;;  %s3491_s16 = sphi %s3552_s16, %s5179_s16   ;;  %s3487_s15 = sphi %s3550_s15, %s5178_s15  }
   0x8   : > { %p42_p0 = scmp.ne.s32.totalorder %s3491_s16, %s3487_s15  ;;  %p5067_p1 = scmp.eq.s32.totalorder %s3571_s19, 0 }
   0x9   : > { %p135_p3 = scmp.eq.s32.totalorder %s2973_s20, 1  ;;  %p2974_p5 = scmp.ge.s32.totalorder %s3499_s18, 1 }
   0xa   : > { %p3580_p4 = por %p5067_p1, %p42_p0  ;;  %p142_p7 = scmp.lt.s32.totalorder %s3499_s18, 3 }
   0xb   : > { %p3585_p6 = por %p135_p3, %p42_p0  ;;  %s3501_s24 = smov [#allocation6]  }
   0xc   : > { %s5091_s21 = scalar_select %p3580_p4, 1, 0 }
   0xd   : > { %s5092_s22 = scalar_select %p3585_p6, 1, 0 }
   0xe   : > { %p3590_p8 = pnand %p2974_p5, %p142_p7  ;;  %s155_s25 = sshll.u32 %s3501_s24, 4  ;;  %s156_s25 = int_to_ptr.vmem [resolvable:$true] %s155_s25 }
   0xf   : > { %s3502_s26 = smov [#allocation8]   ;;  %s3503_s29 = smov [#allocation9]  }
  0x10   : > { %s5093_s23 = scalar_select %p3590_p8, 1, 0 }
  0x11   : > { %p3223_p10 = pneg %p3590_p8  ;;  %s166_s27 = sshll.u32 %s3502_s26, 4  ;;  %s3603_s27 = int_to_ptr.vmem [resolvable:$true] %s166_s27 }
  0x12   : > { %s176_s30 = sshll.u32 %s3503_s29, 4  ;;  %s3311_s7 = scalar_lea.hbm %s5063_s1, 256  ;;  %s3605_s30 = int_to_ptr.vmem [resolvable:$true] %s176_s30 }
  0x13   : > { %p3599_p11 = pnand %p3223_p10, %p5067_p1  ;;  %p3312_p12 = scmp.ne.s32.totalorder %s5063_s1, %s3311_s7 }
  0x14   : > { %p3318_p5 = scmp.lt.u32.totalorder %s3311_s7, %s5063_s1 }
  0x15   : > { %p3615_p13 = pneg %p3599_p11 }
  0x17   : > { %p3314_p0 = pnand %p3615_p13, %p3312_p12 }
  0x19   : > { %p3315_p3 = pneg %p3314_p0 }
  0x1b   : > { %p3320_p7 = pnand %p3318_p5, %p3315_p3 }
  0x1d   : > { %3323 = shalt.err (!%p3320_p7)
}
  0x1e   : > { %s3324_s13 = scalar_lea.vmem %s156_s25, 256  ;;  %p3332_p2 = scmp.lt.s32.totalorder %s156_s25, %s156_s25 }
  0x1f   : > { %p3325_p10 = scmp.ne.s32.totalorder %s156_s25, %s3324_s13  ;;  %p3333_p6 = scmp.lt.s32.totalorder %s3324_s13, %s3324_s13 }
  0x21   : > { %p3327_p9 = pnand %p3325_p10, %p3615_p13  ;;  %p3334_p4 = por %p3333_p6, %p3332_p2 }
  0x23   : > { %p3328_p1 = pneg %p3327_p9 }
  0x25   : > { %p3335_p8 = pnand %p3334_p4, %p3328_p1 }
  0x27   : > { %3338 = shalt.err (!%p3335_p8)
}
  0x28   : > { %3226 = dma.hbm_to_vmem [thread:$0]  (!%p3599_p11), %s5063_s1, 256, %s156_s25, [#allocation7]  }
  0x29   : > { %s3339_s29 = scalar_lea.hbm %s5064_s2, 256 }
  0x2a   : > { %p3340_p9 = scmp.ne.s32.totalorder %s5064_s2, %s3339_s29  ;;  %p3346_p1 = scmp.lt.u32.totalorder %s3339_s29, %s5064_s2 }
  0x2c   : > { %p3342_p12 = pnand %p3340_p9, %p3615_p13 }
  0x2e   : > { %p3343_p2 = pneg %p3342_p12 }
  0x30   : > { %p3348_p4 = pnand %p3346_p1, %p3343_p2 }
  0x32   : > { %3351 = shalt.err (!%p3348_p4)
}
  0x33   : > { %s3352_s25 = scalar_lea.vmem %s3603_s27, 256  ;;  %p3360_p3 = scmp.lt.s32.totalorder %s3603_s27, %s3603_s27 }
  0x34   : > { %p3353_p6 = scmp.ne.s32.totalorder %s3603_s27, %s3352_s25  ;;  %p3361_p5 = scmp.lt.s32.totalorder %s3352_s25, %s3352_s25 }
  0x36   : > { %p3355_p8 = pnand %p3353_p6, %p3615_p13  ;;  %p3362_p7 = por %p3361_p5, %p3360_p3 }
  0x38   : > { %p3356_p0 = pneg %p3355_p8 }
  0x3a   : > { %p3363_p10 = pnand %p3362_p7, %p3356_p0 }
  0x3c   : > { %3366 = shalt.err (!%p3363_p10)
}
  0x3d   : > { %3229 = dma.hbm_to_vmem [thread:$0]  (!%p3599_p11), %s5064_s2, 256, %s3603_s27, [#allocation7]  }
  0x3e   : > { %s3367_s14 = scalar_lea.hbm %s5065_s3, 2048 }
  0x3f   : > { %p3368_p9 = scmp.ne.s32.totalorder %s5065_s3, %s3367_s14  ;;  %p3374_p1 = scmp.lt.u32.totalorder %s3367_s14, %s5065_s3 }
  0x41   : > { %p3370_p12 = pnand %p3368_p9, %p3615_p13 }
  0x43   : > { %p3371_p2 = pneg %p3370_p12 }
  0x45   : > { %p3376_p4 = pnand %p3374_p1, %p3371_p2 }
  0x47   : > { %3379 = shalt.err (!%p3376_p4)
}
  0x48   : > { %s3380_s27 = scalar_lea.vmem %s3605_s30, 2048  ;;  %p3388_p3 = scmp.lt.s32.totalorder %s3605_s30, %s3605_s30 }
  0x49   : > { %p3381_p6 = scmp.ne.s32.totalorder %s3605_s30, %s3380_s27  ;;  %p3389_p5 = scmp.lt.s32.totalorder %s3380_s27, %s3380_s27 }
  0x4b   : > { %p3383_p8 = pnand %p3381_p6, %p3615_p13  ;;  %p3390_p7 = por %p3389_p5, %p3388_p3 }
  0x4d   : > { %p3384_p0 = pneg %p3383_p8 }
  0x4f   : > { %p3391_p10 = pnand %p3390_p7, %p3384_p0 }
  0x51   : > { %3394 = shalt.err (!%p3391_p10)
}
  0x52   : > { %s3504_s5 = smov 512   ;;  %s3505_s10 = smov 32  }
  0x53   : > { %3232 = dma.hbm_to_vmem [thread:$0]  (!%p3599_p11), %s5065_s3, 2048, %s3605_s30, [#allocation10], %s3504_s5, %s3504_s5, %s3505_s10  }
  0x54   : > { %s3678_s8 = sadd.s32 1, %s3499_s18   ;;  %s29_s9 = sadd.s32 1, %s3495_s17 }
  0x55   : > { %s26_s25 = ssub.s32 %s3499_s18, %s3678_s8  ;;  %p36_p9 = scmp.ne.s32.totalorder %s3495_s17, %s3491_s16 }
  0x56   : > { %p27_p13 = scmp.eq.s32.totalorder %s26_s25, 0  ;;  %p37_p12 = scmp.eq.s32.totalorder %s3499_s18, 0 }
  0x57   : > { %p3244_p2 = scmp.lt.s32.totalorder %s3499_s18, 2  ;;  %p5096_p4 = scmp.eq.s32.totalorder %s3571_s19, 1 }
  0x58   : > { %s3688_s11 = scalar_select %p27_p13, %s3495_s17, %s29_s9  }
  0x59   : > { %p38_p1 = por %p37_p12, %p36_p9  ;;  %p3692_p6 = por %p5096_p4, %p36_p9 }
  0x5a   : > { %s190_s28 = sand.u32 1, %s3495_s17   ;;  %s2997_s13 = sshll.u32 %s3499_s18, 9 }
  0x5b   : > { %s2979_s30 = sshll.u32 %s190_s28, 5  ;;  %s3701_s24 = scalar_lea.hbm %s5062_s0, %s2997_s13 }
  0x5c   : > { %s194_s26 = scalar_lea.vmem [#allocation3], %s2979_s30  ;;  %p3703_p11 = pnand %p3244_p2, %p38_p1 }
  0x5d   : > { %s202_s29 = sshll.u32 %s194_s26, 4  ;;  %s191_s5 = scalar_lea.sflag [#allocation4], %s190_s28  ;;  %s3707_s29 = int_to_ptr.vmem [resolvable:$true] %s202_s29 }
  0x5e   : > { %s3395_s10 = scalar_lea.hbm %s3701_s24, 512  ;;  %p3397_p0 = pneg %p3703_p11 }
  0x5f   : > { %p3396_p8 = scmp.ne.s32.totalorder %s3701_s24, %s3395_s10  ;;  %s3400_s25 = scalar_lea.hbm %s5062_s0, 1024 }
  0x60   : > { %p3401_p7 = scmp.lt.u32.totalorder %s3701_s24, %s5062_s0  ;;  %p3402_p10 = scmp.lt.u32.totalorder %s3400_s25, %s3395_s10 }
  0x61   : > { %p3398_p3 = pnand %p3397_p0, %p3396_p8  ;;  %p3404_p9 = scmp.lt.u32.totalorder %s3395_s10, %s3701_s24 }
  0x62   : > { %p3403_p13 = por %p3402_p10, %p3401_p7 }
  0x63   : > { %p3399_p5 = pneg %p3398_p3 }
  0x64   : > { %p3405_p12 = por %p3404_p9, %p3403_p13 }
  0x66   : > { %p3406_p2 = pnand %p3405_p12, %p3399_p5 }
  0x68   : > { %3409 = shalt.err (!%p3406_p2)
}
  0x69   : > { %s3410_s28 = scalar_lea.vmem %s3707_s29, 512  ;;  %s3506_s30 = smov [#allocation3]  }
  0x6a   : > { %p3411_p1 = scmp.ne.s32.totalorder %s3707_s29, %s3410_s28  ;;  %s3415_s14 = sshll.u32 %s3506_s30, 4  ;;  %s3416_s14 = int_to_ptr.vmem [resolvable:$false] %s3415_s14 }
  0x6b   : > { %s3417_s20 = scalar_lea.vmem %s3416_s14, 1024  ;;  %p3418_p3 = scmp.lt.s32.totalorder %s3707_s29, %s3416_s14 }
  0x6c   : > { %p3413_p4 = pnand %p3411_p1, %p3397_p0  ;;  %p3419_p7 = scmp.lt.s32.totalorder %s3417_s20, %s3410_s28 }
  0x6e   : > { %p3414_p8 = pneg %p3413_p4  ;;  %p3420_p10 = por %p3419_p7, %p3418_p3 }
  0x70   : > { %p3421_p13 = pnand %p3420_p10, %p3414_p8 }
  0x72   : > { %3424 = shalt.err (!%p3421_p13)
}
  0x73   : > { %3236 = dma.hbm_to_vmem [thread:$0]  (!%p3703_p11), %s3701_s24, 512, %s3707_s29, %s191_s5  }
  0x74   : > { %p5099_p5 = scmp.ne.s32.totalorder %s5093_s23, 0 }
  0x76   : > { %211 = sbr.rel (%p5099_p5) target bundleno = 1467 (0x5bb), region = 36 }
  0x7d   : > { %s3737_s26 = sand.u32 1, %s3491_s16   ;;  %p5100_p0 = scmp.ne.s32.totalorder %s5091_s21, 0 }
  0x7e   : > { %s5070_s10 = sshll.u32 %s3737_s26, 5  ;;  %s214_s6 = scalar_lea.sflag [#allocation4], %s3737_s26 }
  0x7f   : > { %s3743_s7 = scalar_lea.vmem [#allocation3], %s5070_s10 }
  0x80   : > { %3470 = dma.done.wait (%p5100_p0), %s214_s6, 512  }
  0x81   : > { %3472 = vsyncadd (%p5100_p0), %s214_s6, 4294966784  ;;  %p5101_p11 = scmp.eq.s32.totalorder %s3571_s19, 0 }
  0x83   : > { %3474 = dma.done.wait (%p5101_p11), [#allocation7], 512   ;;  %p5102_p9 = pmov %p5101_p11 }
  0x85   : > { %3476 = vsyncadd (%p5102_p9), [#allocation7], 4294966784  ;;  %p5103_p12 = pmov %p5102_p9 }
  0x86   : > { %p5104_p2 = pmov %p5102_p9 }
  0x87   : > { %3478 = dma.done.wait (%p5103_p12), [#allocation10], 2048  }
  0x88   : > { %3480 = vsyncadd (%p5104_p2), [#allocation10], 4294965248  ;;  %v3758_v0 = vld [vmem:[%s3743_s7] sm:$0xff]  ;;  %s3507_s21 = smov 72   ;;  %s3508_s23 = smov 73   ;;  %v3765_v1 = vld [vmem:[%s3743_s7 + $0x8] sm:$0xff]  ;;  %v266_v4 = vlaneseq }
  0x89   : > { %303 = vrot.lane.b32.xlu1 %v3758_v0, %s3507_s21  ;;  %258 = vrot.lane.b32.xlu0 %v3758_v0, %s3508_s23  ;;  %v3772_v2 = vld [vmem:[%s3743_s7 + $0x18] sm:$0xff]  ;;  %v3779_v3 = vld [vmem:[%s3743_s7 + $0x10] sm:$0xff]  ;;  %s3509_s24 = smov 71   ;;  %s3510_s29 = smov 65   ;;  %vm1400_vm4 = vcmask 719872  }
  0x8a   : > { %s3511_s27 = smov 64   ;;  %s3512_s5 = smov 63   ;;  %v276_v5 = vshrl.u32 %v266_v4, 7  ;;  %v3881_v6 = vand.u32 127, %v266_v4 }
  0x8b   : > { %s3513_s25 = smov 57   ;;  %s3514_s9 = smov 56   ;;  %v3887_v7 = vld [vmem:[#allocation9 + $0x42] ss:$8 sm:$0xf] }
  0x8c   : > { %s3515_s13 = smov 55   ;;  %s3516_s28 = smov 9   ;;  %v3889_v8 = vsub.s32 0, %v276_v5  ;;  %v3891_v9 = vsub.s32 1, %v276_v5  ;;  %v3897_v14 = vsub.s32 3, %v276_v5  ;;  %vm311_vm0 = vcmp.lt.s32.totalorder %v3881_v6, 72 }
  0x8d   : > { %305 = vrot.lane.b32.xlu1 %v3765_v1, %s3507_s21  ;;  %260 = vrot.lane.b32.xlu0 %v3765_v1, %s3508_s23  ;;  %s3517_s30 = smov 8   ;;  %s3518_s14 = smov 7   ;;  %v3893_v10 = vld [vmem:[#allocation9] ss:$8 sm:$0xf]  ;;  %vm268_vm1 = vcmp.lt.s32.totalorder %v3881_v6, 73 }
  0x8e   : > { %s3519_s20 = smov 1   ;;  %s5073_s6 = smov 127   ;;  %v3895_v11 = vld [vmem:[#allocation9 + $0x1] ss:$8 sm:$0xf]  ;;  %v282_v16 = vrot.slane %v3893_v10, %v3891_v9  ;;  %v1017_v18 = vrot.slane %v3887_v7, %v3889_v8  ;;  %v1029_v23 = vrot.slane %v3887_v7, %v3897_v14  ;;  %v278_v26 = vrot.slane %v3893_v10, %v3889_v8 }
  0x8f   : > { %s5071_s10 = smov 121   ;;  %v3899_v15 = vld [vmem:[#allocation9 + $0x43] ss:$8 sm:$0xf]  ;;  %v326_v17 = vrot.slane %v3895_v11, %v3891_v9  ;;  %v3931_v30 = vsub.s32 2, %v276_v5  ;;  %v322_v32 = vrot.slane %v3895_v11, %v3889_v8  ;;  %v1021_v37 = vrot.slane %v3887_v7, %v3891_v9 }
  0x90   : > { %v1048_v19 = vrot.slane %v3899_v15, %v3889_v8  ;;  %v1060_v22 = vrot.slane %v3899_v15, %v3897_v14  ;;  %v1052_v36 = vrot.slane %v3899_v15, %v3891_v9  ;;  %v290_v40 = vrot.slane %v3893_v10, %v3897_v14  ;;  %v3983_v60 = vld [vmem:[#allocation9 + $0x2] ss:$8 sm:$0xf]  ;;  %v3985_v61 = vld [vmem:[#allocation9 + $0x44] ss:$8 sm:$0xf] }
  0x91   : > { %309 = vrot.lane.b32.xlu1 %v3772_v2, %s3507_s21  ;;  %264 = vrot.lane.b32.xlu0 %v3772_v2, %s3508_s23  ;;  %v1025_v46 = vrot.slane %v3887_v7, %v3931_v30  ;;  %v286_v47 = vrot.slane %v3893_v10, %v3931_v30  ;;  %v330_v48 = vrot.slane %v3895_v11, %v3931_v30  ;;  %v3991_v10 = vld [vmem:[#allocation9 + $0x3] ss:$8 sm:$0xf]  ;;  %vm355_vm2 = vcmp.lt.s32.totalorder %v3881_v6, 71 }
  0x92   : > { %v334_v51 = vrot.slane %v3895_v11, %v3897_v14  ;;  %v1056_v52 = vrot.slane %v3899_v15, %v3931_v30  ;;  %v3993_v11 = vld [vmem:[#allocation9 + $0x45] ss:$8 sm:$0xf]  ;;  %vm399_vm3 = vcmp.lt.s32.totalorder %v3881_v6, 65  ;;  %vm443_vm5 = vcmp.lt.s32.totalorder %v3881_v6, 64 }
  0x93   : > { %vm487_vm6 = vcmp.lt.s32.totalorder %v3881_v6, 63  ;;  %vm531_vm7 = vcmp.lt.s32.totalorder %v3881_v6, 57  ;;  %vm575_vm8 = vcmp.lt.s32.totalorder %v3881_v6, 56  ;;  %vm619_vm9 = vcmp.lt.s32.totalorder %v3881_v6, 55 }
  0x94   : > { %vm663_vm10 = vcmp.lt.s32.totalorder %v3881_v6, 9  ;;  %vm707_vm11 = vcmp.lt.s32.totalorder %v3881_v6, 8  ;;  %vm751_vm12 = vcmp.lt.s32.totalorder %v3881_v6, 7  ;;  %vm5082_vm13 = vcmp.lt.s32.totalorder %v3881_v6, 1 }
  0x95   : > { %307 = vrot.lane.b32.xlu1 %v3779_v3, %s3507_s21  ;;  %262 = vrot.lane.b32.xlu0 %v3779_v3, %s3508_s23  ;;  %vm843_vm14 = vcmp.lt.s32.totalorder %v3881_v6, 127  ;;  %vm5083_vm15 = vcmp.lt.s32.totalorder %v3881_v6, 121 }
  0x99   : > { %349 = vrot.lane.b32.xlu1 %v3765_v1, %s3509_s24  ;;  %347 = vrot.lane.b32.xlu0 %v3758_v0, %s3509_s24 }
  0x9d   : > { %393 = vrot.lane.b32.xlu1 %v3765_v1, %s3510_s29  ;;  %391 = vrot.lane.b32.xlu0 %v3758_v0, %s3510_s29 }
  0xa1   : > { %397 = vrot.lane.b32.xlu1 %v3772_v2, %s3510_s29  ;;  %353 = vrot.lane.b32.xlu0 %v3772_v2, %s3509_s24 }
  0xa5   : > { %395 = vrot.lane.b32.xlu1 %v3779_v3, %s3510_s29  ;;  %351 = vrot.lane.b32.xlu0 %v3779_v3, %s3509_s24 }
  0xa9   : > { %437 = vrot.lane.b32.xlu1 %v3765_v1, %s3511_s27  ;;  %435 = vrot.lane.b32.xlu0 %v3758_v0, %s3511_s27 }
  0xad   : > { %481 = vrot.lane.b32.xlu1 %v3765_v1, %s3512_s5  ;;  %479 = vrot.lane.b32.xlu0 %v3758_v0, %s3512_s5 }
  0xb1   : > { %485 = vrot.lane.b32.xlu1 %v3772_v2, %s3512_s5  ;;  %441 = vrot.lane.b32.xlu0 %v3772_v2, %s3511_s27 }
  0xb5   : > { %483 = vrot.lane.b32.xlu1 %v3779_v3, %s3512_s5  ;;  %439 = vrot.lane.b32.xlu0 %v3779_v3, %s3511_s27 }
  0xb9   : > { %525 = vrot.lane.b32.xlu1 %v3765_v1, %s3513_s25  ;;  %523 = vrot.lane.b32.xlu0 %v3758_v0, %s3513_s25 }
  0xbd   : > { %569 = vrot.lane.b32.xlu1 %v3765_v1, %s3514_s9  ;;  %567 = vrot.lane.b32.xlu0 %v3758_v0, %s3514_s9 }
  0xc1   : > { %573 = vrot.lane.b32.xlu1 %v3772_v2, %s3514_s9  ;;  %529 = vrot.lane.b32.xlu0 %v3772_v2, %s3513_s25 }
  0xc5   : > { %571 = vrot.lane.b32.xlu1 %v3779_v3, %s3514_s9  ;;  %527 = vrot.lane.b32.xlu0 %v3779_v3, %s3513_s25 }
  0xc9   : > { %613 = vrot.lane.b32.xlu1 %v3765_v1, %s3515_s13  ;;  %611 = vrot.lane.b32.xlu0 %v3758_v0, %s3515_s13 }
  0xcd   : > { %657 = vrot.lane.b32.xlu1 %v3765_v1, %s3516_s28  ;;  %655 = vrot.lane.b32.xlu0 %v3758_v0, %s3516_s28 }
  0xd1   : > { %661 = vrot.lane.b32.xlu1 %v3772_v2, %s3516_s28  ;;  %617 = vrot.lane.b32.xlu0 %v3772_v2, %s3515_s13 }
  0xd5   : > { %659 = vrot.lane.b32.xlu1 %v3779_v3, %s3516_s28  ;;  %615 = vrot.lane.b32.xlu0 %v3779_v3, %s3515_s13 }
  0xd9   : > { %701 = vrot.lane.b32.xlu1 %v3765_v1, %s3517_s30  ;;  %699 = vrot.lane.b32.xlu0 %v3758_v0, %s3517_s30 }
  0xdd   : > { %745 = vrot.lane.b32.xlu1 %v3765_v1, %s3518_s14  ;;  %743 = vrot.lane.b32.xlu0 %v3758_v0, %s3518_s14 }
  0xe1   : > { %749 = vrot.lane.b32.xlu1 %v3772_v2, %s3518_s14  ;;  %705 = vrot.lane.b32.xlu0 %v3772_v2, %s3517_s30 }
  0xe5   : > { %747 = vrot.lane.b32.xlu1 %v3779_v3, %s3518_s14  ;;  %703 = vrot.lane.b32.xlu0 %v3779_v3, %s3517_s30 }
  0xe9   : > { %789 = vrot.lane.b32.xlu1 %v3765_v1, %s3519_s20  ;;  %787 = vrot.lane.b32.xlu0 %v3758_v0, %s3519_s20 }
  0xed   : > { %791 = vrot.lane.b32.xlu1 %v3779_v3, %s3519_s20  ;;  %793 = vrot.lane.b32.xlu0 %v3772_v2, %s3519_s20 }
  0xf1   : > { %839 = vrot.lane.b32.xlu1 %v3779_v3, %s5073_s6  ;;  %837 = vrot.lane.b32.xlu0 %v3765_v1, %s5073_s6 }
  0xf5   : > { %883 = vrot.lane.b32.xlu1 %v3779_v3, %s5071_s10  ;;  %881 = vrot.lane.b32.xlu0 %v3765_v1, %s5071_s10 }
  0xf9   : > { %879 = vrot.lane.b32.xlu1 %v3758_v0, %s5071_s10  ;;  %835 = vrot.lane.b32.xlu0 %v3758_v0, %s5073_s6 }
  0xfb   : > { %v304_v12 = vpop.permute.xlu1 %303  ;;  %v259_v13 = vpop.permute.xlu0 %258 }
  0xfd   : > { %885 = vrot.lane.b32.xlu1 %v3772_v2, %s5071_s10  ;;  %841 = vrot.lane.b32.xlu0 %v3772_v2, %s5073_s6  ;;  %s3522_s10 = smov 120   ;;  %s3523_s6 = smov 119  }
  0xff   : > { %v306_v20 = vpop.permute.xlu1 %305  ;;  %v261_v21 = vpop.permute.xlu0 %260 }
 0x100   : > { %v271_v24 = vsel %vm268_vm1, %v259_v13, %v261_v21  ;;  %v314_v25 = vsel %vm311_vm0, %v304_v12, %v306_v20 }
 0x101   : > { %927 = vrot.lane.b32.xlu1 %v3779_v3, %s3522_s10  ;;  %925 = vrot.lane.b32.xlu0 %v3765_v1, %s3522_s10  ;;  %v296_v27 = vmul.f32 %v282_v16, %v271_v24  ;;  %v340_v28 = vmul.f32 %v326_v17, %v314_v25  ;;  %v3929_v29 = vmul.f32 %v1017_v18, %v271_v24 }
 0x102   : > { %v3933_v31 = vmul.f32 %v1048_v19, %v314_v25  ;;  %v370_v18 = vrot.slane %v3983_v60, %v3891_v9  ;;  %v1079_v19 = vrot.slane %v3985_v61, %v3889_v8 }
 0x103   : > { %v310_v33 = vpop.permute.xlu1 %309  ;;  %v265_v34 = vpop.permute.xlu0 %264  ;;  %v2999_v35 = vpack.c.bf16 %v340_v28, %v296_v27  ;;  %v410_v28 = vrot.slane %v3991_v10, %v3889_v8 }
 0x104   : > { %v315_v38 = vsel %vm311_vm0, %v310_v33, %v304_v12  ;;  %v272_v39 = vsel %vm268_vm1, %v265_v34, %v259_v13 }
 0x105   : > { %v3949_v42 = vmul.f32 %v1060_v22, %v315_v38  ;;  %v3951_v43 = vmul.f32 %v1029_v23, %v272_v39  ;;  %971 = vrot.lane.b32.xlu1 %v3779_v3, %s3523_s6  ;;  %969 = vrot.lane.b32.xlu0 %v3765_v1, %s3523_s6  ;;  %v295_v44 = vmul.f32 %v278_v26, %v272_v39 }
 0x106   : > { %3000 = vmatprep.subr.bf16.mxu0 %v2999_v35  ;;  %v339_v45 = vmul.f32 %v322_v32, %v315_v38  ;;  %v414_v22 = vrot.slane %v3991_v10, %v3891_v9  ;;  %v1110_v23 = vrot.slane %v3993_v11, %v3889_v8  ;;  %v1091_v35 = vrot.slane %v3985_v61, %v3897_v14 }
 0x107   : > { %v308_v49 = vpop.permute.xlu1 %307  ;;  %v263_v50 = vpop.permute.xlu0 %262 }
 0x108   : > { %v313_v54 = vsel %vm311_vm0, %v306_v20, %v308_v49  ;;  %v270_v55 = vsel %vm268_vm1, %v261_v21, %v263_v50  ;;  %v3001_v56 = vpack.c.bf16 %v339_v45, %v295_v44  ;;  %v269_v57 = vsel %vm268_vm1, %v263_v50, %v265_v34 }
 0x109   : > { %v3975_v58 = vmul.f32 %v1052_v36, %v313_v54  ;;  %v3977_v59 = vmul.f32 %v1021_v37, %v270_v55  ;;  %967 = vrot.lane.b32.xlu1 %v3758_v0, %s3523_s6  ;;  %923 = vrot.lane.b32.xlu0 %v3758_v0, %s3522_s10  ;;  %v298_v62 = vmul.f32 %v290_v40, %v269_v57 }
 0x10a   : > { %3002 = vmatpush1.bf16.msra.mxu0 %v3001_v56  ;;  %v312_v63 = vsel %vm311_vm0, %v308_v49, %v310_v33  ;;  %v3989_v4 = vmul.f32 %v1025_v46, %v269_v57  ;;  %v297_v5 = vmul.f32 %v286_v47, %v270_v55  ;;  %v341_v7 = vmul.f32 %v330_v48, %v313_v54 }
 0x10b   : > { %v350_v12 = vpop.permute.xlu1 %349  ;;  %v348_v13 = vpop.permute.xlu0 %347  ;;  %v342_v15 = vmul.f32 %v334_v51, %v312_v63  ;;  %v3996_v16 = vmul.f32 %v1056_v52, %v312_v63  ;;  %v1122_v33 = vrot.slane %v3993_v11, %v3897_v14  ;;  %v366_v34 = vrot.slane %v3983_v60, %v3889_v8  ;;  %v1291_v63 = vld [vmem:[#allocation6 + $0x8] sm:$0xff] }
 0x10c   : > { %v3053_v20 = vpack.c.bf16 %v341_v7, %v297_v5  ;;  %v358_v24 = vsel %vm355_vm2, %v348_v13, %v350_v12  ;;  %v418_v40 = vrot.slane %v3991_v10, %v3931_v30  ;;  %v422_v47 = vrot.slane %v3991_v10, %v3897_v14  ;;  %2988 = vmatprep.mubr.msk.f32.mxu0 %vm1400_vm4, %v1291_v63 }
 0x10d   : > { %973 = vrot.lane.b32.xlu1 %v3772_v2, %s3523_s6  ;;  %929 = vrot.lane.b32.xlu0 %v3772_v2, %s3522_s10  ;;  %v3051_v21 = vpack.c.bf16 %v342_v15, %v298_v62  ;;  %v384_v36 = vmul.f32 %v370_v18, %v358_v24  ;;  %v4027_v37 = vmul.f32 %v1079_v19, %v358_v24 }
 0x10e   : > { %v1114_v48 = vrot.slane %v3993_v11, %v3891_v9  ;;  %v1118_v52 = vrot.slane %v3993_v11, %v3931_v30  ;;  %v374_v54 = vrot.slane %v3983_v60, %v3931_v30  ;;  %v378_v5 = vrot.slane %v3983_v60, %v3897_v14  ;;  %2989 = vmatprep.mubr.msk.f32.mxu1 %vm1400_vm4, %v1291_v63 }
 0x10f   : > { %3052 = vmatprep.subr.bf16.mxu1 %v3051_v21  ;;  %v394_v26 = vpop.permute.xlu1 %393  ;;  %v392_v27 = vpop.permute.xlu0 %391  ;;  %v1083_v7 = vrot.slane %v3985_v61, %v3891_v9  ;;  %v1087_v10 = vrot.slane %v3985_v61, %v3931_v30  ;;  %v4069_v21 = vld [vmem:[#allocation9 + $0x4] ss:$8 sm:$0xf] }
 0x110   : > { %3054 = vmatpush1.bf16.msra.mxu1 %v3053_v20  ;;  %v402_v32 = vsel %vm399_vm3, %v392_v27, %v394_v26 }
 0x111   : > { %v428_v38 = vmul.f32 %v414_v22, %v402_v32  ;;  %v4029_v39 = vmul.f32 %v1110_v23, %v402_v32 }
 0x113   : > { %v398_v44 = vpop.permute.xlu1 %397  ;;  %v354_v45 = vpop.permute.xlu0 %353  ;;  %v3003_v46 = vpack.c.bf16 %v428_v38, %v384_v36  ;;  %v1167_v36 = vld [vmem:[#allocation9 + $0x47] ss:$8 sm:$0xf]  ;;  %v458_v38 = vrot.slane %v4069_v21, %v3891_v9 }
 0x114   : > { %v403_v50 = vsel %vm399_vm3, %v398_v44, %v392_v27  ;;  %v359_v51 = vsel %vm355_vm2, %v354_v45, %v348_v13 }
 0x115   : > { %v427_v55 = vmul.f32 %v410_v28, %v403_v50  ;;  %v4047_v56 = vmul.f32 %v1122_v33, %v403_v50  ;;  %v383_v57 = vmul.f32 %v366_v34, %v359_v51  ;;  %v4049_v62 = vmul.f32 %v1091_v35, %v359_v51  ;;  %3004 = vmatprep.subr.bf16.mxu0 %v3003_v46  ;;  %v4075_v28 = vld [vmem:[#allocation9 + $0x46] ss:$8 sm:$0xf]  ;;  %v493_v35 = vld [vmem:[#allocation9 + $0x5] ss:$8 sm:$0xf] }
 0x116   : > { %v1172_v50 = vrot.slane %v1167_v36, %v3889_v8  ;;  %v1229_v51 = vld [vmem:[#allocation9 + $0x61] ss:$8 sm:$0xf] }
 0x117   : > { %v396_v11 = vpop.permute.xlu1 %395  ;;  %v352_v13 = vpop.permute.xlu0 %351  ;;  %v3005_v15 = vpack.c.bf16 %v427_v55, %v383_v57  ;;  %v498_v57 = vrot.slane %v493_v35, %v3889_v8 }
 0x118   : > { %v400_v60 = vsel %vm399_vm3, %v396_v11, %v398_v44  ;;  %v401_v19 = vsel %vm399_vm3, %v394_v26, %v396_v11  ;;  %v356_v61 = vsel %vm355_vm2, %v352_v13, %v354_v45  ;;  %v357_v20 = vsel %vm355_vm2, %v350_v12, %v352_v13 }
 0x119   : > { %v429_v22 = vmul.f32 %v418_v40, %v401_v19  ;;  %v430_v23 = vmul.f32 %v422_v47, %v400_v60  ;;  %v4071_v24 = vmul.f32 %v1114_v48, %v401_v19  ;;  %v4073_v27 = vmul.f32 %v1118_v52, %v400_v60  ;;  %3006 = vmatpush1.bf16.msra.mxu0 %v3005_v15 }
 0x11a   : > { %v385_v32 = vmul.f32 %v374_v54, %v357_v20  ;;  %v386_v33 = vmul.f32 %v378_v5, %v356_v61  ;;  %v4077_v26 = vmul.f32 %v1083_v7, %v357_v20  ;;  %v4079_v34 = vmul.f32 %v1087_v10, %v356_v61 }
 0x11b   : > { %v438_v12 = vpop.permute.xlu1 %437  ;;  %v436_v40 = vpop.permute.xlu0 %435  ;;  %v1141_v44 = vrot.slane %v4075_v28, %v3889_v8  ;;  %v502_v48 = vrot.slane %v493_v35, %v3891_v9  ;;  %v1184_v5 = vrot.slane %v1167_v36, %v3897_v14  ;;  %v454_v7 = vrot.slane %v4069_v21, %v3889_v8 }
 0x11c   : > { %v3055_v45 = vpack.c.bf16 %v430_v23, %v386_v33  ;;  %v3057_v46 = vpack.c.bf16 %v429_v22, %v385_v32  ;;  %v446_v52 = vsel %vm443_vm5, %v436_v40, %v438_v12  ;;  %v1153_v10 = vrot.slane %v4075_v28, %v3897_v14 }
 0x11d   : > { %v472_v11 = vmul.f32 %v458_v38, %v446_v52  ;;  %v4103_v13 = vmul.f32 %v1141_v44, %v446_v52  ;;  %v506_v22 = vrot.slane %v493_v35, %v3931_v30  ;;  %v510_v23 = vrot.slane %v493_v35, %v3897_v14 }
 0x11e   : > { %3056 = vmatprep.subr.bf16.mxu1 %v3055_v45  ;;  %v1176_v44 = vrot.slane %v1167_v36, %v3891_v9  ;;  %v1180_v45 = vrot.slane %v1167_v36, %v3931_v30  ;;  %v462_v35 = vrot.slane %v4069_v21, %v3931_v30 }
 0x11f   : > { %3058 = vmatpush1.bf16.msra.mxu1 %v3057_v46  ;;  %v482_v54 = vpop.permute.xlu1 %481  ;;  %v480_v55 = vpop.permute.xlu0 %479 }
 0x120   : > { %v490_v63 = vsel %vm487_vm6, %v480_v55, %v482_v54 }
 0x121   : > { %v516_v15 = vmul.f32 %v502_v48, %v490_v63  ;;  %v4105_v60 = vmul.f32 %v1172_v50, %v490_v63  ;;  %v1149_v63 = vrot.slane %v4075_v28, %v3931_v30 }
 0x123   : > { %v486_v19 = vpop.permute.xlu1 %485  ;;  %v442_v61 = vpop.permute.xlu0 %441  ;;  %v3007_v20 = vpack.c.bf16 %v516_v15, %v472_v11 }
 0x124   : > { %v491_v33 = vsel %vm487_vm6, %v486_v19, %v480_v55  ;;  %v447_v38 = vsel %vm443_vm5, %v442_v61, %v436_v40  ;;  %v466_v55 = vrot.slane %v4069_v21, %v3897_v14  ;;  %v1145_v40 = vrot.slane %v4075_v28, %v3891_v9 }
 0x125   : > { %v515_v46 = vmul.f32 %v498_v57, %v491_v33  ;;  %v4117_v48 = vmul.f32 %v1184_v5, %v491_v33  ;;  %v471_v50 = vmul.f32 %v454_v7, %v447_v38  ;;  %v4119_v52 = vmul.f32 %v1153_v10, %v447_v38  ;;  %3008 = vmatprep.subr.bf16.mxu0 %v3007_v20  ;;  %v4139_v20 = vld [vmem:[#allocation9 + $0x6] ss:$8 sm:$0xf] }
 0x127   : > { %v484_v36 = vpop.permute.xlu1 %483  ;;  %v440_v57 = vpop.permute.xlu0 %439  ;;  %v3009_v5 = vpack.c.bf16 %v515_v46, %v471_v50  ;;  %v4145_v50 = vld [vmem:[#allocation9 + $0x60] ss:$8 sm:$0xf] }
 0x128   : > { %v488_v10 = vsel %vm487_vm6, %v484_v36, %v486_v19  ;;  %v489_v11 = vsel %vm487_vm6, %v482_v54, %v484_v36  ;;  %v444_v21 = vsel %vm443_vm5, %v440_v57, %v442_v61  ;;  %v445_v15 = vsel %vm443_vm5, %v438_v12, %v440_v57  ;;  %v581_v61 = vld [vmem:[#allocation9 + $0x7] ss:$8 sm:$0xf] }
 0x129   : > { %v517_v28 = vmul.f32 %v506_v22, %v489_v11  ;;  %v518_v33 = vmul.f32 %v510_v23, %v488_v10  ;;  %v4141_v38 = vmul.f32 %v1176_v44, %v489_v11  ;;  %v4143_v46 = vmul.f32 %v1180_v45, %v488_v10  ;;  %3010 = vmatpush1.bf16.msra.mxu0 %v3009_v5 }
 0x12a   : > { %v473_v19 = vmul.f32 %v462_v35, %v445_v15  ;;  %v474_v7 = vmul.f32 %v466_v55, %v444_v21  ;;  %v4147_v54 = vmul.f32 %v1145_v40, %v445_v15  ;;  %v4149_v36 = vmul.f32 %v1149_v63, %v444_v21 }
 0x12b   : > { %v526_v12 = vpop.permute.xlu1 %525  ;;  %v546_v22 = vrot.slane %v4139_v20, %v3891_v9  ;;  %v524_v23 = vpop.permute.xlu0 %523  ;;  %v1203_v44 = vrot.slane %v4145_v50, %v3889_v8  ;;  %v590_v55 = vrot.slane %v581_v61, %v3891_v9  ;;  %v1234_v40 = vrot.slane %v1229_v51, %v3889_v8 }
 0x12c   : > { %v3059_v45 = vpack.c.bf16 %v518_v33, %v474_v7  ;;  %v3061_v57 = vpack.c.bf16 %v517_v28, %v473_v19  ;;  %v534_v5 = vsel %vm531_vm7, %v524_v23, %v526_v12  ;;  %v586_v11 = vrot.slane %v581_v61, %v3889_v8 }
 0x12d   : > { %v1246_v15 = vrot.slane %v1229_v51, %v3897_v14  ;;  %v542_v28 = vrot.slane %v4139_v20, %v3889_v8  ;;  %v1215_v33 = vrot.slane %v4145_v50, %v3897_v14  ;;  %v560_v19 = vmul.f32 %v546_v22, %v534_v5 }
 0x12e   : > { %3060 = vmatprep.subr.bf16.mxu1 %v3059_v45  ;;  %v4173_v63 = vmul.f32 %v1203_v44, %v534_v5  ;;  %v594_v35 = vrot.slane %v581_v61, %v3931_v30  ;;  %v598_v49 = vrot.slane %v581_v61, %v3897_v14  ;;  %v1238_v44 = vrot.slane %v1229_v51, %v3891_v9 }
 0x12f   : > { %3062 = vmatpush1.bf16.msra.mxu1 %v3061_v57  ;;  %v570_v10 = vpop.permute.xlu1 %569  ;;  %v568_v7 = vpop.permute.xlu0 %567  ;;  %v550_v61 = vrot.slane %v4139_v20, %v3931_v30 }
 0x130   : > { %v578_v21 = vsel %vm575_vm8, %v568_v7, %v570_v10 }
 0x131   : > { %v604_v45 = vmul.f32 %v590_v55, %v578_v21  ;;  %v4175_v57 = vmul.f32 %v1234_v40, %v578_v21  ;;  %v1242_v55 = vrot.slane %v1229_v51, %v3931_v30 }
 0x133   : > { %v574_v32 = vpop.permute.xlu1 %573  ;;  %v530_v18 = vpop.permute.xlu0 %529  ;;  %v3011_v25 = vpack.c.bf16 %v604_v45, %v560_v19  ;;  %v1211_v45 = vrot.slane %v4145_v50, %v3931_v30 }
 0x134   : > { %v579_v47 = vsel %vm575_vm8, %v574_v32, %v568_v7  ;;  %v535_v22 = vsel %vm531_vm7, %v530_v18, %v524_v23  ;;  %v554_v7 = vrot.slane %v4139_v20, %v3897_v14  ;;  %v1207_v23 = vrot.slane %v4145_v50, %v3891_v9 }
 0x135   : > { %v603_v40 = vmul.f32 %v586_v11, %v579_v47  ;;  %v4187_v5 = vmul.f32 %v1246_v15, %v579_v47  ;;  %v559_v21 = vmul.f32 %v542_v28, %v535_v22  ;;  %v4189_v19 = vmul.f32 %v1215_v33, %v535_v22  ;;  %3012 = vmatprep.subr.bf16.mxu0 %v3011_v25 }
 0x137   : > { %5105 = vst [vmem:[#allocation16_spill] sm:$0xff] %v4187_v5  ;;  %5106 = vst [vmem:[#allocation17_spill] sm:$0xff] %v4189_v19  ;;  %v572_v51 = vpop.permute.xlu1 %571  ;;  %v528_v11 = vpop.permute.xlu0 %527  ;;  %v3013_v47 = vpack.c.bf16 %v603_v40, %v559_v21 }
 0x138   : > { %v576_v25 = vsel %vm575_vm8, %v572_v51, %v574_v32  ;;  %v577_v28 = vsel %vm575_vm8, %v570_v10, %v572_v51  ;;  %v532_v20 = vsel %vm531_vm7, %v528_v11, %v530_v18  ;;  %v533_v33 = vsel %vm531_vm7, %v526_v12, %v528_v11  ;;  %v625_v10 = vld [vmem:[#allocation9 + $0x20] ss:$8 sm:$0xf]  ;;  %v669_v51 = vld [vmem:[#allocation9 + $0x21] ss:$8 sm:$0xf] }
 0x139   : > { %v605_v22 = vmul.f32 %v594_v35, %v577_v28  ;;  %v606_v50 = vmul.f32 %v598_v49, %v576_v25  ;;  %v4209_v53 = vmul.f32 %v1238_v44, %v577_v28  ;;  %v4211_v40 = vmul.f32 %v1242_v55, %v576_v25  ;;  %3014 = vmatpush1.bf16.msra.mxu0 %v3013_v47 }
 0x13a   : > { %v561_v21 = vmul.f32 %v550_v61, %v533_v33  ;;  %v562_v15 = vmul.f32 %v554_v7, %v532_v20  ;;  %v4213_v41 = vmul.f32 %v1207_v23, %v533_v33  ;;  %v4215_v32 = vmul.f32 %v1211_v45, %v532_v20 }
 0x13b   : > { %5107 = vst [vmem:[#allocation18_spill] sm:$0xff] %v4211_v40  ;;  %v614_v17 = vpop.permute.xlu1 %613  ;;  %v612_v18 = vpop.permute.xlu0 %611  ;;  %v634_v44 = vrot.slane %v625_v10, %v3891_v9  ;;  %v678_v55 = vrot.slane %v669_v51, %v3891_v9  ;;  %v674_v25 = vrot.slane %v669_v51, %v3889_v8  ;;  %v630_v28 = vrot.slane %v625_v10, %v3889_v8  ;;  %v801_v40 = vld [vmem:[#allocation9 + $0x24] ss:$8 sm:$0xf] }
 0x13c   : > { %5108 = vst [vmem:[#allocation19_spill] sm:$0xff] %v4215_v32  ;;  %v3063_v12 = vpack.c.bf16 %v606_v50, %v562_v15  ;;  %v3065_v35 = vpack.c.bf16 %v605_v22, %v561_v21  ;;  %v4227_v7 = vsel %vm619_vm9, %v612_v18, %v614_v17  ;;  %v642_v61 = vrot.slane %v625_v10, %v3897_v14 }
 0x13d   : > { %5109 = vst [vmem:[#allocation20_spill] sm:$0xff] %v4227_v7  ;;  %v648_v47 = vmul.f32 %v634_v44, %v4227_v7 }
 0x13e   : > { %3064 = vmatprep.subr.bf16.mxu1 %v3063_v12  ;;  %v682_v12 = vrot.slane %v669_v51, %v3931_v30 }
 0x13f   : > { %3066 = vmatpush1.bf16.msra.mxu1 %v3065_v35  ;;  %v658_v23 = vpop.permute.xlu1 %657  ;;  %v656_v45 = vpop.permute.xlu0 %655  ;;  %v686_v35 = vrot.slane %v669_v51, %v3897_v14 }
 0x140   : > { %v666_v11 = vsel %vm663_vm10, %v656_v45, %v658_v23 }
 0x141   : > { %v692_v15 = vmul.f32 %v678_v55, %v666_v11  ;;  %v638_v11 = vrot.slane %v625_v10, %v3931_v30 }
 0x143   : > { %v662_v20 = vpop.permute.xlu1 %661  ;;  %v618_v33 = vpop.permute.xlu0 %617  ;;  %v3015_v22 = vpack.c.bf16 %v692_v15, %v648_v47 }
 0x144   : > { %v667_v50 = vsel %vm663_vm10, %v662_v20, %v656_v45  ;;  %v4238_v21 = vsel %vm619_vm9, %v618_v33, %v612_v18 }
 0x145   : > { %5110 = vst [vmem:[#allocation21_spill] sm:$0xff] %v4238_v21  ;;  %v691_v44 = vmul.f32 %v674_v25, %v667_v50  ;;  %v647_v55 = vmul.f32 %v630_v28, %v4238_v21  ;;  %3016 = vmatprep.subr.bf16.mxu0 %v3015_v22 }
 0x147   : > { %v660_v47 = vpop.permute.xlu1 %659  ;;  %v616_v15 = vpop.permute.xlu0 %615  ;;  %v3017_v49 = vpack.c.bf16 %v691_v44, %v647_v55  ;;  %v713_v44 = vld [vmem:[#allocation9 + $0x22] ss:$8 sm:$0xf] }
 0x148   : > { %v664_v45 = vsel %vm663_vm10, %v660_v47, %v662_v20  ;;  %v665_v18 = vsel %vm663_vm10, %v658_v23, %v660_v47  ;;  %v4251_v51 = vsel %vm619_vm9, %v616_v15, %v618_v33  ;;  %v4255_v25 = vsel %vm619_vm9, %v614_v17, %v616_v15  ;;  %v757_v20 = vld [vmem:[#allocation9 + $0x23] ss:$8 sm:$0xf] }
 0x149   : > { %5111 = vst [vmem:[#allocation22_spill] sm:$0xff] %v4251_v51  ;;  %v693_v28 = vmul.f32 %v682_v12, %v665_v18  ;;  %v694_v22 = vmul.f32 %v686_v35, %v664_v45  ;;  %v649_v10 = vmul.f32 %v638_v11, %v4255_v25  ;;  %v650_v50 = vmul.f32 %v642_v61, %v4251_v51 }
 0x14a   : > { %3018 = vmatpush1.bf16.msra.mxu0 %v3017_v49  ;;  %v722_v32 = vrot.slane %v713_v44, %v3891_v9  ;;  %v766_v17 = vrot.slane %v757_v20, %v3891_v9  ;;  %v762_v45 = vrot.slane %v757_v20, %v3889_v8  ;;  %v718_v18 = vrot.slane %v713_v44, %v3889_v8 }
 0x14b   : > { %v702_v55 = vpop.permute.xlu1 %701  ;;  %v700_v23 = vpop.permute.xlu0 %699  ;;  %v3067_v47 = vpack.c.bf16 %v694_v22, %v650_v50  ;;  %v3069_v33 = vpack.c.bf16 %v693_v28, %v649_v10  ;;  %v774_v51 = vrot.slane %v757_v20, %v3897_v14 }
 0x14c   : > { %v710_v12 = vsel %vm707_vm11, %v700_v23, %v702_v55 }
 0x14d   : > { %3068 = vmatprep.subr.bf16.mxu1 %v3067_v47  ;;  %v736_v11 = vmul.f32 %v722_v32, %v710_v12  ;;  %v726_v12 = vrot.slane %v713_v44, %v3931_v30 }
 0x14e   : > { %3070 = vmatpush1.bf16.msra.mxu1 %v3069_v33  ;;  %v770_v33 = vrot.slane %v757_v20, %v3931_v30 }
 0x14f   : > { %v746_v49 = vpop.permute.xlu1 %745  ;;  %v744_v61 = vpop.permute.xlu0 %743 }
 0x150   : > { %v754_v35 = vsel %vm751_vm12, %v744_v61, %v746_v49 }
 0x151   : > { %v780_v15 = vmul.f32 %v766_v17, %v754_v35  ;;  %v730_v35 = vrot.slane %v713_v44, %v3897_v14 }
 0x153   : > { %v750_v28 = vpop.permute.xlu1 %749  ;;  %v706_v22 = vpop.permute.xlu0 %705  ;;  %v3019_v10 = vpack.c.bf16 %v780_v15, %v736_v11 }
 0x154   : > { %v755_v50 = vsel %vm751_vm12, %v750_v28, %v744_v61  ;;  %v711_v47 = vsel %vm707_vm11, %v706_v22, %v700_v23  ;;  %v810_v61 = vrot.slane %v801_v40, %v3891_v9 }
 0x155   : > { %v779_v32 = vmul.f32 %v762_v45, %v755_v50  ;;  %v735_v17 = vmul.f32 %v718_v18, %v711_v47  ;;  %3020 = vmatprep.subr.bf16.mxu0 %v3019_v10 }
 0x157   : > { %v748_v21 = vpop.permute.xlu1 %747  ;;  %v704_v11 = vpop.permute.xlu0 %703  ;;  %v3021_v15 = vpack.c.bf16 %v779_v32, %v735_v17 }
 0x158   : > { %v752_v23 = vsel %vm751_vm12, %v748_v21, %v750_v28  ;;  %v753_v20 = vsel %vm751_vm12, %v746_v49, %v748_v21  ;;  %v708_v45 = vsel %vm707_vm11, %v704_v11, %v706_v22  ;;  %v709_v18 = vsel %vm707_vm11, %v702_v55, %v704_v11 }
 0x159   : > { %v781_v44 = vmul.f32 %v770_v33, %v753_v20  ;;  %v782_v10 = vmul.f32 %v774_v51, %v752_v23  ;;  %v737_v50 = vmul.f32 %v726_v12, %v709_v18  ;;  %v738_v47 = vmul.f32 %v730_v35, %v708_v45  ;;  %3022 = vmatpush1.bf16.msra.mxu0 %v3021_v15  ;;  %v849_v23 = vld [vmem:[#allocation9 + $0x26] ss:$8 sm:$0xf] }
 0x15a   : > { %v814_v21 = vrot.slane %v801_v40, %v3931_v30  ;;  %v806_v49 = vrot.slane %v801_v40, %v3889_v8  ;;  %v818_v55 = vrot.slane %v801_v40, %v3897_v14  ;;  %v893_v40 = vld [vmem:[#allocation9 + $0x27] ss:$8 sm:$0xf]  ;;  %v858_v18 = vrot.slane %v849_v23, %v3891_v9 }
 0x15b   : > { %v790_v32 = vpop.permute.xlu1 %789  ;;  %v788_v17 = vpop.permute.xlu0 %787  ;;  %v3071_v7 = vpack.c.bf16 %v782_v10, %v738_v47  ;;  %v3073_v19 = vpack.c.bf16 %v781_v44, %v737_v50  ;;  %v902_v44 = vrot.slane %v893_v40, %v3891_v9 }
 0x15c   : > { %v798_v28 = vsel %vm5082_vm13, %v788_v17, %v790_v32 }
 0x15d   : > { %v824_v5 = vmul.f32 %v810_v61, %v798_v28  ;;  %3072 = vmatprep.subr.bf16.mxu1 %v3071_v7 }
 0x15e   : > { %3074 = vmatpush1.bf16.msra.mxu1 %v3073_v19 }
 0x15f   : > { %v792_v51 = vpop.permute.xlu1 %791  ;;  %v794_v22 = vpop.permute.xlu0 %793  ;;  %v3023_v33 = vpack.c.bf16 %v3765_v1, %v824_v5 }
 0x160   : > { %v797_v12 = vsel %vm5082_vm13, %v790_v32, %v792_v51  ;;  %v796_v35 = vsel %vm5082_vm13, %v792_v51, %v794_v22  ;;  %v799_v7 = vsel %vm5082_vm13, %v794_v22, %v788_v17  ;;  %v854_v17 = vrot.slane %v849_v23, %v3889_v8 }
 0x161   : > { %v825_v11 = vmul.f32 %v814_v21, %v797_v12  ;;  %v823_v15 = vmul.f32 %v806_v49, %v799_v7  ;;  %v826_v61 = vmul.f32 %v818_v55, %v796_v35  ;;  %3024 = vmatprep.subr.bf16.mxu0 %v3023_v33  ;;  %v906_v22 = vrot.slane %v893_v40, %v3931_v30 }
 0x162   : > { %v910_v33 = vrot.slane %v893_v40, %v3897_v14  ;;  %v862_v7 = vrot.slane %v849_v23, %v3931_v30  ;;  %vm931_vm13 = vcmp.lt.s32.totalorder %v3881_v6, 120 }
 0x163   : > { %v840_v19 = vpop.permute.xlu1 %839  ;;  %v838_v20 = vpop.permute.xlu0 %837  ;;  %v3025_v1 = vpack.c.bf16 %v3758_v0, %v823_v15  ;;  %v3075_v5 = vpack.c.bf16 %v3772_v2, %v826_v61  ;;  %v3077_v45 = vpack.c.bf16 %v3779_v3, %v825_v11  ;;  %v898_v3 = vrot.slane %v893_v40, %v3889_v8 }
 0x164   : > { %v845_v10 = vsel %vm843_vm14, %v838_v20, %v840_v19  ;;  %v866_v11 = vrot.slane %v849_v23, %v3897_v14  ;;  %v937_v23 = vld [vmem:[#allocation9 + $0x40] ss:$8 sm:$0xf] }
 0x165   : > { %3026 = vmatpush1.bf16.msra.mxu0 %v3025_v1  ;;  %3076 = vmatprep.subr.bf16.mxu1 %v3075_v5  ;;  %v872_v2 = vmul.f32 %v858_v18, %v845_v10 }
 0x166   : > { %3078 = vmatpush1.bf16.msra.mxu1 %v3077_v45 }
 0x167   : > { %v884_v50 = vpop.permute.xlu1 %883  ;;  %v882_v47 = vpop.permute.xlu0 %881 }
 0x168   : > { %v889_v0 = vsel %vm5083_vm15, %v882_v47, %v884_v50 }
 0x169   : > { %v916_v32 = vmul.f32 %v902_v44, %v889_v0  ;;  %v981_v0 = vld [vmem:[#allocation9 + $0x41] ss:$8 sm:$0xf] }
 0x16b   : > { %v880_v28 = vpop.permute.xlu1 %879  ;;  %v836_v21 = vpop.permute.xlu0 %835  ;;  %v3027_v49 = vpack.c.bf16 %v916_v32, %v872_v2 }
 0x16c   : > { %v890_v55 = vsel %vm5083_vm15, %v880_v28, %v882_v47  ;;  %v846_v51 = vsel %vm843_vm14, %v836_v21, %v838_v20 }
 0x16d   : > { %v915_v12 = vmul.f32 %v898_v3, %v890_v55  ;;  %v871_v35 = vmul.f32 %v854_v17, %v846_v51  ;;  %3028 = vmatprep.subr.bf16.mxu0 %v3027_v49  ;;  %v946_v17 = vrot.slane %v937_v23, %v3891_v9 }
 0x16f   : > { %v886_v15 = vpop.permute.xlu1 %885  ;;  %v842_v61 = vpop.permute.xlu0 %841  ;;  %v3029_v1 = vpack.c.bf16 %v915_v12, %v871_v35  ;;  %v942_v12 = vrot.slane %v937_v23, %v3889_v8 }
 0x170   : > { %v888_v5 = vsel %vm5083_vm15, %v884_v50, %v886_v15  ;;  %v891_v20 = vsel %vm5083_vm15, %v886_v15, %v880_v28  ;;  %v844_v45 = vsel %vm843_vm14, %v840_v19, %v842_v61  ;;  %v847_v40 = vsel %vm843_vm14, %v842_v61, %v836_v21 }
 0x171   : > { %v917_v18 = vmul.f32 %v906_v22, %v888_v5  ;;  %v918_v44 = vmul.f32 %v910_v33, %v891_v20  ;;  %v873_v10 = vmul.f32 %v862_v7, %v844_v45  ;;  %v874_v47 = vmul.f32 %v866_v11, %v847_v40  ;;  %3030 = vmatpush1.bf16.msra.mxu0 %v3029_v1 }
 0x172   : > { %vm975_vm15 = vcmp.lt.s32.totalorder %v3881_v6, 119  ;;  %v990_v19 = vrot.slane %v981_v0, %v3891_v9  ;;  %v986_v33 = vrot.slane %v981_v0, %v3889_v8  ;;  %v994_v1 = vrot.slane %v981_v0, %v3931_v30 }
 0x173   : > { %v928_v2 = vpop.permute.xlu1 %927  ;;  %v926_v50 = vpop.permute.xlu0 %925  ;;  %v3079_v32 = vpack.c.bf16 %v918_v44, %v874_v47  ;;  %v3081_v3 = vpack.c.bf16 %v917_v18, %v873_v10  ;;  %v998_v5 = vrot.slane %v981_v0, %v3897_v14  ;;  %v950_v40 = vrot.slane %v937_v23, %v3931_v30 }
 0x174   : > { %v933_v28 = vsel %vm931_vm13, %v926_v50, %v928_v2  ;;  %v954_v18 = vrot.slane %v937_v23, %v3897_v14  ;;  %v5112_v23 = vpack.c.bf16 %v3975_v58, %v3977_v59  ;;  %v5116_v58 = vpack.c.bf16 %v4029_v39, %v4027_v37 }
 0x175   : > { %3080 = vmatprep.subr.bf16.mxu1 %v3079_v32  ;;  %v960_v51 = vmul.f32 %v946_v17, %v933_v28  ;;  %v5117_v59 = vpack.c.bf16 %v4141_v38, %v4147_v54  ;;  %v5121_v37 = vpack.c.bf16 %v4209_v53, %v4213_v41  ;;  %v5122_v39 = vpack.c.bf16 %v4073_v27, %v4079_v34  ;;  %v5126_v53 = vld [vmem:[#allocation16_spill] sm:$0xff]  ;;  %v5127_v27 = vld [vmem:[#allocation17_spill] sm:$0xff] }
 0x176   : > { %3082 = vmatpush1.bf16.msra.mxu1 %v3081_v3  ;;  %v5125_v41 = vpack.c.bf16 %v4143_v46, %v4149_v36  ;;  %v5128_v34 = vpack.c.bf16 %v5126_v53, %v5127_v27  ;;  %v5130_v38 = vld [vmem:[#allocation21_spill] sm:$0xff]  ;;  %v5134_v46 = vld [vmem:[#allocation22_spill] sm:$0xff] }
 0x177   : > { %v972_v21 = vpop.permute.xlu1 %971  ;;  %v970_v49 = vpop.permute.xlu0 %969 }
 0x178   : > { %v977_v55 = vsel %vm975_vm15, %v970_v49, %v972_v21 }
 0x179   : > { %v1004_v22 = vmul.f32 %v990_v19, %v977_v55 }
 0x17b   : > { %v968_v35 = vpop.permute.xlu1 %967  ;;  %v924_v7 = vpop.permute.xlu0 %923  ;;  %v3031_v11 = vpack.c.bf16 %v1004_v22, %v960_v51  ;;  %v5113_v51 = vpack.c.bf16 %v3933_v31, %v3929_v29  ;;  %v5115_v22 = vpack.c.bf16 %v3949_v42, %v3951_v43  ;;  %v5118_v29 = vpack.c.bf16 %v3996_v16, %v3989_v4 }
 0x17c   : > { %v978_v15 = vsel %vm975_vm15, %v968_v35, %v970_v49  ;;  %v934_v61 = vsel %vm931_vm13, %v924_v7, %v926_v50  ;;  %v5119_v31 = vpack.c.bf16 %v4047_v56, %v4049_v62  ;;  %v5120_v43 = vpack.c.bf16 %v4105_v60, %v4103_v13  ;;  %v5129_v13 = vld [vmem:[#allocation20_spill] sm:$0xff] }
 0x17d   : > { %v1003_v20 = vmul.f32 %v986_v33, %v978_v15  ;;  %v959_v45 = vmul.f32 %v942_v12, %v934_v61  ;;  %3032 = vmatprep.subr.bf16.mxu0 %v3031_v11  ;;  %v5123_v4 = vpack.c.bf16 %v4117_v48, %v4119_v52  ;;  %v5124_v62 = vpack.c.bf16 %v4175_v57, %v4173_v63  ;;  %v1290_v48 = vld [vmem:[#allocation6] sm:$0xff]  ;;  %v5131_v63 = vld [vmem:[#allocation18_spill] sm:$0xff]  ;;  %v5132_v57 = vld [vmem:[#allocation19_spill] sm:$0xff] }
 0x17f   : > { %v974_v44 = vpop.permute.xlu1 %973  ;;  %v930_v10 = vpop.permute.xlu0 %929  ;;  %v3033_v47 = vpack.c.bf16 %v1003_v20, %v959_v45 }
 0x180   : > { %v976_v32 = vsel %vm975_vm15, %v972_v21, %v974_v44  ;;  %v979_v50 = vsel %vm975_vm15, %v974_v44, %v968_v35  ;;  %v932_v3 = vsel %vm931_vm13, %v928_v2, %v930_v10  ;;  %v935_v0 = vsel %vm931_vm13, %v930_v10, %v924_v7 }
 0x181   : > { %v1005_v17 = vmul.f32 %v994_v1, %v976_v32  ;;  %v1006_v19 = vmul.f32 %v998_v5, %v979_v50  ;;  %v961_v28 = vmul.f32 %v950_v40, %v932_v3  ;;  %v962_v49 = vmul.f32 %v954_v18, %v935_v0  ;;  %3034 = vmatpush1.bf16.msra.mxu0 %v3033_v47 }
 0x182   : > { %3036 = vmatprep.subr.bf16.mxu0 %v5112_v23  ;;  %v5114_v2 = vpack.c.bf16 %v4071_v24, %v4077_v26  ;;  %v1260_v24 = vld [vmem:[#allocation9 + $0x62] ss:$8 sm:$0xf] }
 0x183   : > { %v3083_v55 = vpack.c.bf16 %v1006_v19, %v962_v49  ;;  %v3085_v21 = vpack.c.bf16 %v1005_v17, %v961_v28  ;;  %v1269_v42 = vrot.slane %v1260_v24, %v3891_v9  ;;  %v1265_v16 = vrot.slane %v1260_v24, %v3889_v8 }
 0x184   : > { %v1277_v26 = vrot.slane %v1260_v24, %v3897_v14  ;;  %v1273_v52 = vrot.slane %v1260_v24, %v3931_v30 }
 0x185   : > { %3038 = vmatpush1.bf16.msra.mxu0 %v5113_v51  ;;  %3084 = vmatprep.subr.bf16.mxu1 %v3083_v55  ;;  %v1283_v56 = vmul.f32 %v1269_v42, %v4255_v25  ;;  %v1282_v60 = vmul.f32 %v1265_v16, %v5129_v13  ;;  %v5133_v25 = vpack.c.bf16 %v5131_v63, %v5132_v57  ;;  %v4534_v42 = vld [vmem:[#allocation9] ss:$8 sm:$0xf] }
 0x186   : > { %3040 = vmatprep.subr.bf16.mxu0 %v5114_v2  ;;  %3086 = vmatpush1.bf16.msra.mxu1 %v3085_v21  ;;  %v1285_v54 = vmul.f32 %v1277_v26, %v5130_v38  ;;  %v1284_v36 = vmul.f32 %v1273_v52, %v5134_v46  ;;  %v1596_v38 = vrot.slane %v4534_v42, %v3889_v8 }
 0x187   : > { %3088 = vmatprep.subr.bf16.mxu1 %v5115_v22 }
 0x189   : > { %3042 = vmatpush1.bf16.msra.mxu0 %v5116_v58 }
 0x18a   : > { %3044 = vmatprep.subr.bf16.mxu0 %v5117_v59  ;;  %3090 = vmatpush1.bf16.msra.mxu1 %v5118_v29 }
 0x18b   : > { %3092 = vmatprep.subr.bf16.mxu1 %v5119_v31 }
 0x18d   : > { %3046 = vmatpush1.bf16.msra.mxu0 %v5120_v43  ;;  %v4536_v43 = vld [vmem:[#allocation9 + $0x42] ss:$8 sm:$0xf] }
 0x18e   : > { %3048 = vmatprep.subr.bf16.mxu0 %v5121_v37  ;;  %3094 = vmatpush1.bf16.msra.mxu1 %v5122_v39  ;;  %v1633_v37 = vld [vmem:[#allocation9 + $0x1] ss:$8 sm:$0xf]  ;;  %v2327_v39 = vld [vmem:[#allocation9 + $0x43] ss:$8 sm:$0xf] }
 0x18f   : > { %3096 = vmatprep.subr.bf16.mxu1 %v5123_v4  ;;  %v2332_v53 = vrot.slane %v2327_v39, %v3889_v8  ;;  %v1638_v13 = vrot.slane %v1633_v37, %v3889_v8  ;;  %v1646_v46 = vrot.slane %v1633_v37, %v3931_v30 }
 0x191   : > { %3050 = vmatpush1.bf16.msra.mxu0 %v5124_v62  ;;  %v2302_v62 = vrot.slane %v4536_v43, %v3889_v8 }
 0x192   : > { %1456 = vmatprep.subr.mxu0 %v1283_v56  ;;  %3098 = vmatpush1.bf16.msra.mxu1 %v5125_v41  ;;  %v1600_v56 = vrot.slane %v4534_v42, %v3891_v9  ;;  %v1642_v41 = vrot.slane %v1633_v37, %v3891_v9 }
 0x193   : > { %3100 = vmatprep.subr.bf16.mxu1 %v5128_v34 }
 0x195   : > { %1457 = vmatpush1.msra.mxu0 %v1282_v60  ;;  %v2344_v60 = vrot.slane %v2327_v39, %v3897_v14 }
 0x196   : > { %3102 = vmatpush1.bf16.msra.mxu1 %v5133_v25  ;;  %1469 = vmatmul.mubr.f32.vlgmr.msra.gmra.mrb[0].mxu0 %v1290_v48 }
 0x197   : > { %1527 = vmatprep.subr.mxu1 %v1285_v54  ;;  %v2314_v54 = vrot.slane %v4536_v43, %v3897_v14 }
 0x19a   : > { %1528 = vmatpush1.msra.mxu1 %v1284_v36 }
 0x19b   : > { %1540 = vmatmul.mubr.f32.vlgmr.msra.gmra.mrb[0].mxu1 %v1290_v48 }
 0x269   : > { %v1470_v33 = vpop.f32.mrb[0].mxu0 }
 0x26a   : > { %v1552_v12 = vmul.f32 %v1470_v33, %v1470_v33  ;;  %v1472_v35 = vpop.f32.mrb[1].mxu0 }
 0x26b   : > { %v1546_v7 = vadd.f32 %v1472_v35, %v1470_v33  ;;  %v1553_v11 = vmul.f32 %v1472_v35, %v1472_v35 }
 0x26d   : > { %v1556_v15 = vadd.f32 %v1553_v11, %v1552_v12  ;;  %v2336_v11 = vrot.slane %v2327_v39, %v3891_v9 }
 0x26e   : > { %v1541_v61 = vpop.f32.mrb[0].mxu1 }
 0x26f   : > { %v1554_v1 = vmul.f32 %v1541_v61, %v1541_v61  ;;  %v1543_v5 = vpop.f32.mrb[1].mxu1  ;;  %v1547_v20 = vadd.f32 %v1546_v7, %v1541_v61  ;;  %v1650_v7 = vrot.slane %v1633_v37, %v3897_v14 }
 0x270   : > { %v1555_v45 = vmul.f32 %v1543_v5, %v1543_v5 }
 0x271   : > { %v1548_v40 = vadd.f32 %v1547_v20, %v1543_v5  ;;  %v1557_v18 = vadd.f32 %v1556_v15, %v1554_v1  ;;  %v2340_v1 = vrot.slane %v2327_v39, %v3931_v30  ;;  %v1717_v39 = vld [vmem:[#allocation9 + $0x3] ss:$8 sm:$0xf] }
 0x273   : > { %1549 = vadd.xlane.f32.xlu0 %v1548_v40  ;;  %v1558_v44 = vadd.f32 %v1557_v18, %v1555_v45 }
 0x275   : > { %1559 = vadd.xlane.f32.xlu1 %v1558_v44  ;;  %v1608_v44 = vrot.slane %v4534_v42, %v3897_v14 }
 0x300   : > { %v1550_v10 = vpop.xlane.xlu0 %1549 }
 0x301   : > { %v1551_v47 = vmul.f32 0.001953125, %v1550_v10  ;;  %v2306_v10 = vrot.slane %v4536_v43, %v3891_v9 }
 0x302   : > { %v1560_v32 = vpop.xlane.xlu1 %1559 }
 0x303   : > { %v1561_v50 = vmul.f32 0.001953125, %v1560_v32  ;;  %v1562_v3 = vmul.f32 %v1551_v47, %v1551_v47  ;;  %v1564_v28 = vsub.f32 %v1470_v33, %v1551_v47  ;;  %v1565_v49 = vsub.f32 %v1472_v35, %v1551_v47 }
 0x304   : > { %v1567_v22 = vsub.f32 %v1543_v5, %v1551_v47  ;;  %v1566_v59 = vsub.f32 %v1541_v61, %v1551_v47  ;;  %v1604_v5 = vrot.slane %v4534_v42, %v3931_v30  ;;  %v2310_v47 = vrot.slane %v4536_v43, %v3931_v30 }
 0x305   : > { %v1563_v0 = vsub.f32 %v1561_v50, %v1562_v3 }
 0x307   : > { %v1568_v17 = vmax.f32 %v1563_v0, 0.0 }
 0x309   : > { %v1569_v19 = vadd.f32 1e-05, %v1568_v17 }
 0x30b   : > { %3303 = vrsqrt.f32 %v1569_v19 }
 0x315   : > { %v3304_v23 = vpop.eup %3303 }
 0x316   : > { %v1571_v55 = vmul.f32 %v3304_v23, %v1564_v28  ;;  %v1572_v21 = vmul.f32 %v3304_v23, %v1565_v49  ;;  %v1574_v58 = vmul.f32 %v3304_v23, %v1567_v22  ;;  %v1573_v29 = vmul.f32 %v3304_v23, %v1566_v59  ;;  %v4610_v59 = vld [vmem:[#allocation9 + $0x44] ss:$8 sm:$0xf] }
 0x318   : > { %v4410_v51 = vmax.f32 %v1571_v55, 0.0  ;;  %v4412_v2 = vmax.f32 %v1572_v21, 0.0  ;;  %v4422_v31 = vmax.f32 %v1574_v58, 0.0  ;;  %v4428_v24 = vmax.f32 %v1573_v29, 0.0 }
 0x319   : > { %v4608_v58 = vld [vmem:[#allocation9 + $0x2] ss:$8 sm:$0xf] }
 0x31a   : > { %1581 = vrot.lane.b32.xlu1 %v4412_v2, %s3508_s23  ;;  %1579 = vrot.lane.b32.xlu0 %v4410_v51, %s3508_s23 }
 0x31e   : > { %1623 = vrot.lane.b32.xlu1 %v4412_v2, %s3507_s21  ;;  %1621 = vrot.lane.b32.xlu0 %v4410_v51, %s3507_s21 }
 0x322   : > { %1627 = vrot.lane.b32.xlu1 %v4422_v31, %s3507_s21  ;;  %1585 = vrot.lane.b32.xlu0 %v4422_v31, %s3508_s23 }
 0x326   : > { %1625 = vrot.lane.b32.xlu1 %v4428_v24, %s3507_s21  ;;  %1583 = vrot.lane.b32.xlu0 %v4428_v24, %s3508_s23  ;;  %s5135_s21 = smov 127   ;;  %s5136_s23 = smov 121  }
 0x32a   : > { %1665 = vrot.lane.b32.xlu1 %v4412_v2, %s3509_s24  ;;  %1663 = vrot.lane.b32.xlu0 %v4410_v51, %s3509_s24 }
 0x32e   : > { %1707 = vrot.lane.b32.xlu1 %v4412_v2, %s3510_s29  ;;  %1705 = vrot.lane.b32.xlu0 %v4410_v51, %s3510_s29 }
 0x332   : > { %1711 = vrot.lane.b32.xlu1 %v4422_v31, %s3510_s29  ;;  %1669 = vrot.lane.b32.xlu0 %v4422_v31, %s3509_s24 }
 0x336   : > { %1709 = vrot.lane.b32.xlu1 %v4428_v24, %s3510_s29  ;;  %1667 = vrot.lane.b32.xlu0 %v4428_v24, %s3509_s24  ;;  %s5175_s24 = sshll.u32 %s3737_s26, 5 }
 0x337   : > { %s253_s29 = scalar_lea.vmem [#allocation11], %s5175_s24 }
 0x33a   : > { %1749 = vrot.lane.b32.xlu1 %v4412_v2, %s3511_s27  ;;  %1747 = vrot.lane.b32.xlu0 %v4410_v51, %s3511_s27 }
 0x33e   : > { %1791 = vrot.lane.b32.xlu1 %v4412_v2, %s3512_s5  ;;  %1789 = vrot.lane.b32.xlu0 %v4410_v51, %s3512_s5 }
 0x342   : > { %1795 = vrot.lane.b32.xlu1 %v4422_v31, %s3512_s5  ;;  %1753 = vrot.lane.b32.xlu0 %v4422_v31, %s3511_s27 }
 0x346   : > { %1793 = vrot.lane.b32.xlu1 %v4428_v24, %s3512_s5  ;;  %1751 = vrot.lane.b32.xlu0 %v4428_v24, %s3511_s27  ;;  %s2874_s27 = sshll.u32 %s253_s29, 4  ;;  %s5020_s27 = int_to_ptr.vmem [resolvable:$true] %s2874_s27 }
 0x34a   : > { %1833 = vrot.lane.b32.xlu1 %v4412_v2, %s3513_s25  ;;  %1831 = vrot.lane.b32.xlu0 %v4410_v51, %s3513_s25 }
 0x34e   : > { %1875 = vrot.lane.b32.xlu1 %v4412_v2, %s3514_s9  ;;  %1873 = vrot.lane.b32.xlu0 %v4410_v51, %s3514_s9 }
 0x352   : > { %1879 = vrot.lane.b32.xlu1 %v4422_v31, %s3514_s9  ;;  %1837 = vrot.lane.b32.xlu0 %v4422_v31, %s3513_s25 }
 0x356   : > { %1877 = vrot.lane.b32.xlu1 %v4428_v24, %s3514_s9  ;;  %1835 = vrot.lane.b32.xlu0 %v4428_v24, %s3513_s25  ;;  %s2860_s9 = scalar_lea.sflag [#allocation5], %s3737_s26 }
 0x35a   : > { %1917 = vrot.lane.b32.xlu1 %v4412_v2, %s3515_s13  ;;  %1915 = vrot.lane.b32.xlu0 %v4410_v51, %s3515_s13 }
 0x35e   : > { %1959 = vrot.lane.b32.xlu1 %v4412_v2, %s3516_s28  ;;  %1957 = vrot.lane.b32.xlu0 %v4410_v51, %s3516_s28 }
 0x362   : > { %1963 = vrot.lane.b32.xlu1 %v4422_v31, %s3516_s28  ;;  %1921 = vrot.lane.b32.xlu0 %v4422_v31, %s3515_s13 }
 0x366   : > { %1961 = vrot.lane.b32.xlu1 %v4428_v24, %s3516_s28  ;;  %1919 = vrot.lane.b32.xlu0 %v4428_v24, %s3515_s13  ;;  %s3425_s13 = scalar_lea.vmem %s5020_s27, 512 }
 0x367   : > { %p3426_p1 = scmp.ne.s32.totalorder %s5020_s27, %s3425_s13 }
 0x369   : > { %p3427_p4 = pnand %p3426_p1, %p3692_p6 }
 0x36a   : > { %2001 = vrot.lane.b32.xlu1 %v4412_v2, %s3517_s30  ;;  %1999 = vrot.lane.b32.xlu0 %v4410_v51, %s3517_s30 }
 0x36b   : > { %p3428_p8 = pneg %p3427_p4 }
 0x36e   : > { %2043 = vrot.lane.b32.xlu1 %v4412_v2, %s3518_s14  ;;  %2041 = vrot.lane.b32.xlu0 %v4410_v51, %s3518_s14 }
 0x372   : > { %2047 = vrot.lane.b32.xlu1 %v4422_v31, %s3518_s14  ;;  %2005 = vrot.lane.b32.xlu0 %v4422_v31, %s3517_s30 }
 0x376   : > { %2045 = vrot.lane.b32.xlu1 %v4428_v24, %s3518_s14  ;;  %2003 = vrot.lane.b32.xlu0 %v4428_v24, %s3517_s30 }
 0x37a   : > { %2085 = vrot.lane.b32.xlu1 %v4412_v2, %s3519_s20  ;;  %2083 = vrot.lane.b32.xlu0 %v4410_v51, %s3519_s20 }
 0x37e   : > { %2087 = vrot.lane.b32.xlu1 %v4428_v24, %s3519_s20  ;;  %2089 = vrot.lane.b32.xlu0 %v4422_v31, %s3519_s20 }
 0x382   : > { %2133 = vrot.lane.b32.xlu1 %v4428_v24, %s5135_s21  ;;  %2131 = vrot.lane.b32.xlu0 %v4412_v2, %s5135_s21 }
 0x386   : > { %2175 = vrot.lane.b32.xlu1 %v4428_v24, %s5136_s23  ;;  %2173 = vrot.lane.b32.xlu0 %v4412_v2, %s5136_s23 }
 0x38a   : > { %2171 = vrot.lane.b32.xlu1 %v4410_v51, %s5136_s23  ;;  %2129 = vrot.lane.b32.xlu0 %v4410_v51, %s5135_s21 }
 0x38c   : > { %v1582_v4 = vpop.permute.xlu1 %1581  ;;  %v1580_v16 = vpop.permute.xlu0 %1579 }
 0x38d   : > { %v1589_v26 = vsel %vm268_vm1, %v1580_v16, %v1582_v4 }
 0x38e   : > { %2177 = vrot.lane.b32.xlu1 %v4422_v31, %s5136_s23  ;;  %2135 = vrot.lane.b32.xlu0 %v4422_v31, %s5135_s21  ;;  %v1614_v48 = vmul.f32 %v1600_v56, %v1589_v26  ;;  %v4558_v63 = vmul.f32 %v2302_v62, %v1589_v26 }
 0x390   : > { %v1624_v27 = vpop.permute.xlu1 %1623  ;;  %v1622_v34 = vpop.permute.xlu0 %1621 }
 0x391   : > { %v1631_v52 = vsel %vm311_vm0, %v1622_v34, %v1624_v27 }
 0x392   : > { %v1656_v57 = vmul.f32 %v1642_v41, %v1631_v52  ;;  %v4560_v25 = vmul.f32 %v2332_v53, %v1631_v52  ;;  %2217 = vrot.lane.b32.xlu1 %v4428_v24, %s3522_s10  ;;  %2215 = vrot.lane.b32.xlu0 %v4412_v2, %s3522_s10  ;;  %v1684_v41 = vrot.slane %v4608_v58, %v3891_v9 }
 0x394   : > { %v1628_v33 = vpop.permute.xlu1 %1627  ;;  %v1586_v12 = vpop.permute.xlu0 %1585  ;;  %v3103_v35 = vpack.c.bf16 %v1656_v57, %v1614_v48 }
 0x395   : > { %v1632_v15 = vsel %vm311_vm0, %v1628_v33, %v1622_v34  ;;  %v1590_v61 = vsel %vm268_vm1, %v1586_v12, %v1580_v16  ;;  %v1726_v34 = vrot.slane %v1717_v39, %v3891_v9 }
 0x396   : > { %v1655_v20 = vmul.f32 %v1638_v13, %v1632_v15  ;;  %v4578_v45 = vmul.f32 %v2344_v60, %v1632_v15  ;;  %v1613_v40 = vmul.f32 %v1596_v38, %v1590_v61  ;;  %v4580_v18 = vmul.f32 %v2314_v54, %v1590_v61  ;;  %2259 = vrot.lane.b32.xlu1 %v4428_v24, %s3523_s6 }
 0x397   : > { %2257 = vrot.lane.b32.xlu0 %v4412_v2, %s3523_s6  ;;  %3104 = vmatprep.subr.bf16.mxu0 %v3103_v35  ;;  %v1722_v54 = vrot.slane %v1717_v39, %v3889_v8 }
 0x398   : > { %v3105_v32 = vpack.c.bf16 %v1655_v20, %v1613_v40  ;;  %v1626_v50 = vpop.permute.xlu1 %1625  ;;  %v1584_v3 = vpop.permute.xlu0 %1583  ;;  %v1730_v40 = vrot.slane %v1717_v39, %v3931_v30 }
 0x399   : > { %v1629_v17 = vsel %vm311_vm0, %v1626_v50, %v1628_v33  ;;  %v1630_v19 = vsel %vm311_vm0, %v1624_v27, %v1626_v50  ;;  %v1587_v28 = vsel %vm268_vm1, %v1584_v3, %v1586_v12  ;;  %v1588_v49 = vsel %vm268_vm1, %v1582_v4, %v1584_v3  ;;  %v2387_v4 = vld [vmem:[#allocation9 + $0x45] ss:$8 sm:$0xf] }
 0x39a   : > { %v1657_v23 = vmul.f32 %v1646_v46, %v1630_v19  ;;  %v1658_v55 = vmul.f32 %v1650_v7, %v1629_v17  ;;  %v4602_v21 = vmul.f32 %v2336_v11, %v1630_v19  ;;  %v4604_v22 = vmul.f32 %v2340_v1, %v1629_v17  ;;  %2255 = vrot.lane.b32.xlu1 %v4410_v51, %s3523_s6 }
 0x39b   : > { %v1615_v29 = vmul.f32 %v1604_v5, %v1588_v49  ;;  %v1616_v42 = vmul.f32 %v1608_v44, %v1587_v28  ;;  %v4612_v43 = vmul.f32 %v2306_v10, %v1588_v49  ;;  %v4614_v37 = vmul.f32 %v2310_v47, %v1587_v28  ;;  %2213 = vrot.lane.b32.xlu0 %v4410_v51, %s3522_s10 }
 0x39c   : > { %3106 = vmatpush1.bf16.msra.mxu0 %v3105_v32  ;;  %v1666_v16 = vpop.permute.xlu1 %1665  ;;  %v1664_v56 = vpop.permute.xlu0 %1663  ;;  %v2362_v27 = vrot.slane %v4610_v59, %v3889_v8  ;;  %v2392_v13 = vrot.slane %v2387_v4, %v3889_v8  ;;  %v2404_v46 = vrot.slane %v2387_v4, %v3897_v14  ;;  %v1680_v33 = vrot.slane %v4608_v58, %v3889_v8 }
 0x39d   : > { %v3157_v62 = vpack.c.bf16 %v1657_v23, %v1615_v29  ;;  %v3155_v53 = vpack.c.bf16 %v1658_v55, %v1616_v42  ;;  %v1673_v48 = vsel %vm355_vm2, %v1664_v56, %v1666_v16  ;;  %v2374_v12 = vrot.slane %v4610_v59, %v3897_v14  ;;  %v2568_v42 = vld [vmem:[#allocation8 + $0x8] sm:$0xff] }
 0x39e   : > { %2261 = vrot.lane.b32.xlu1 %v4422_v31, %s3523_s6  ;;  %v1698_v35 = vmul.f32 %v1684_v41, %v1673_v48  ;;  %v4642_v7 = vmul.f32 %v2362_v27, %v1673_v48  ;;  %v1734_v44 = vrot.slane %v1717_v39, %v3897_v14  ;;  %v2396_v32 = vrot.slane %v2387_v4, %v3891_v9 }
 0x39f   : > { %2219 = vrot.lane.b32.xlu0 %v4422_v31, %s3522_s10  ;;  %3156 = vmatprep.subr.bf16.mxu1 %v3155_v53  ;;  %v2400_v50 = vrot.slane %v2387_v4, %v3931_v30  ;;  %v1688_v49 = vrot.slane %v4608_v58, %v3931_v30  ;;  %v1692_v23 = vrot.slane %v4608_v58, %v3897_v14  ;;  %vm5144_vm0 = vcmp.lt.s32.totalorder %v3881_v6, 1  ;;  %s2998_s10 = sshll.u32 %s3571_s19, 9 }
 0x3a0   : > { %3158 = vmatpush1.bf16.msra.mxu1 %v3157_v62  ;;  %v1708_v52 = vpop.permute.xlu1 %1707  ;;  %v1706_v38 = vpop.permute.xlu0 %1705  ;;  %v2366_v55 = vrot.slane %v4610_v59, %v3891_v9  ;;  %v2370_v29 = vrot.slane %v4610_v59, %v3931_v30  ;;  %2990 = vmatprep.mubr.msk.f32.mxu0 %vm1400_vm4, %v2568_v42  ;;  %vm5145_vm1 = vmmov %vm5144_vm0  ;;  %s5018_s19 = scalar_lea.hbm %s5066_s4, %s2998_s10 }
 0x3a1   : > { %v1715_v57 = vsel %vm399_vm3, %v1706_v38, %v1708_v52  ;;  %2991 = vmatprep.mubr.msk.f32.mxu1 %vm1400_vm4, %v2568_v42  ;;  %vm5148_vm4 = vcmp.lt.s32.totalorder %v3881_v6, 121  ;;  %v5155_v6 = vpack.c.bf16 %v4578_v45, %v4580_v18 }
 0x3a2   : > { %v1740_v11 = vmul.f32 %v1726_v34, %v1715_v57  ;;  %v4644_v15 = vmul.f32 %v2392_v13, %v1715_v57 }
 0x3a4   : > { %v1712_v1 = vpop.permute.xlu1 %1711  ;;  %v1670_v5 = vpop.permute.xlu0 %1669  ;;  %v3107_v20 = vpack.c.bf16 %v1740_v11, %v1698_v35  ;;  %v2447_v35 = vld [vmem:[#allocation9 + $0x47] ss:$8 sm:$0xf] }
 0x3a5   : > { %v1716_v10 = vsel %vm399_vm3, %v1712_v1, %v1706_v38  ;;  %v1674_v47 = vsel %vm355_vm2, %v1670_v5, %v1664_v56  ;;  %v4684_v38 = vld [vmem:[#allocation9 + $0x4] ss:$8 sm:$0xf] }
 0x3a6   : > { %v1739_v3 = vmul.f32 %v1722_v54, %v1716_v10  ;;  %v4656_v17 = vmul.f32 %v2404_v46, %v1716_v10  ;;  %v1697_v19 = vmul.f32 %v1680_v33, %v1674_v47  ;;  %v4658_v28 = vmul.f32 %v2374_v12, %v1674_v47  ;;  %3108 = vmatprep.subr.bf16.mxu0 %v3107_v20  ;;  %v4686_v54 = vld [vmem:[#allocation9 + $0x46] ss:$8 sm:$0xf]  ;;  %v1801_v12 = vld [vmem:[#allocation9 + $0x5] ss:$8 sm:$0xf] }
 0x3a7   : > { %v1768_v20 = vrot.slane %v4684_v38, %v3891_v9  ;;  %v1810_v10 = vrot.slane %v1801_v12, %v3891_v9  ;;  %v2452_v47 = vrot.slane %v2447_v35, %v3889_v8  ;;  %v2434_v42 = vrot.slane %v4686_v54, %v3897_v14 }
 0x3a8   : > { %v3109_v39 = vpack.c.bf16 %v1739_v3, %v1697_v19  ;;  %v1710_v4 = vpop.permute.xlu1 %1709  ;;  %v1668_v56 = vpop.permute.xlu0 %1667 }
 0x3a9   : > { %v1713_v58 = vsel %vm399_vm3, %v1710_v4, %v1712_v1  ;;  %v1714_v41 = vsel %vm399_vm3, %v1708_v52, %v1710_v4  ;;  %v1671_v59 = vsel %vm355_vm2, %v1668_v56, %v1670_v5  ;;  %v1672_v53 = vsel %vm355_vm2, %v1666_v16, %v1668_v56  ;;  %v2507_v5 = vld [vmem:[#allocation9 + $0x61] ss:$8 sm:$0xf]  ;;  %vm5146_vm2 = vmmov %vm5144_vm0 }
 0x3aa   : > { %v1741_v27 = vmul.f32 %v1730_v40, %v1714_v41  ;;  %v1742_v34 = vmul.f32 %v1734_v44, %v1713_v58  ;;  %v4680_v13 = vmul.f32 %v2396_v32, %v1714_v41  ;;  %v4682_v48 = vmul.f32 %v2400_v50, %v1713_v58  ;;  %3110 = vmatpush1.bf16.msra.mxu0 %v3109_v39  ;;  %vm5147_vm3 = vmmov %vm5144_vm0 }
 0x3ab   : > { %v1699_v57 = vmul.f32 %v1688_v49, %v1672_v53  ;;  %v1700_v46 = vmul.f32 %v1692_v23, %v1671_v59  ;;  %v4688_v52 = vmul.f32 %v2366_v55, %v1672_v53  ;;  %v4690_v33 = vmul.f32 %v2370_v29, %v1671_v59 }
 0x3ac   : > { %v1750_v16 = vpop.permute.xlu1 %1749  ;;  %v1748_v11 = vpop.permute.xlu0 %1747  ;;  %v2422_v44 = vrot.slane %v4686_v54, %v3889_v8  ;;  %v1806_v49 = vrot.slane %v1801_v12, %v3889_v8  ;;  %v2464_v55 = vrot.slane %v2447_v35, %v3897_v14  ;;  %v1764_v29 = vrot.slane %v4684_v38, %v3889_v8 }
 0x3ad   : > { %v3161_v1 = vpack.c.bf16 %v1741_v27, %v1699_v57  ;;  %v3159_v40 = vpack.c.bf16 %v1742_v34, %v1700_v46  ;;  %v1757_v50 = vsel %vm443_vm5, %v1748_v11, %v1750_v16  ;;  %v1814_v34 = vrot.slane %v1801_v12, %v3931_v30 }
 0x3ae   : > { %v1782_v39 = vmul.f32 %v1768_v20, %v1757_v50  ;;  %v4712_v4 = vmul.f32 %v2422_v44, %v1757_v50  ;;  %v1818_v57 = vrot.slane %v1801_v12, %v3897_v14  ;;  %v2456_v20 = vrot.slane %v2447_v35, %v3891_v9 }
 0x3af   : > { %3160 = vmatprep.subr.bf16.mxu1 %v3159_v40  ;;  %v2460_v40 = vrot.slane %v2447_v35, %v3931_v30  ;;  %v1772_v12 = vrot.slane %v4684_v38, %v3931_v30 }
 0x3b0   : > { %3162 = vmatpush1.bf16.msra.mxu1 %v3161_v1  ;;  %v1792_v3 = vpop.permute.xlu1 %1791  ;;  %v1790_v19 = vpop.permute.xlu0 %1789 }
 0x3b1   : > { %v1799_v23 = vsel %vm487_vm6, %v1790_v19, %v1792_v3 }
 0x3b2   : > { %v1824_v56 = vmul.f32 %v1810_v10, %v1799_v23  ;;  %v4714_v58 = vmul.f32 %v2452_v47, %v1799_v23  ;;  %v2430_v23 = vrot.slane %v4686_v54, %v3931_v30 }
 0x3b4   : > { %v1796_v59 = vpop.permute.xlu1 %1795  ;;  %v1754_v53 = vpop.permute.xlu0 %1753  ;;  %v3111_v27 = vpack.c.bf16 %v1824_v56, %v1782_v39  ;;  %v5160_v18 = vpack.c.bf16 %v4714_v58, %v4712_v4  ;;  %v2567_v58 = vld [vmem:[#allocation8] sm:$0xff] }
 0x3b5   : > { %v1800_v46 = vsel %vm487_vm6, %v1796_v59, %v1790_v19  ;;  %v1758_v1 = vsel %vm443_vm5, %v1754_v53, %v1748_v11  ;;  %v1776_v19 = vrot.slane %v4684_v38, %v3897_v14  ;;  %v2426_v11 = vrot.slane %v4686_v54, %v3891_v9 }
 0x3b6   : > { %v1823_v44 = vmul.f32 %v1806_v49, %v1800_v46  ;;  %v4726_v10 = vmul.f32 %v2464_v55, %v1800_v46  ;;  %v1781_v47 = vmul.f32 %v1764_v29, %v1758_v1  ;;  %v4728_v50 = vmul.f32 %v2434_v42, %v1758_v1  ;;  %3112 = vmatprep.subr.bf16.mxu0 %v3111_v27 }
 0x3b8   : > { %v3113_v35 = vpack.c.bf16 %v1823_v44, %v1781_v47  ;;  %v1794_v49 = vpop.permute.xlu1 %1793  ;;  %v1752_v55 = vpop.permute.xlu0 %1751  ;;  %v4752_v44 = vld [vmem:[#allocation9 + $0x6] ss:$8 sm:$0xf]  ;;  %v4754_v47 = vld [vmem:[#allocation9 + $0x60] ss:$8 sm:$0xf] }
 0x3b9   : > { %v1797_v42 = vsel %vm487_vm6, %v1794_v49, %v1796_v59  ;;  %v1798_v39 = vsel %vm487_vm6, %v1792_v3, %v1794_v49  ;;  %v1755_v38 = vsel %vm443_vm5, %v1752_v55, %v1754_v53  ;;  %v1756_v56 = vsel %vm443_vm5, %v1750_v16, %v1752_v55  ;;  %v1885_v53 = vld [vmem:[#allocation9 + $0x7] ss:$8 sm:$0xf]  ;;  %vm5149_vm5 = vmmov %vm5148_vm4 }
 0x3ba   : > { %v1825_v27 = vmul.f32 %v1814_v34, %v1798_v39  ;;  %v1826_v54 = vmul.f32 %v1818_v57, %v1797_v42  ;;  %v4748_v46 = vmul.f32 %v2456_v20, %v1798_v39  ;;  %v4750_v1 = vmul.f32 %v2460_v40, %v1797_v42  ;;  %3114 = vmatpush1.bf16.msra.mxu0 %v3113_v35  ;;  %vm5150_vm6 = vmmov %vm5148_vm4 }
 0x3bb   : > { %v1783_v59 = vmul.f32 %v1772_v12, %v1756_v56  ;;  %v1784_v29 = vmul.f32 %v1776_v19, %v1755_v38  ;;  %v4756_v3 = vmul.f32 %v2426_v11, %v1756_v56  ;;  %v4758_v49 = vmul.f32 %v2430_v23, %v1755_v38 }
 0x3bc   : > { %v1834_v16 = vpop.permute.xlu1 %1833  ;;  %v1832_v34 = vpop.permute.xlu0 %1831  ;;  %v1852_v40 = vrot.slane %v4752_v44, %v3891_v9  ;;  %v2482_v12 = vrot.slane %v4754_v47, %v3889_v8  ;;  %v1894_v19 = vrot.slane %v1885_v53, %v3891_v9  ;;  %v2512_v11 = vrot.slane %v2507_v5, %v3889_v8 }
 0x3bd   : > { %v3165_v57 = vpack.c.bf16 %v1825_v27, %v1783_v59  ;;  %v3163_v35 = vpack.c.bf16 %v1826_v54, %v1784_v29  ;;  %v1841_v55 = vsel %vm531_vm7, %v1832_v34, %v1834_v16  ;;  %v1890_v38 = vrot.slane %v1885_v53, %v3889_v8 }
 0x3be   : > { %v2524_v56 = vrot.slane %v2507_v5, %v3897_v14  ;;  %v1848_v27 = vrot.slane %v4752_v44, %v3889_v8  ;;  %v2494_v54 = vrot.slane %v4754_v47, %v3897_v14  ;;  %v1866_v59 = vmul.f32 %v1852_v40, %v1841_v55 }
 0x3bf   : > { %3164 = vmatprep.subr.bf16.mxu1 %v3163_v35  ;;  %v4780_v20 = vmul.f32 %v2482_v12, %v1841_v55  ;;  %v1898_v61 = vrot.slane %v1885_v53, %v3931_v30  ;;  %v1902_v0 = vrot.slane %v1885_v53, %v3897_v14  ;;  %v2516_v12 = vrot.slane %v2507_v5, %v3891_v9 }
 0x3c0   : > { %3166 = vmatpush1.bf16.msra.mxu1 %v3165_v57  ;;  %v1876_v42 = vpop.permute.xlu1 %1875  ;;  %v1874_v39 = vpop.permute.xlu0 %1873  ;;  %v1856_v53 = vrot.slane %v4752_v44, %v3931_v30 }
 0x3c1   : > { %v1883_v29 = vsel %vm575_vm8, %v1874_v39, %v1876_v42 }
 0x3c2   : > { %v1908_v35 = vmul.f32 %v1894_v19, %v1883_v29  ;;  %v4782_v57 = vmul.f32 %v2512_v11, %v1883_v29  ;;  %v2520_v19 = vrot.slane %v2507_v5, %v3931_v30 }
 0x3c4   : > { %v1880_v62 = vpop.permute.xlu1 %1879  ;;  %v1838_v26 = vpop.permute.xlu0 %1837  ;;  %v3115_v23 = vpack.c.bf16 %v1908_v35, %v1866_v59  ;;  %v2490_v59 = vrot.slane %v4754_v47, %v3931_v30 }
 0x3c5   : > { %v1884_v32 = vsel %vm575_vm8, %v1880_v62, %v1874_v39  ;;  %v1842_v40 = vsel %vm531_vm7, %v1838_v26, %v1832_v34  ;;  %v1860_v39 = vrot.slane %v4752_v44, %v3897_v14  ;;  %v2486_v34 = vrot.slane %v4754_v47, %v3891_v9 }
 0x3c6   : > { %v1907_v11 = vmul.f32 %v1890_v38, %v1884_v32  ;;  %v4794_v55 = vmul.f32 %v2524_v56, %v1884_v32  ;;  %v1865_v29 = vmul.f32 %v1848_v27, %v1842_v40  ;;  %v4796_v41 = vmul.f32 %v2494_v54, %v1842_v40  ;;  %3116 = vmatprep.subr.bf16.mxu0 %v3115_v23 }
 0x3c8   : > { %5137 = vst [vmem:[#allocation16_spill] sm:$0xff] %v4794_v55  ;;  %5138 = vst [vmem:[#allocation17_spill] sm:$0xff] %v4796_v41  ;;  %v3117_v5 = vpack.c.bf16 %v1907_v11, %v1865_v29  ;;  %v1878_v38 = vpop.permute.xlu1 %1877  ;;  %v1836_v32 = vpop.permute.xlu0 %1835 }
 0x3c9   : > { %v1881_v23 = vsel %vm575_vm8, %v1878_v38, %v1880_v62  ;;  %v1882_v27 = vsel %vm575_vm8, %v1876_v42, %v1878_v38  ;;  %v1839_v44 = vsel %vm531_vm7, %v1836_v32, %v1838_v26  ;;  %v1840_v54 = vsel %vm531_vm7, %v1834_v16, %v1836_v32  ;;  %v1927_v42 = vld [vmem:[#allocation9 + $0x20] ss:$8 sm:$0xf]  ;;  %v1969_v38 = vld [vmem:[#allocation9 + $0x21] ss:$8 sm:$0xf]  ;;  %vm5151_vm7 = vmmov %vm5148_vm4 }
 0x3ca   : > { %v1909_v35 = vmul.f32 %v1898_v61, %v1882_v27  ;;  %v1910_v47 = vmul.f32 %v1902_v0, %v1881_v23  ;;  %v4816_v40 = vmul.f32 %v2516_v12, %v1882_v27  ;;  %v4818_v11 = vmul.f32 %v2520_v19, %v1881_v23  ;;  %3118 = vmatpush1.bf16.msra.mxu0 %v3117_v5 }
 0x3cb   : > { %v1867_v29 = vmul.f32 %v1856_v53, %v1840_v54  ;;  %v1868_v56 = vmul.f32 %v1860_v39, %v1839_v44  ;;  %v4820_v36 = vmul.f32 %v2486_v34, %v1840_v54  ;;  %v4822_v62 = vmul.f32 %v2490_v59, %v1839_v44 }
 0x3cc   : > { %5139 = vst [vmem:[#allocation20_spill] sm:$0xff] %v4818_v11  ;;  %v1918_v60 = vpop.permute.xlu1 %1917  ;;  %v1916_v26 = vpop.permute.xlu0 %1915  ;;  %v1936_v16 = vrot.slane %v1927_v42, %v3891_v9  ;;  %v1978_v12 = vrot.slane %v1969_v38, %v3891_v9  ;;  %v1932_v23 = vrot.slane %v1927_v42, %v3889_v8 }
 0x3cd   : > { %5140 = vst [vmem:[#allocation21_spill] sm:$0xff] %v4822_v62  ;;  %v3169_v41 = vpack.c.bf16 %v1909_v35, %v1867_v29  ;;  %v3167_v0 = vpack.c.bf16 %v1910_v47, %v1868_v56  ;;  %v4832_v53 = vsel %vm619_vm9, %v1916_v26, %v1918_v60  ;;  %v1974_v56 = vrot.slane %v1969_v38, %v3889_v8 }
 0x3ce   : > { %5141 = vst [vmem:[#allocation18_spill] sm:$0xff] %v4832_v53  ;;  %v1950_v5 = vmul.f32 %v1936_v16, %v4832_v53  ;;  %v1982_v47 = vrot.slane %v1969_v38, %v3931_v30  ;;  %v1986_v29 = vrot.slane %v1969_v38, %v3897_v14 }
 0x3cf   : > { %3168 = vmatprep.subr.bf16.mxu1 %v3167_v0 }
 0x3d0   : > { %3170 = vmatpush1.bf16.msra.mxu1 %v3169_v41  ;;  %v1960_v39 = vpop.permute.xlu1 %1959  ;;  %v1958_v34 = vpop.permute.xlu0 %1957 }
 0x3d1   : > { %v1967_v59 = vsel %vm663_vm10, %v1958_v34, %v1960_v39 }
 0x3d2   : > { %v1992_v32 = vmul.f32 %v1978_v12, %v1967_v59  ;;  %v1940_v12 = vrot.slane %v1927_v42, %v3931_v30  ;;  %v1944_v59 = vrot.slane %v1927_v42, %v3897_v14 }
 0x3d4   : > { %v1964_v27 = vpop.permute.xlu1 %1963  ;;  %v1922_v44 = vpop.permute.xlu0 %1921  ;;  %v3119_v54 = vpack.c.bf16 %v1992_v32, %v1950_v5 }
 0x3d5   : > { %v1968_v35 = vsel %vm663_vm10, %v1964_v27, %v1958_v34  ;;  %v4843_v41 = vsel %vm619_vm9, %v1922_v44, %v1916_v26 }
 0x3d6   : > { %5142 = vst [vmem:[#allocation19_spill] sm:$0xff] %v4843_v41  ;;  %v1991_v0 = vmul.f32 %v1974_v56, %v1968_v35  ;;  %v1949_v16 = vmul.f32 %v1932_v23, %v4843_v41  ;;  %3120 = vmatprep.subr.bf16.mxu0 %v3119_v54 }
 0x3d8   : > { %v3121_v5 = vpack.c.bf16 %v1991_v0, %v1949_v16  ;;  %v1962_v32 = vpop.permute.xlu1 %1961  ;;  %v1920_v61 = vpop.permute.xlu0 %1919  ;;  %v2011_v0 = vld [vmem:[#allocation9 + $0x22] ss:$8 sm:$0xf] }
 0x3d9   : > { %v1965_v34 = vsel %vm663_vm10, %v1962_v32, %v1964_v27  ;;  %v1966_v26 = vsel %vm663_vm10, %v1960_v39, %v1962_v32  ;;  %v4856_v38 = vsel %vm619_vm9, %v1920_v61, %v1922_v44  ;;  %v4860_v56 = vsel %vm619_vm9, %v1918_v60, %v1920_v61  ;;  %v2053_v27 = vld [vmem:[#allocation9 + $0x23] ss:$8 sm:$0xf] }
 0x3da   : > { %5143 = vst [vmem:[#allocation22_spill] sm:$0xff] %v4856_v38  ;;  %v1993_v23 = vmul.f32 %v1982_v47, %v1966_v26  ;;  %v1994_v54 = vmul.f32 %v1986_v29, %v1965_v34  ;;  %v1951_v42 = vmul.f32 %v1940_v12, %v4860_v56  ;;  %v1952_v35 = vmul.f32 %v1944_v59, %v4856_v38  ;;  %v2095_v38 = vld [vmem:[#allocation9 + $0x24] ss:$8 sm:$0xf] }
 0x3db   : > { %3122 = vmatpush1.bf16.msra.mxu0 %v3121_v5  ;;  %v2020_v44 = vrot.slane %v2011_v0, %v3891_v9  ;;  %v2062_v62 = vrot.slane %v2053_v27, %v3891_v9  ;;  %v2058_v5 = vrot.slane %v2053_v27, %v3889_v8  ;;  %v2016_v34 = vrot.slane %v2011_v0, %v3889_v8 }
 0x3dc   : > { %v3173_v16 = vpack.c.bf16 %v1993_v23, %v1951_v42  ;;  %v2002_v19 = vpop.permute.xlu1 %2001  ;;  %v2000_v39 = vpop.permute.xlu0 %1999  ;;  %v3171_v32 = vpack.c.bf16 %v1994_v54, %v1952_v35 }
 0x3dd   : > { %v2009_v60 = vsel %vm707_vm11, %v2000_v39, %v2002_v19 }
 0x3de   : > { %3172 = vmatprep.subr.bf16.mxu1 %v3171_v32  ;;  %v2034_v12 = vmul.f32 %v2020_v44, %v2009_v60  ;;  %v2070_v32 = vrot.slane %v2053_v27, %v3897_v14  ;;  %v2024_v60 = vrot.slane %v2011_v0, %v3931_v30 }
 0x3df   : > { %3174 = vmatpush1.bf16.msra.mxu1 %v3173_v16  ;;  %v2066_v16 = vrot.slane %v2053_v27, %v3931_v30 }
 0x3e0   : > { %v2044_v61 = vpop.permute.xlu1 %2043  ;;  %v2042_v47 = vpop.permute.xlu0 %2041 }
 0x3e1   : > { %v2051_v29 = vsel %vm751_vm12, %v2042_v47, %v2044_v61 }
 0x3e2   : > { %v2076_v59 = vmul.f32 %v2062_v62, %v2051_v29  ;;  %v2028_v29 = vrot.slane %v2011_v0, %v3897_v14 }
 0x3e4   : > { %v2048_v26 = vpop.permute.xlu1 %2047  ;;  %v2006_v23 = vpop.permute.xlu0 %2005  ;;  %v3123_v54 = vpack.c.bf16 %v2076_v59, %v2034_v12 }
 0x3e5   : > { %v2052_v42 = vsel %vm751_vm12, %v2048_v26, %v2042_v47  ;;  %v2010_v35 = vsel %vm707_vm11, %v2006_v23, %v2000_v39  ;;  %v2104_v47 = vrot.slane %v2095_v38, %v3891_v9 }
 0x3e6   : > { %v2075_v44 = vmul.f32 %v2058_v5, %v2052_v42  ;;  %v2033_v62 = vmul.f32 %v2016_v34, %v2010_v35  ;;  %3124 = vmatprep.subr.bf16.mxu0 %v3123_v54 }
 0x3e8   : > { %v3125_v11 = vpack.c.bf16 %v2075_v44, %v2033_v62  ;;  %v2046_v12 = vpop.permute.xlu1 %2045  ;;  %v2004_v59 = vpop.permute.xlu0 %2003 }
 0x3e9   : > { %v2049_v39 = vsel %vm751_vm12, %v2046_v12, %v2048_v26  ;;  %v2050_v41 = vsel %vm751_vm12, %v2044_v61, %v2046_v12  ;;  %v2007_v27 = vsel %vm707_vm11, %v2004_v59, %v2006_v23  ;;  %v2008_v5 = vsel %vm707_vm11, %v2002_v19, %v2004_v59 }
 0x3ea   : > { %v2077_v34 = vmul.f32 %v2066_v16, %v2050_v41  ;;  %v2078_v54 = vmul.f32 %v2070_v32, %v2049_v39  ;;  %v2035_v0 = vmul.f32 %v2024_v60, %v2008_v5  ;;  %v2036_v42 = vmul.f32 %v2028_v29, %v2007_v27  ;;  %3126 = vmatpush1.bf16.msra.mxu0 %v3125_v11 }
 0x3eb   : > { %v2108_v61 = vrot.slane %v2095_v38, %v3931_v30  ;;  %v2100_v23 = vrot.slane %v2095_v38, %v3889_v8  ;;  %v2112_v19 = vrot.slane %v2095_v38, %v3897_v14  ;;  %v2183_v38 = vld [vmem:[#allocation9 + $0x27] ss:$8 sm:$0xf] }
 0x3ec   : > { %v3177_v35 = vpack.c.bf16 %v2077_v34, %v2035_v0  ;;  %v2086_v44 = vpop.permute.xlu1 %2085  ;;  %v2084_v62 = vpop.permute.xlu0 %2083  ;;  %v3175_v55 = vpack.c.bf16 %v2078_v54, %v2036_v42  ;;  %v2192_v54 = vrot.slane %v2183_v38, %v3891_v9 }
 0x3ed   : > { %v2093_v26 = vsel %vm5144_vm0, %v2084_v62, %v2086_v44 }
 0x3ee   : > { %v2118_v53 = vmul.f32 %v2104_v47, %v2093_v26  ;;  %3176 = vmatprep.subr.bf16.mxu1 %v3175_v55  ;;  %v2141_v47 = vld [vmem:[#allocation9 + $0x26] ss:$8 sm:$0xf] }
 0x3ef   : > { %3178 = vmatpush1.bf16.msra.mxu1 %v3177_v35  ;;  %v2150_v34 = vrot.slane %v2141_v47, %v3891_v9 }
 0x3f0   : > { %v2088_v41 = vpop.permute.xlu1 %2087  ;;  %v2090_v16 = vpop.permute.xlu0 %2089  ;;  %v3127_v11 = vpack.c.bf16 %v4412_v2, %v2118_v53 }
 0x3f1   : > { %v2092_v32 = vsel %vm5145_vm1, %v2086_v44, %v2088_v41  ;;  %v2091_v60 = vsel %vm5146_vm2, %v2088_v41, %v2090_v16  ;;  %v2094_v55 = vsel %vm5147_vm3, %v2090_v16, %v2084_v62  ;;  %v2188_v62 = vrot.slane %v2183_v38, %v3889_v8 }
 0x3f2   : > { %v2119_v29 = vmul.f32 %v2108_v61, %v2092_v32  ;;  %v2117_v12 = vmul.f32 %v2100_v23, %v2094_v55  ;;  %v2120_v59 = vmul.f32 %v2112_v19, %v2091_v60  ;;  %3128 = vmatprep.subr.bf16.mxu0 %v3127_v11  ;;  %v2196_v16 = vrot.slane %v2183_v38, %v3931_v30 }
 0x3f3   : > { %v2200_v11 = vrot.slane %v2183_v38, %v3897_v14  ;;  %v2154_v55 = vrot.slane %v2141_v47, %v3931_v30 }
 0x3f4   : > { %v3181_v39 = vpack.c.bf16 %v4428_v24, %v2119_v29  ;;  %v3129_v27 = vpack.c.bf16 %v4410_v51, %v2117_v12  ;;  %v2134_v2 = vpop.permute.xlu1 %2133  ;;  %v2132_v53 = vpop.permute.xlu0 %2131  ;;  %v3179_v5 = vpack.c.bf16 %v4422_v31, %v2120_v59  ;;  %v2146_v31 = vrot.slane %v2141_v47, %v3889_v8 }
 0x3f5   : > { %v2138_v0 = vsel %vm843_vm14, %v2132_v53, %v2134_v2  ;;  %v2158_v29 = vrot.slane %v2141_v47, %v3897_v14 }
 0x3f6   : > { %3130 = vmatpush1.bf16.msra.mxu0 %v3129_v27  ;;  %3180 = vmatprep.subr.bf16.mxu1 %v3179_v5  ;;  %v2164_v51 = vmul.f32 %v2150_v34, %v2138_v0 }
 0x3f7   : > { %3182 = vmatpush1.bf16.msra.mxu1 %v3181_v39 }
 0x3f8   : > { %v2176_v42 = vpop.permute.xlu1 %2175  ;;  %v2174_v35 = vpop.permute.xlu0 %2173 }
 0x3f9   : > { %v2180_v24 = vsel %vm5148_vm4, %v2174_v35, %v2176_v42 }
 0x3fa   : > { %v2206_v44 = vmul.f32 %v2192_v54, %v2180_v24 }
 0x3fc   : > { %v2172_v26 = vpop.permute.xlu1 %2171  ;;  %v2130_v61 = vpop.permute.xlu0 %2129  ;;  %v3131_v23 = vpack.c.bf16 %v2206_v44, %v2164_v51  ;;  %v2225_v51 = vld [vmem:[#allocation9 + $0x40] ss:$8 sm:$0xf] }
 0x3fd   : > { %v2181_v19 = vsel %vm5149_vm5, %v2172_v26, %v2174_v35  ;;  %v2139_v41 = vsel %vm843_vm14, %v2130_v61, %v2132_v53 }
 0x3fe   : > { %v2205_v32 = vmul.f32 %v2188_v62, %v2181_v19  ;;  %v2163_v60 = vmul.f32 %v2146_v31, %v2139_v41  ;;  %3132 = vmatprep.subr.bf16.mxu0 %v3131_v23  ;;  %v2234_v31 = vrot.slane %v2225_v51, %v3891_v9 }
 0x400   : > { %v3133_v12 = vpack.c.bf16 %v2205_v32, %v2163_v60  ;;  %v2178_v59 = vpop.permute.xlu1 %2177  ;;  %v2136_v39 = vpop.permute.xlu0 %2135  ;;  %v2230_v32 = vrot.slane %v2225_v51, %v3889_v8 }
 0x401   : > { %v2179_v27 = vsel %vm5150_vm6, %v2176_v42, %v2178_v59  ;;  %v2182_v53 = vsel %vm5151_vm7, %v2178_v59, %v2172_v26  ;;  %v2137_v5 = vsel %vm843_vm14, %v2134_v2, %v2136_v39  ;;  %v2140_v38 = vsel %vm843_vm14, %v2136_v39, %v2130_v61  ;;  %v2267_v42 = vld [vmem:[#allocation9 + $0x41] ss:$8 sm:$0xf] }
 0x402   : > { %v2207_v34 = vmul.f32 %v2196_v16, %v2179_v27  ;;  %v2208_v54 = vmul.f32 %v2200_v11, %v2182_v53  ;;  %v2165_v0 = vmul.f32 %v2154_v55, %v2137_v5  ;;  %v2166_v35 = vmul.f32 %v2158_v29, %v2140_v38  ;;  %3134 = vmatpush1.bf16.msra.mxu0 %v3133_v12 }
 0x403   : > { %v2276_v2 = vrot.slane %v2267_v42, %v3891_v9  ;;  %v2272_v41 = vrot.slane %v2267_v42, %v3889_v8  ;;  %v2280_v27 = vrot.slane %v2267_v42, %v3931_v30  ;;  %v2284_v53 = vrot.slane %v2267_v42, %v3897_v14 }
 0x404   : > { %v3185_v47 = vpack.c.bf16 %v2207_v34, %v2165_v0  ;;  %v2218_v24 = vpop.permute.xlu1 %2217  ;;  %v2216_v44 = vpop.permute.xlu0 %2215  ;;  %v3183_v62 = vpack.c.bf16 %v2208_v54, %v2166_v35  ;;  %v2238_v38 = vrot.slane %v2225_v51, %v3931_v30  ;;  %v2242_v34 = vrot.slane %v2225_v51, %v3897_v14 }
 0x405   : > { %v2222_v26 = vsel %vm931_vm13, %v2216_v44, %v2218_v24  ;;  %v5152_v51 = vpack.c.bf16 %v4602_v21, %v4612_v43  ;;  %v5156_v21 = vpack.c.bf16 %v4644_v15, %v4642_v7  ;;  %v5157_v43 = vpack.c.bf16 %v4748_v46, %v4756_v3  ;;  %v5171_v46 = vld [vmem:[#allocation20_spill] sm:$0xff]  ;;  %v5172_v3 = vld [vmem:[#allocation21_spill] sm:$0xff] }
 0x406   : > { %3184 = vmatprep.subr.bf16.mxu1 %v3183_v62  ;;  %v2248_v16 = vmul.f32 %v2234_v31, %v2222_v26  ;;  %v5161_v7 = vpack.c.bf16 %v4816_v40, %v4820_v36  ;;  %v5162_v15 = vpack.c.bf16 %v4682_v48, %v4690_v33  ;;  %v5165_v36 = vpack.c.bf16 %v4750_v1, %v4758_v49  ;;  %v5166_v48 = vld [vmem:[#allocation18_spill] sm:$0xff]  ;;  %v5168_v33 = vld [vmem:[#allocation17_spill] sm:$0xff] }
 0x407   : > { %3186 = vmatpush1.bf16.msra.mxu1 %v3185_v47  ;;  %v5174_v1 = vld [vmem:[#allocation22_spill] sm:$0xff] }
 0x408   : > { %v2260_v61 = vpop.permute.xlu1 %2259 }
 0x409   : > { %v2258_v23 = vpop.permute.xlu0 %2257 }
 0x40a   : > { %v2264_v19 = vsel %vm975_vm15, %v2258_v23, %v2260_v61 }
 0x40b   : > { %v2290_v11 = vmul.f32 %v2276_v2, %v2264_v19 }
 0x40c   : > { %v2256_v60 = vpop.permute.xlu1 %2255 }
 0x40d   : > { %v2265_v55 = vsel %vm975_vm15, %v2256_v60, %v2258_v23  ;;  %v2214_v29 = vpop.permute.xlu0 %2213  ;;  %v3135_v12 = vpack.c.bf16 %v2290_v11, %v2248_v16 }
 0x40e   : > { %v2289_v59 = vmul.f32 %v2272_v41, %v2265_v55  ;;  %v2223_v39 = vsel %vm931_vm13, %v2214_v29, %v2216_v44  ;;  %v5153_v41 = vpack.c.bf16 %v4560_v25, %v4558_v63  ;;  %v5158_v63 = vpack.c.bf16 %v4604_v22, %v4614_v37  ;;  %v2537_v25 = vld [vmem:[#allocation9 + $0x62] ss:$8 sm:$0xf] }
 0x40f   : > { %v2247_v5 = vmul.f32 %v2230_v32, %v2223_v39  ;;  %3136 = vmatprep.subr.bf16.mxu0 %v3135_v12  ;;  %v2546_v45 = vrot.slane %v2537_v25, %v3891_v9  ;;  %v2542_v22 = vrot.slane %v2537_v25, %v3889_v8  ;;  %v5163_v37 = vpack.c.bf16 %v4726_v10, %v4728_v50  ;;  %v5167_v8 = vld [vmem:[#allocation16_spill] sm:$0xff]  ;;  %v5170_v50 = vld [vmem:[#allocation19_spill] sm:$0xff] }
 0x410   : > { %v2262_v54 = vpop.permute.xlu1 %2261  ;;  %v5169_v4 = vpack.c.bf16 %v5167_v8, %v5168_v33  ;;  %v2550_v10 = vrot.slane %v2537_v25, %v3931_v30 }
 0x411   : > { %v3137_v0 = vpack.c.bf16 %v2289_v59, %v2247_v5  ;;  %v2263_v35 = vsel %vm975_vm15, %v2260_v61, %v2262_v54  ;;  %v2266_v47 = vsel %vm975_vm15, %v2262_v54, %v2256_v60  ;;  %v2220_v62 = vpop.permute.xlu0 %2219  ;;  %v2560_v9 = vmul.f32 %v2546_v45, %v4860_v56 }
 0x412   : > { %v2291_v44 = vmul.f32 %v2280_v27, %v2263_v35  ;;  %v2292_v31 = vmul.f32 %v2284_v53, %v2266_v47  ;;  %v2221_v42 = vsel %vm931_vm13, %v2218_v24, %v2220_v62  ;;  %v2224_v2 = vsel %vm931_vm13, %v2220_v62, %v2214_v29 }
 0x413   : > { %v2249_v26 = vmul.f32 %v2238_v38, %v2221_v42  ;;  %v2250_v23 = vmul.f32 %v2242_v34, %v2224_v2  ;;  %3138 = vmatpush1.bf16.msra.mxu0 %v3137_v0  ;;  %v5154_v24 = vpack.c.bf16 %v4680_v13, %v4688_v52  ;;  %v5159_v13 = vpack.c.bf16 %v4656_v17, %v4658_v28 }
 0x414   : > { %3140 = vmatprep.subr.bf16.mxu0 %v5152_v51  ;;  %v2554_v17 = vrot.slane %v2537_v25, %v3897_v14  ;;  %v5164_v28 = vpack.c.bf16 %v4782_v57, %v4780_v20  ;;  %v2559_v52 = vmul.f32 %v2542_v22, %v5166_v48  ;;  %v5173_v20 = vpack.c.bf16 %v5171_v46, %v5172_v3 }
 0x415   : > { %v3189_v61 = vpack.c.bf16 %v2291_v44, %v2249_v26  ;;  %v3187_v19 = vpack.c.bf16 %v2292_v31, %v2250_v23  ;;  %v2561_v49 = vmul.f32 %v2550_v10, %v5174_v1 }
 0x416   : > { %v2562_v14 = vmul.f32 %v2554_v17, %v5170_v50 }
 0x417   : > { %3142 = vmatpush1.bf16.msra.mxu0 %v5153_v41  ;;  %3188 = vmatprep.subr.bf16.mxu1 %v3187_v19  ;;  %v3307_v19 = vld [vmem:[%s3743_s7] sm:$0xff] }
 0x418   : > { %3144 = vmatprep.subr.bf16.mxu0 %v5154_v24  ;;  %3190 = vmatpush1.bf16.msra.mxu1 %v3189_v61  ;;  %v3308_v24 = vld [vmem:[%s3743_s7 + $0x8] sm:$0xff] }
 0x419   : > { %3192 = vmatprep.subr.bf16.mxu1 %v5155_v6 }
 0x41b   : > { %3146 = vmatpush1.bf16.msra.mxu0 %v5156_v21  ;;  %v3309_v21 = vld [vmem:[%s3743_s7 + $0x10] sm:$0xff] }
 0x41c   : > { %3148 = vmatprep.subr.bf16.mxu0 %v5157_v43  ;;  %3194 = vmatpush1.bf16.msra.mxu1 %v5158_v63  ;;  %v3310_v63 = vld [vmem:[%s3743_s7 + $0x18] sm:$0xff]  ;;  %s3524_s7 = smov [#allocation11]  }
 0x41d   : > { %3196 = vmatprep.subr.bf16.mxu1 %v5159_v13  ;;  %s3429_s28 = sshll.u32 %s3524_s7, 4  ;;  %s3430_s28 = int_to_ptr.vmem [resolvable:$false] %s3429_s28 }
 0x41e   : > { %s3431_s30 = scalar_lea.vmem %s3430_s28, 1024  ;;  %p3432_p3 = scmp.lt.s32.totalorder %s5020_s27, %s3430_s28 }
 0x41f   : > { %3150 = vmatpush1.bf16.msra.mxu0 %v5160_v18  ;;  %p3433_p7 = scmp.lt.s32.totalorder %s3431_s30, %s3425_s13 }
 0x420   : > { %3152 = vmatprep.subr.bf16.mxu0 %v5161_v7  ;;  %3198 = vmatpush1.bf16.msra.mxu1 %v5162_v15 }
 0x421   : > { %3200 = vmatprep.subr.bf16.mxu1 %v5163_v37  ;;  %p3434_p10 = por %p3433_p7, %p3432_p3 }
 0x423   : > { %3154 = vmatpush1.bf16.msra.mxu0 %v5164_v28  ;;  %p3435_p13 = pnand %p3434_p10, %p3428_p8 }
 0x424   : > { %2732 = vmatprep.subr.mxu0 %v2560_v9  ;;  %3202 = vmatpush1.bf16.msra.mxu1 %v5165_v36 }
 0x425   : > { %3204 = vmatprep.subr.bf16.mxu1 %v5169_v4 }
 0x427   : > { %2733 = vmatpush1.msra.mxu0 %v2559_v52 }
 0x428   : > { %3206 = vmatpush1.bf16.msra.mxu1 %v5173_v20  ;;  %2745 = vmatmul.mubr.f32.vlgmr.msra.gmra.mrb[2].mxu0 %v2567_v58 }
 0x429   : > { %2803 = vmatprep.subr.mxu1 %v2562_v14 }
 0x42c   : > { %2804 = vmatpush1.msra.mxu1 %v2561_v49 }
 0x42d   : > { %2816 = vmatmul.mubr.f32.vlgmr.msra.gmra.mrb[2].mxu1 %v2567_v58 }
 0x4fb   : > { %v2746_v57 = vpop.f32.mrb[2].mxu0 }
 0x4fc   : > { %v2828_v40 = vmul.f32 %v2746_v57, %v2746_v57  ;;  %v2748_v56 = vpop.f32.mrb[3].mxu0 }
 0x4fd   : > { %v2822_v16 = vadd.f32 %v2748_v56, %v2746_v57  ;;  %v2829_v11 = vmul.f32 %v2748_v56, %v2748_v56 }
 0x4ff   : > { %v2832_v32 = vadd.f32 %v2829_v11, %v2828_v40 }
 0x500   : > { %v2817_v30 = vpop.f32.mrb[2].mxu1 }
 0x501   : > { %v2823_v60 = vadd.f32 %v2822_v16, %v2817_v30  ;;  %v2830_v55 = vmul.f32 %v2817_v30, %v2817_v30  ;;  %v2819_v29 = vpop.f32.mrb[3].mxu1 }
 0x502   : > { %v2831_v12 = vmul.f32 %v2819_v29, %v2819_v29 }
 0x503   : > { %v2833_v59 = vadd.f32 %v2832_v32, %v2830_v55  ;;  %v2824_v39 = vadd.f32 %v2823_v60, %v2819_v29 }
 0x505   : > { %v2834_v27 = vadd.f32 %v2833_v59, %v2831_v12  ;;  %2825 = vadd.xlane.f32.xlu0 %v2824_v39 }
 0x507   : > { %2835 = vadd.xlane.f32.xlu1 %v2834_v27 }
 0x592   : > { %v2826_v53 = vpop.xlane.xlu0 %2825 }
 0x593   : > { %v2827_v5 = vmul.f32 0.001953125, %v2826_v53 }
 0x594   : > { %v2836_v38 = vpop.xlane.xlu1 %2835 }
 0x595   : > { %v2837_v34 = vmul.f32 0.001953125, %v2836_v38  ;;  %v2838_v54 = vmul.f32 %v2827_v5, %v2827_v5  ;;  %v2840_v62 = vsub.f32 %v2746_v57, %v2827_v5  ;;  %v2841_v44 = vsub.f32 %v2748_v56, %v2827_v5 }
 0x596   : > { %v2842_v31 = vsub.f32 %v2817_v30, %v2827_v5  ;;  %v2843_v42 = vsub.f32 %v2819_v29, %v2827_v5 }
 0x597   : > { %v2839_v0 = vsub.f32 %v2837_v34, %v2838_v54 }
 0x599   : > { %v2844_v35 = vmax.f32 %v2839_v0, 0.0 }
 0x59b   : > { %v2845_v47 = vadd.f32 1e-05, %v2844_v35 }
 0x59d   : > { %3305 = vrsqrt.f32 %v2845_v47 }
 0x5a7   : > { %v3306_v2 = vpop.eup %3305 }
 0x5a8   : > { %v2847_v26 = vmul.f32 %v3306_v2, %v2840_v62  ;;  %v2848_v23 = vmul.f32 %v3306_v2, %v2841_v44  ;;  %v2849_v51 = vmul.f32 %v3306_v2, %v2842_v31  ;;  %v2850_v61 = vmul.f32 %v3306_v2, %v2843_v42 }
 0x5aa   : > { %v2851_v41 = vadd.f32 %v3307_v19, %v2847_v26  ;;  %v2852_v6 = vadd.f32 %v3308_v24, %v2848_v23  ;;  %v2853_v43 = vadd.f32 %v3309_v21, %v2849_v51  ;;  %v2854_v25 = vadd.f32 %v3310_v63, %v2850_v61 }
 0x5ac   : > { %2855 = vst [vmem:[%s253_s29] sm:$0xff] %v2851_v41  ;;  %2856 = vst [vmem:[%s253_s29 + $0x8] sm:$0xff] %v2852_v6 }
 0x5ad   : > { %2857 = vst [vmem:[%s253_s29 + $0x10] sm:$0xff] %v2853_v43  ;;  %2858 = vst [vmem:[%s253_s29 + $0x18] sm:$0xff] %v2854_v25 }
 0x5ae   : > { %3438 = shalt.err (!%p3435_p13)
}
 0x5af   : > { %s3439_s26 = scalar_lea.hbm %s5018_s19, 512  ;;  %s3443_s6 = scalar_lea.hbm %s5066_s4, 1024 }
 0x5b0   : > { %p3440_p5 = scmp.ne.s32.totalorder %s5018_s19, %s3439_s26  ;;  %p3444_p9 = scmp.lt.u32.totalorder %s5018_s19, %s5066_s4 }
 0x5b1   : > { %p3445_p12 = scmp.lt.u32.totalorder %s3443_s6, %s3439_s26  ;;  %p3447_p1 = scmp.lt.u32.totalorder %s3439_s26, %s5018_s19 }
 0x5b2   : > { %p3441_p0 = pnand %p3440_p5, %p3692_p6 }
 0x5b3   : > { %p3446_p2 = por %p3445_p12, %p3444_p9 }
 0x5b4   : > { %p3442_p11 = pneg %p3441_p0 }
 0x5b5   : > { %p3448_p4 = por %p3447_p1, %p3446_p2 }
 0x5b7   : > { %p3449_p8 = pnand %p3448_p4, %p3442_p11 }
 0x5b9   : > { %3452 = shalt.err (!%p3449_p8)
}
 0x5ba   : > { %3221 = dma.vmem_to_hbm [thread:$0]  (%p3692_p6), %s5020_s27, 512, %s5018_s19, %s2860_s9  }
 0x5bb PF: > { %s2886_s10 = sand.u32 1, %s3487_s15   ;;  %p5176_p3 = scmp.ne.s32.totalorder %s5092_s22, 0 }
 0x5bc   : > { %p5177_p7 = scmp.ge.s32.totalorder %s3499_s18, 2  ;;  %s2887_s24 = scalar_lea.sflag [#allocation5], %s2886_s10 }
 0x5be   : > { %p3238_p10 = pnand %p5177_p7, %p5176_p3 }
 0x5c0   : > { %3482 = dma.done.wait (!%p3238_p10), %s2887_s24, 512  }
 0x5c1   : > { %3484 = vsyncadd (!%p3238_p10), %s2887_s24, 4294966784  ;;  %p19_p13 = scmp.ge.s32.totalorder %s3678_s8, 4   ;;  %s5178_s15 = smov %s3491_s16 }
 0x5c2   : > { %s5179_s16 = smov %s3495_s17  ;;  %s5180_s17 = smov %s3688_s11 }
 0x5c3   : > { %s5181_s18 = smov %s3678_s8  ;;  %21 = sbr.rel (!%p19_p13) target bundleno = 7 (0x7), region = 118 }
 0x5ca   :  { %2892 = vsyncpa [#allocation4], 1 }
 0x5cb   :  { %2894 = vsyncpa [#allocation4 + $0x1], 1 }
 0x5cc   :  { %2895 = vsyncpa [#allocation7], 1 }
 0x5cd   :  { %2896 = vsyncpa [#allocation10], 1 }
 0x5ce   :  { %2897 = vsyncpa [#allocation5], 1 }
 0x5cf   :  { %2899 = vsyncpa [#allocation5 + $0x1], 1 }

</bundles_post_ra>
